<compile_context>
chip_gen: v7x
topology: tpu7x:2x2x1
jax: 0.10.0
libtpu: 0.0.40
codegen_flags: <defaults>
</compile_context>

<pallas_src>
import functools

import jax
import jax.numpy as jnp
from jax.experimental import pallas as pl
from jax.experimental.pallas import tpu as pltpu

FEATURE_SIZE = 1000
ENC_DIMS = [FEATURE_SIZE, 512, 256, 128, 100]   # encoder layer sizes
DEC_DIMS = [100, 128, 256, 512, FEATURE_SIZE]   # decoder layer sizes

LANE = 128


def _round_up(n, m):
    return ((n + m - 1) // m) * m


# Lane-padded layer sizes: [1024, 512, 256, 128, 128, 128, 256, 512, 1024]
PAD_DIMS = [_round_up(d, LANE) for d in ENC_DIMS + DEC_DIMS[1:]]
F_PAD = PAD_DIMS[0]      # 1024 (padded feature size)
CODE_PAD = PAD_DIMS[4]   # 128  (padded bottleneck size)
N_LAYERS = len(PAD_DIMS) - 1  # 8 Linear layers


def _tpu_generation():
    """Best-effort TPU generation (5, 6, 7, ...) from the device kind string."""
    try:
        kind = jax.devices()[0].device_kind.lower()
    except Exception:
        return 0
    for gen in (7, 6, 5, 4):
        if f"v{gen}" in kind:
            return gen
    return 0


def _pick_batch_tile(batch):
    """Generation-specific batch tile (static, chosen outside jit).

    v5e  : 128 rows already saturate its 128x128 MXUs.
    v6e  : 256 rows fill the 2x256x256 MXU.
    v7x  : 256-row target, but guarantee >= 2 grid steps when batch > 128 so
           both TensorCores get work via the "parallel" grid axis.
    """
    gen = _tpu_generation()
    target = 256 if gen >= 6 else 128
    padded = _round_up(max(batch, 1), 8)
    tile = min(target, padded)
    if gen >= 7 and batch > 128:
        half = _round_up(-(-padded // 2), 8)   # ceil(padded/2) rounded to 8
        tile = min(tile, max(half, 8))
    return tile


def _autoencoder_kernel(x_ref,
                        w1, b1, w2, b2, w3, b3, w4, b4,      # encoder params
                        w5, b5, w6, b6, w7, b7, w8, b8,      # decoder params
                        enc_ref, dec_ref):
    """One batch tile: full fused forward pass, weights resident in VMEM."""

    def linear(h_bf16, w_ref, b_ref):
        # bf16 x bf16 MXU matmul with f32 accumulation + f32 bias broadcast.
        return jnp.dot(h_bf16, w_ref[...],
                       preferred_element_type=jnp.float32) + b_ref[...]

    def relu_bf16(y_f32):
        # ReLU in f32 on the VPU, cast to bf16 only for the next MXU feed.
        return jnp.maximum(y_f32, 0.0).astype(jnp.bfloat16)

    h = x_ref[...]                                   # (B_TILE, 1024) bf16

    # ---- encoder ----
    h = relu_bf16(linear(h, w1, b1))
    h = relu_bf16(linear(h, w2, b2))
    h = relu_bf16(linear(h, w3, b3))
    encoded = linear(h, w4, b4)                      # f32, no activation
    enc_ref[...] = encoded.astype(enc_ref.dtype)

    # ---- decoder ----
    h = relu_bf16(linear(encoded.astype(jnp.bfloat16), w5, b5))
    h = relu_bf16(linear(h, w6, b6))
    h = relu_bf16(linear(h, w7, b7))
    logits = linear(h, w8, b8)
    # sigmoid(x) == 0.5*tanh(0.5*x) + 0.5  -> single EUP transcendental.
    dec_ref[...] = (0.5 * jnp.tanh(0.5 * logits) + 0.5).astype(dec_ref.dtype)


def init_params(key):
    """PyTorch-style init: U(-1/sqrt(fan_in), +1/sqrt(fan_in)); f32, unpadded."""
    params = []
    dims = list(zip(ENC_DIMS[:-1], ENC_DIMS[1:])) + list(zip(DEC_DIMS[:-1], DEC_DIMS[1:]))
    for (fan_in, fan_out) in dims:
        key, kw, kb = jax.random.split(key, 3)
        bound = 1.0 / jnp.sqrt(jnp.float32(fan_in))
        w = jax.random.uniform(kw, (fan_in, fan_out), jnp.float32, -bound, bound)
        b = jax.random.uniform(kb, (1, fan_out), jnp.float32, -bound, bound)
        params += [w, b]
    return params


def prepare_params(params):
    """Hoisted, one-time layout work: zero-pad every Linear to lane-aligned
    (in_pad, out_pad) shapes and cast weights to bf16 (biases stay f32)."""
    prepped = []
    for li in range(N_LAYERS):
        w = params[2 * li]
        b = params[2 * li + 1]
        in_p, out_p = PAD_DIMS[li], PAD_DIMS[li + 1]
        w_p = jnp.zeros((in_p, out_p), jnp.float32).at[: w.shape[0], : w.shape[1]].set(w)
        b_p = jnp.zeros((1, out_p), jnp.float32).at[:, : b.shape[1]].set(b)
        prepped += [w_p.astype(jnp.bfloat16), b_p]
    return prepped


@functools.partial(jax.jit, static_argnames=("tile",))
def _forward_padded(x, prepped_params, tile):
    """x: (batch, 1000) f32.  prepped_params: output of prepare_params()."""
    batch = x.shape[0]
    padded_batch = _round_up(batch, tile)
    n_tiles = padded_batch // tile

    # Zero-pad the input (rows to the tile multiple, features 1000 -> 1024)
    # and cast to bf16 once, outside the kernel (single fused XLA pad+cast).
    x_pad = jnp.zeros((padded_batch, F_PAD), jnp.bfloat16)
    x_pad = x_pad.at[:batch, :FEATURE_SIZE].set(x.astype(jnp.bfloat16))

    # Batch-tiled spec for x; weights/biases use constant index maps so the
    # same VMEM-resident block is reused across the whole grid.
    x_spec = pl.BlockSpec((tile, F_PAD), lambda i: (i, 0))
    param_specs = []
    for li in range(N_LAYERS):
        in_p, out_p = PAD_DIMS[li], PAD_DIMS[li + 1]
        param_specs.append(pl.BlockSpec((in_p, out_p), lambda i: (0, 0)))
        param_specs.append(pl.BlockSpec((1, out_p), lambda i: (0, 0)))

    # Advisory cost estimate for the XLA scheduler.
    flops = 2 * padded_batch * sum(a * b for a, b in zip(PAD_DIMS[:-1], PAD_DIMS[1:]))
    weight_bytes = sum(a * b * 2 + b * 4 for a, b in zip(PAD_DIMS[:-1], PAD_DIMS[1:]))
    io_bytes = padded_batch * (F_PAD * 2 + CODE_PAD * 4 + F_PAD * 2)

    enc_pad, dec_pad = pl.pallas_call(
        _autoencoder_kernel,
        out_shape=(
            jax.ShapeDtypeStruct((padded_batch, CODE_PAD), jnp.float32),   # encoded
            jax.ShapeDtypeStruct((padded_batch, F_PAD), jnp.bfloat16),     # decoded (bf16 writeback)
        ),
        grid=(n_tiles,),
        in_specs=[x_spec] + param_specs,
        out_specs=(
            pl.BlockSpec((tile, CODE_PAD), lambda i: (i, 0)),
            pl.BlockSpec((tile, F_PAD), lambda i: (i, 0)),
        ),
        compiler_params=pltpu.CompilerParams(
            dimension_semantics=("parallel",),          # megacore / v7x 2-TC split
            vmem_limit_bytes=32 * 1024 * 1024,          # legal on v7x (64 MiB phys)
        ),
        cost_estimate=pl.CostEstimate(
            flops=flops,
            transcendentals=padded_batch * F_PAD,       # sigmoid tanh
            bytes_accessed=weight_bytes + io_bytes,
        ),
    )(x_pad, *prepped_params)

    # Slice away batch padding and padded feature lanes; cast decoded back to
    # f32 here (fused with the slice) to keep the module's float32 contract.
    encoded = enc_pad[:batch, : ENC_DIMS[-1]]
    decoded = dec_pad[:batch, :FEATURE_SIZE].astype(jnp.float32)
    return encoded, decoded


def autoencoder_forward(x, prepped_params):
    tile = _pick_batch_tile(x.shape[0])   # static per-generation tile choice
    return _forward_padded(x, prepped_params, tile)


def _reference_forward(x, params, compute_dtype=jnp.float32):
    """Pure-JAX reference (unpadded); compute_dtype controls the matmul input
    precision so we can check both exact-f32 and bf16-MXU behaviour."""
    ws = [w.astype(compute_dtype) for w in params[0::2]]
    bs = params[1::2]
    h = x.astype(compute_dtype)
    encoded = None
    y = None
    for i in range(8):
        y = jnp.dot(h, ws[i], preferred_element_type=jnp.float32) + bs[i]
        if i == 3:
            encoded = y                       # bottleneck, no activation
            h = y.astype(compute_dtype)
        elif i < 7:
            h = jnp.maximum(y, 0.0).astype(compute_dtype)
    decoded = jax.nn.sigmoid(y)
    return encoded, decoded


if __name__ == "__main__":
    key = jax.random.PRNGKey(0)
    key, kx = jax.random.split(key)

    batch = 8
    x = jax.random.normal(kx, (batch, FEATURE_SIZE), jnp.float32)
    params = init_params(key)
    prepped = prepare_params(params)

    encoded, decoded = jax.block_until_ready(autoencoder_forward(x, prepped))

    assert encoded.shape == (batch, 100) and decoded.shape == (batch, FEATURE_SIZE)
    assert encoded.dtype == jnp.float32 and decoded.dtype == jnp.float32

    # Check against a reference that uses the same bf16-input / f32-acc matmul
    # recipe as the kernel (decoded tolerance covers its bf16 writeback).
    enc_bf, dec_bf = _reference_forward(x, params, jnp.bfloat16)
    assert jnp.allclose(encoded, enc_bf, atol=2e-3, rtol=2e-3)
    assert jnp.allclose(decoded, dec_bf, atol=8e-3, rtol=8e-3)

    # Loose sanity check against the exact f32 (PyTorch-semantics) reference.
    enc_f32, dec_f32 = _reference_forward(x, params, jnp.float32)
    assert jnp.allclose(encoded, enc_f32, atol=1e-1, rtol=1e-1)
    assert jnp.allclose(decoded, dec_f32, atol=5e-2, rtol=5e-2)

    print("KERNEL_OK")
</pallas_src>

<mosaic_0001>
module attributes {stable_mosaic.version = 11 : i64} {
  func.func @_autoencoder_kernel(%arg0: i32, %arg1: memref<8x1024xbf16, #tpu.memory_space<vmem>>, %arg2: memref<1024x512xbf16, #tpu.memory_space<vmem>>, %arg3: memref<1x512xf32, #tpu.memory_space<vmem>>, %arg4: memref<512x256xbf16, #tpu.memory_space<vmem>>, %arg5: memref<1x256xf32, #tpu.memory_space<vmem>>, %arg6: memref<256x128xbf16, #tpu.memory_space<vmem>>, %arg7: memref<1x128xf32, #tpu.memory_space<vmem>>, %arg8: memref<128x128xbf16, #tpu.memory_space<vmem>>, %arg9: memref<1x128xf32, #tpu.memory_space<vmem>>, %arg10: memref<128x128xbf16, #tpu.memory_space<vmem>>, %arg11: memref<1x128xf32, #tpu.memory_space<vmem>>, %arg12: memref<128x256xbf16, #tpu.memory_space<vmem>>, %arg13: memref<1x256xf32, #tpu.memory_space<vmem>>, %arg14: memref<256x512xbf16, #tpu.memory_space<vmem>>, %arg15: memref<1x512xf32, #tpu.memory_space<vmem>>, %arg16: memref<512x1024xbf16, #tpu.memory_space<vmem>>, %arg17: memref<1x1024xf32, #tpu.memory_space<vmem>>, %arg18: memref<8x128xf32, #tpu.memory_space<vmem>>, %arg19: memref<8x1024xbf16, #tpu.memory_space<vmem>>) attributes {dimension_semantics = [#tpu.dimension_semantics<parallel>], iteration_bounds = array<i64: 1>, scalar_prefetch = 0 : i64, scratch_operands = 0 : i64, tpu.core_type = #tpu.core_type<tc>, window_params = [{transform_indices = @transform_0, window_bounds = array<i64: 8, 1024>}, {pipeline_mode = #tpu.pipeline_mode<synchronous>, transform_indices = @transform_1, window_bounds = array<i64: 1024, 512>}, {pipeline_mode = #tpu.pipeline_mode<synchronous>, transform_indices = @transform_2, window_bounds = array<i64: 1, 512>}, {pipeline_mode = #tpu.pipeline_mode<synchronous>, transform_indices = @transform_3, window_bounds = array<i64: 512, 256>}, {pipeline_mode = #tpu.pipeline_mode<synchronous>, transform_indices = @transform_4, window_bounds = array<i64: 1, 256>}, {pipeline_mode = #tpu.pipeline_mode<synchronous>, transform_indices = @transform_5, window_bounds = array<i64: 256, 128>}, {pipeline_mode = #tpu.pipeline_mode<synchronous>, transform_indices = @transform_6, window_bounds = array<i64: 1, 128>}, {pipeline_mode = #tpu.pipeline_mode<synchronous>, transform_indices = @transform_7, window_bounds = array<i64: 128, 128>}, {pipeline_mode = #tpu.pipeline_mode<synchronous>, transform_indices = @transform_8, window_bounds = array<i64: 1, 128>}, {pipeline_mode = #tpu.pipeline_mode<synchronous>, transform_indices = @transform_9, window_bounds = array<i64: 128, 128>}, {pipeline_mode = #tpu.pipeline_mode<synchronous>, transform_indices = @transform_10, window_bounds = array<i64: 1, 128>}, {pipeline_mode = #tpu.pipeline_mode<synchronous>, transform_indices = @transform_11, window_bounds = array<i64: 128, 256>}, {pipeline_mode = #tpu.pipeline_mode<synchronous>, transform_indices = @transform_12, window_bounds = array<i64: 1, 256>}, {pipeline_mode = #tpu.pipeline_mode<synchronous>, transform_indices = @transform_13, window_bounds = array<i64: 256, 512>}, {pipeline_mode = #tpu.pipeline_mode<synchronous>, transform_indices = @transform_14, window_bounds = array<i64: 1, 512>}, {pipeline_mode = #tpu.pipeline_mode<synchronous>, transform_indices = @transform_15, window_bounds = array<i64: 512, 1024>}, {pipeline_mode = #tpu.pipeline_mode<synchronous>, transform_indices = @transform_16, window_bounds = array<i64: 1, 1024>}, {transform_indices = @transform_17, window_bounds = array<i64: 8, 128>}, {transform_indices = @transform_18, window_bounds = array<i64: 8, 1024>}]} {
    %c0 = arith.constant 0 : index
    %c0_0 = arith.constant 0 : index
    %0 = vector.load %arg1[%c0, %c0_0] : memref<8x1024xbf16, #tpu.memory_space<vmem>>, vector<8x1024xbf16>
    %c0_1 = arith.constant 0 : index
    %c0_2 = arith.constant 0 : index
    %1 = vector.load %arg2[%c0_1, %c0_2] : memref<1024x512xbf16, #tpu.memory_space<vmem>>, vector<1024x512xbf16>
    %cst = arith.constant dense<0.000000e+00> : vector<8x512xf32>
    %2 = tpu.matmul %0, %1, %cst {dimension_numbers = #tpu.dot_dimension_numbers<[1], [0], [0], [1], [0, 0, 1, 1], [], []>} : vector<8x1024xbf16>, vector<1024x512xbf16>, vector<8x512xf32> -> vector<8x512xf32>
    %c0_3 = arith.constant 0 : index
    %c0_4 = arith.constant 0 : index
    %3 = vector.load %arg3[%c0_3, %c0_4] : memref<1x512xf32, #tpu.memory_space<vmem>>, vector<1x512xf32>
    %4 = vector.broadcast %3 : vector<1x512xf32> to vector<8x512xf32>
    %5 = arith.addf %2, %4 : vector<8x512xf32>
    %cst_5 = arith.constant 0.000000e+00 : f32
    %6 = vector.broadcast %cst_5 : f32 to vector<8x512xf32>
    %7 = arith.maximumf %5, %6 : vector<8x512xf32>
    %8 = arith.truncf %7 : vector<8x512xf32> to vector<8x512xbf16>
    %c0_6 = arith.constant 0 : index
    %c0_7 = arith.constant 0 : index
    %9 = vector.load %arg4[%c0_6, %c0_7] : memref<512x256xbf16, #tpu.memory_space<vmem>>, vector<512x256xbf16>
    %cst_8 = arith.constant dense<0.000000e+00> : vector<8x256xf32>
    %10 = tpu.matmul %8, %9, %cst_8 {dimension_numbers = #tpu.dot_dimension_numbers<[1], [0], [0], [1], [0, 0, 1, 1], [], []>} : vector<8x512xbf16>, vector<512x256xbf16>, vector<8x256xf32> -> vector<8x256xf32>
    %c0_9 = arith.constant 0 : index
    %c0_10 = arith.constant 0 : index
    %11 = vector.load %arg5[%c0_9, %c0_10] : memref<1x256xf32, #tpu.memory_space<vmem>>, vector<1x256xf32>
    %12 = vector.broadcast %11 : vector<1x256xf32> to vector<8x256xf32>
    %13 = arith.addf %10, %12 : vector<8x256xf32>
    %cst_11 = arith.constant 0.000000e+00 : f32
    %14 = vector.broadcast %cst_11 : f32 to vector<8x256xf32>
    %15 = arith.maximumf %13, %14 : vector<8x256xf32>
    %16 = arith.truncf %15 : vector<8x256xf32> to vector<8x256xbf16>
    %c0_12 = arith.constant 0 : index
    %c0_13 = arith.constant 0 : index
    %17 = vector.load %arg6[%c0_12, %c0_13] : memref<256x128xbf16, #tpu.memory_space<vmem>>, vector<256x128xbf16>
    %cst_14 = arith.constant dense<0.000000e+00> : vector<8x128xf32>
    %18 = tpu.matmul %16, %17, %cst_14 {dimension_numbers = #tpu.dot_dimension_numbers<[1], [0], [0], [1], [0, 0, 1, 1], [], []>} : vector<8x256xbf16>, vector<256x128xbf16>, vector<8x128xf32> -> vector<8x128xf32>
    %c0_15 = arith.constant 0 : index
    %c0_16 = arith.constant 0 : index
    %19 = vector.load %arg7[%c0_15, %c0_16] : memref<1x128xf32, #tpu.memory_space<vmem>>, vector<1x128xf32>
    %20 = vector.broadcast %19 : vector<1x128xf32> to vector<8x128xf32>
    %21 = arith.addf %18, %20 : vector<8x128xf32>
    %cst_17 = arith.constant 0.000000e+00 : f32
    %22 = vector.broadcast %cst_17 : f32 to vector<8x128xf32>
    %23 = arith.maximumf %21, %22 : vector<8x128xf32>
    %24 = arith.truncf %23 : vector<8x128xf32> to vector<8x128xbf16>
    %c0_18 = arith.constant 0 : index
    %c0_19 = arith.constant 0 : index
    %25 = vector.load %arg8[%c0_18, %c0_19] : memref<128x128xbf16, #tpu.memory_space<vmem>>, vector<128x128xbf16>
    %cst_20 = arith.constant dense<0.000000e+00> : vector<8x128xf32>
    %26 = tpu.matmul %24, %25, %cst_20 {dimension_numbers = #tpu.dot_dimension_numbers<[1], [0], [0], [1], [0, 0, 1, 1], [], []>} : vector<8x128xbf16>, vector<128x128xbf16>, vector<8x128xf32> -> vector<8x128xf32>
    %c0_21 = arith.constant 0 : index
    %c0_22 = arith.constant 0 : index
    %27 = vector.load %arg9[%c0_21, %c0_22] : memref<1x128xf32, #tpu.memory_space<vmem>>, vector<1x128xf32>
    %28 = vector.broadcast %27 : vector<1x128xf32> to vector<8x128xf32>
    %29 = arith.addf %26, %28 : vector<8x128xf32>
    %c0_23 = arith.constant 0 : index
    %c0_24 = arith.constant 0 : index
    %30 = vector.load %arg18[%c0_23, %c0_24] : memref<8x128xf32, #tpu.memory_space<vmem>>, vector<8x128xf32>
    tpu.vector_store %arg18[%c0_23, %c0_24], %29 {strides = array<i32>} : memref<8x128xf32, #tpu.memory_space<vmem>>, vector<8x128xf32>,
    %31 = arith.truncf %29 : vector<8x128xf32> to vector<8x128xbf16>
    %c0_25 = arith.constant 0 : index
    %c0_26 = arith.constant 0 : index
    %32 = vector.load %arg10[%c0_25, %c0_26] : memref<128x128xbf16, #tpu.memory_space<vmem>>, vector<128x128xbf16>
    %cst_27 = arith.constant dense<0.000000e+00> : vector<8x128xf32>
    %33 = tpu.matmul %31, %32, %cst_27 {dimension_numbers = #tpu.dot_dimension_numbers<[1], [0], [0], [1], [0, 0, 1, 1], [], []>} : vector<8x128xbf16>, vector<128x128xbf16>, vector<8x128xf32> -> vector<8x128xf32>
    %c0_28 = arith.constant 0 : index
    %c0_29 = arith.constant 0 : index
    %34 = vector.load %arg11[%c0_28, %c0_29] : memref<1x128xf32, #tpu.memory_space<vmem>>, vector<1x128xf32>
    %35 = vector.broadcast %34 : vector<1x128xf32> to vector<8x128xf32>
    %36 = arith.addf %33, %35 : vector<8x128xf32>
    %cst_30 = arith.constant 0.000000e+00 : f32
    %37 = vector.broadcast %cst_30 : f32 to vector<8x128xf32>
    %38 = arith.maximumf %36, %37 : vector<8x128xf32>
    %39 = arith.truncf %38 : vector<8x128xf32> to vector<8x128xbf16>
    %c0_31 = arith.constant 0 : index
    %c0_32 = arith.constant 0 : index
    %40 = vector.load %arg12[%c0_31, %c0_32] : memref<128x256xbf16, #tpu.memory_space<vmem>>, vector<128x256xbf16>
    %cst_33 = arith.constant dense<0.000000e+00> : vector<8x256xf32>
    %41 = tpu.matmul %39, %40, %cst_33 {dimension_numbers = #tpu.dot_dimension_numbers<[1], [0], [0], [1], [0, 0, 1, 1], [], []>} : vector<8x128xbf16>, vector<128x256xbf16>, vector<8x256xf32> -> vector<8x256xf32>
    %c0_34 = arith.constant 0 : index
    %c0_35 = arith.constant 0 : index
    %42 = vector.load %arg13[%c0_34, %c0_35] : memref<1x256xf32, #tpu.memory_space<vmem>>, vector<1x256xf32>
    %43 = vector.broadcast %42 : vector<1x256xf32> to vector<8x256xf32>
    %44 = arith.addf %41, %43 : vector<8x256xf32>
    %cst_36 = arith.constant 0.000000e+00 : f32
    %45 = vector.broadcast %cst_36 : f32 to vector<8x256xf32>
    %46 = arith.maximumf %44, %45 : vector<8x256xf32>
    %47 = arith.truncf %46 : vector<8x256xf32> to vector<8x256xbf16>
    %c0_37 = arith.constant 0 : index
    %c0_38 = arith.constant 0 : index
    %48 = vector.load %arg14[%c0_37, %c0_38] : memref<256x512xbf16, #tpu.memory_space<vmem>>, vector<256x512xbf16>
    %cst_39 = arith.constant dense<0.000000e+00> : vector<8x512xf32>
    %49 = tpu.matmul %47, %48, %cst_39 {dimension_numbers = #tpu.dot_dimension_numbers<[1], [0], [0], [1], [0, 0, 1, 1], [], []>} : vector<8x256xbf16>, vector<256x512xbf16>, vector<8x512xf32> -> vector<8x512xf32>
    %c0_40 = arith.constant 0 : index
    %c0_41 = arith.constant 0 : index
    %50 = vector.load %arg15[%c0_40, %c0_41] : memref<1x512xf32, #tpu.memory_space<vmem>>, vector<1x512xf32>
    %51 = vector.broadcast %50 : vector<1x512xf32> to vector<8x512xf32>
    %52 = arith.addf %49, %51 : vector<8x512xf32>
    %cst_42 = arith.constant 0.000000e+00 : f32
    %53 = vector.broadcast %cst_42 : f32 to vector<8x512xf32>
    %54 = arith.maximumf %52, %53 : vector<8x512xf32>
    %55 = arith.truncf %54 : vector<8x512xf32> to vector<8x512xbf16>
    %c0_43 = arith.constant 0 : index
    %c0_44 = arith.constant 0 : index
    %56 = vector.load %arg16[%c0_43, %c0_44] : memref<512x1024xbf16, #tpu.memory_space<vmem>>, vector<512x1024xbf16>
    %cst_45 = arith.constant dense<0.000000e+00> : vector<8x1024xf32>
    %57 = tpu.matmul %55, %56, %cst_45 {dimension_numbers = #tpu.dot_dimension_numbers<[1], [0], [0], [1], [0, 0, 1, 1], [], []>} : vector<8x512xbf16>, vector<512x1024xbf16>, vector<8x1024xf32> -> vector<8x1024xf32>
    %c0_46 = arith.constant 0 : index
    %c0_47 = arith.constant 0 : index
    %58 = vector.load %arg17[%c0_46, %c0_47] : memref<1x1024xf32, #tpu.memory_space<vmem>>, vector<1x1024xf32>
    %59 = vector.broadcast %58 : vector<1x1024xf32> to vector<8x1024xf32>
    %60 = arith.addf %57, %59 : vector<8x1024xf32>
    %cst_48 = arith.constant 5.000000e-01 : f32
    %61 = vector.broadcast %cst_48 : f32 to vector<8x1024xf32>
    %62 = arith.mulf %61, %60 : vector<8x1024xf32>
    %63 = math.tanh %62 : vector<8x1024xf32>
    %cst_49 = arith.constant 5.000000e-01 : f32
    %64 = vector.broadcast %cst_49 : f32 to vector<8x1024xf32>
    %65 = arith.mulf %64, %63 : vector<8x1024xf32>
    %cst_50 = arith.constant 5.000000e-01 : f32
    %66 = vector.broadcast %cst_50 : f32 to vector<8x1024xf32>
    %67 = arith.addf %65, %66 : vector<8x1024xf32>
    %68 = arith.truncf %67 : vector<8x1024xf32> to vector<8x1024xbf16>
    %c0_51 = arith.constant 0 : index
    %c0_52 = arith.constant 0 : index
    %69 = vector.load %arg19[%c0_51, %c0_52] : memref<8x1024xbf16, #tpu.memory_space<vmem>>, vector<8x1024xbf16>
    tpu.vector_store %arg19[%c0_51, %c0_52], %68 {strides = array<i32>} : memref<8x1024xbf16, #tpu.memory_space<vmem>>, vector<8x1024xbf16>,
    return
  }
  func.func @transform_0(%arg0: i32) -> (i32, i32) {
    %c0_i32 = arith.constant 0 : i32
    %c0_i32_0 = arith.constant 0 : i32
    return %arg0, %c0_i32 : i32, i32
  }
  func.func @transform_1(%arg0: i32) -> (i32, i32) {
    %c0_i32 = arith.constant 0 : i32
    %c0_i32_0 = arith.constant 0 : i32
    %c0_i32_1 = arith.constant 0 : i32
    return %c0_i32, %c0_i32_0 : i32, i32
  }
  func.func @transform_2(%arg0: i32) -> (i32, i32) {
    %c0_i32 = arith.constant 0 : i32
    %c0_i32_0 = arith.constant 0 : i32
    %c0_i32_1 = arith.constant 0 : i32
    return %c0_i32, %c0_i32_0 : i32, i32
  }
  func.func @transform_3(%arg0: i32) -> (i32, i32) {
    %c0_i32 = arith.constant 0 : i32
    %c0_i32_0 = arith.constant 0 : i32
    %c0_i32_1 = arith.constant 0 : i32
    return %c0_i32, %c0_i32_0 : i32, i32
  }
  func.func @transform_4(%arg0: i32) -> (i32, i32) {
    %c0_i32 = arith.constant 0 : i32
    %c0_i32_0 = arith.constant 0 : i32
    %c0_i32_1 = arith.constant 0 : i32
    return %c0_i32, %c0_i32_0 : i32, i32
  }
  func.func @transform_5(%arg0: i32) -> (i32, i32) {
    %c0_i32 = arith.constant 0 : i32
    %c0_i32_0 = arith.constant 0 : i32
    %c0_i32_1 = arith.constant 0 : i32
    return %c0_i32, %c0_i32_0 : i32, i32
  }
  func.func @transform_6(%arg0: i32) -> (i32, i32) {
    %c0_i32 = arith.constant 0 : i32
    %c0_i32_0 = arith.constant 0 : i32
    %c0_i32_1 = arith.constant 0 : i32
    return %c0_i32, %c0_i32_0 : i32, i32
  }
  func.func @transform_7(%arg0: i32) -> (i32, i32) {
    %c0_i32 = arith.constant 0 : i32
    %c0_i32_0 = arith.constant 0 : i32
    %c0_i32_1 = arith.constant 0 : i32
    return %c0_i32, %c0_i32_0 : i32, i32
  }
  func.func @transform_8(%arg0: i32) -> (i32, i32) {
    %c0_i32 = arith.constant 0 : i32
    %c0_i32_0 = arith.constant 0 : i32
    %c0_i32_1 = arith.constant 0 : i32
    return %c0_i32, %c0_i32_0 : i32, i32
  }
  func.func @transform_9(%arg0: i32) -> (i32, i32) {
    %c0_i32 = arith.constant 0 : i32
    %c0_i32_0 = arith.constant 0 : i32
    %c0_i32_1 = arith.constant 0 : i32
    return %c0_i32, %c0_i32_0 : i32, i32
  }
  func.func @transform_10(%arg0: i32) -> (i32, i32) {
    %c0_i32 = arith.constant 0 : i32
    %c0_i32_0 = arith.constant 0 : i32
    %c0_i32_1 = arith.constant 0 : i32
    return %c0_i32, %c0_i32_0 : i32, i32
  }
  func.func @transform_11(%arg0: i32) -> (i32, i32) {
    %c0_i32 = arith.constant 0 : i32
    %c0_i32_0 = arith.constant 0 : i32
    %c0_i32_1 = arith.constant 0 : i32
    return %c0_i32, %c0_i32_0 : i32, i32
  }
  func.func @transform_12(%arg0: i32) -> (i32, i32) {
    %c0_i32 = arith.constant 0 : i32
    %c0_i32_0 = arith.constant 0 : i32
    %c0_i32_1 = arith.constant 0 : i32
    return %c0_i32, %c0_i32_0 : i32, i32
  }
  func.func @transform_13(%arg0: i32) -> (i32, i32) {
    %c0_i32 = arith.constant 0 : i32
    %c0_i32_0 = arith.constant 0 : i32
    %c0_i32_1 = arith.constant 0 : i32
    return %c0_i32, %c0_i32_0 : i32, i32
  }
  func.func @transform_14(%arg0: i32) -> (i32, i32) {
    %c0_i32 = arith.constant 0 : i32
    %c0_i32_0 = arith.constant 0 : i32
    %c0_i32_1 = arith.constant 0 : i32
    return %c0_i32, %c0_i32_0 : i32, i32
  }
  func.func @transform_15(%arg0: i32) -> (i32, i32) {
    %c0_i32 = arith.constant 0 : i32
    %c0_i32_0 = arith.constant 0 : i32
    %c0_i32_1 = arith.constant 0 : i32
    return %c0_i32, %c0_i32_0 : i32, i32
  }
  func.func @transform_16(%arg0: i32) -> (i32, i32) {
    %c0_i32 = arith.constant 0 : i32
    %c0_i32_0 = arith.constant 0 : i32
    %c0_i32_1 = arith.constant 0 : i32
    return %c0_i32, %c0_i32_0 : i32, i32
  }
  func.func @transform_17(%arg0: i32) -> (i32, i32) {
    %c0_i32 = arith.constant 0 : i32
    %c0_i32_0 = arith.constant 0 : i32
    return %arg0, %c0_i32 : i32, i32
  }
  func.func @transform_18(%arg0: i32) -> (i32, i32) {
    %c0_i32 = arith.constant 0 : i32
    %c0_i32_0 = arith.constant 0 : i32
    return %arg0, %c0_i32 : i32, i32
  }
}

</mosaic_0001>

<bundles_post_ra>
// kernel: _forward_padded.1
= control target key start
LH: loop header
LB: loop body
LE: loop exit
PB: predicated region body
PF: predicated region fallthrough
CT: control target
= control target key end

     0   :  { %s7916_s0 = inlined_call_operand.vmem [shape: bf16[8,1024], index: 0, kind: input, shape index: {}]   ;;  %s7917_s1 = inlined_call_operand.hbm [shape: bf16[1024,512], index: 1, kind: input, shape index: {}]   ;;  %s7918_s2 = inlined_call_operand.hbm [shape: f32[1,512], index: 2, kind: input, shape index: {}]   ;;  %s7919_s3 = inlined_call_operand.hbm [shape: bf16[512,256], index: 3, kind: input, shape index: {}]   ;;  %s7920_s4 = inlined_call_operand.hbm [shape: f32[1,256], index: 4, kind: input, shape index: {}]   ;;  %s7921_s5 = inlined_call_operand.vmem [shape: bf16[256,128], index: 5, kind: input, shape index: {}]   ;;  %s7922_s6 = inlined_call_operand.hbm [shape: f32[1,128], index: 6, kind: input, shape index: {}]   ;;  %s7923_s7 = inlined_call_operand.vmem [shape: bf16[128,128], index: 7, kind: input, shape index: {}]   ;;  %s7924_s8 = inlined_call_operand.vmem [shape: f32[1,128], index: 8, kind: input, shape index: {}]   ;;  %s7925_s9 = inlined_call_operand.hbm [shape: bf16[128,128], index: 9, kind: input, shape index: {}]   ;;  %s7926_s10 = inlined_call_operand.hbm [shape: f32[1,128], index: 10, kind: input, shape index: {}]   ;;  %s7927_s11 = inlined_call_operand.hbm [shape: bf16[128,256], index: 11, kind: input, shape index: {}]   ;;  %s7928_s12 = inlined_call_operand.vmem [shape: f32[1,256], index: 12, kind: input, shape index: {}]   ;;  %s7929_s13 = inlined_call_operand.hbm [shape: bf16[256,512], index: 13, kind: input, shape index: {}]   ;;  %s7930_s14 = inlined_call_operand.vmem [shape: f32[1,512], index: 14, kind: input, shape index: {}]   ;;  %s7931_s15 = inlined_call_operand.hbm [shape: bf16[512,1024], index: 15, kind: input, shape index: {}]   ;;  %s7932_s16 = inlined_call_operand.vmem [shape: f32[1,1024], index: 16, kind: input, shape index: {}]   ;;  %s7933_s17 = inlined_call_operand.hbm [shape: f32[8,128], index: 17, kind: output, shape index: {0}]   ;;  %s7934_s18 = inlined_call_operand.vmem [shape: bf16[8,1024], index: 18, kind: output, shape index: {1}]  }
   0x1   :  { %7939 = sst [smem:[#allocation27_spill]] %s7916_s0 }
   0x2   :  { %7940 = sst [smem:[#allocation28_spill]] %s7917_s1 }
   0x3   :  { %7941 = sst [smem:[#allocation29_spill]] %s7918_s2 }
   0x4   :  { %24 = vsyncpa [#allocation3], 0 }
   0x5   :  { %25 = vsyncpa [#allocation6], 0 }
   0x6   :  { %26 = vsyncpa [#allocation9], 0 }
   0x7   :  { %27 = vsyncpa [#allocation12], 0 }
   0x8   :  { %28 = vsyncpa [#allocation15], 0 }
   0x9   :  { %29 = vsyncpa [#allocation18], 0 }
   0xa   :  { %30 = vsyncpa [#allocation4], 0  ;;  %s7425_s27 = smov [#allocation5]   ;;  %s7426_s29 = smov [#allocation8]  }
   0xb   :  { %s51_s28 = sshll.u32 %s7425_s27, 4  ;;  %s73_s30 = sshll.u32 %s7426_s29, 4  ;;  %s52_s28 = int_to_ptr.vmem [resolvable:$true] %s51_s28  ;;  %s74_s30 = int_to_ptr.vmem [resolvable:$true] %s73_s30 }
   0xc   :  { %s7942_s1 = sld [smem:[#allocation29_spill]] }
  0x12   :  { %s7169_s20 = scalar_lea.hbm %s7942_s1, 64 }
  0x13   :  { %p7170_p0 = scmp.ne.s32.totalorder %s7942_s1, %s7169_s20  ;;  %p7173_p1 = scmp.lt.u32.totalorder %s7169_s20, %s7942_s1 }
  0x15   :  { %p7175_p2 = pnand %p7173_p1, %p7170_p0 }
  0x17   :  { %7178 = shalt.err (!%p7175_p2)
}
  0x18   :  { %s7179_s24 = scalar_lea.vmem %s52_s28, 64  ;;  %p7184_p4 = scmp.lt.s32.totalorder %s52_s28, %s52_s28 }
  0x19   :  { %p7180_p3 = scmp.ne.s32.totalorder %s52_s28, %s7179_s24  ;;  %p7185_p5 = scmp.lt.s32.totalorder %s7179_s24, %s7179_s24 }
  0x1b   :  { %p7186_p6 = por %p7185_p5, %p7184_p4 }
  0x1d   :  { %p7187_p7 = pnand %p7186_p6, %p7180_p3 }
  0x1f   :  { %7190 = shalt.err (!%p7187_p7)
}
  0x20   :  { %54 = dma.hbm_to_vmem [thread:$0]  %s7942_s1, 64, %s52_s28, [#allocation6]  }
  0x21   :  { %s7191_s0 = scalar_lea.hbm %s7920_s4, 32 }
  0x22   :  { %p7192_p8 = scmp.ne.s32.totalorder %s7920_s4, %s7191_s0  ;;  %p7195_p9 = scmp.lt.u32.totalorder %s7191_s0, %s7920_s4 }
  0x24   :  { %p7197_p10 = pnand %p7195_p9, %p7192_p8 }
  0x26   :  { %7200 = shalt.err (!%p7197_p10)
}
  0x27   :  { %s7201_s2 = scalar_lea.vmem %s74_s30, 32  ;;  %p7206_p12 = scmp.lt.s32.totalorder %s74_s30, %s74_s30 }
  0x28   :  { %p7202_p11 = scmp.ne.s32.totalorder %s74_s30, %s7201_s2  ;;  %p7207_p13 = scmp.lt.s32.totalorder %s7201_s2, %s7201_s2 }
  0x2a   :  { %p7208_p0 = por %p7207_p13, %p7206_p12 }
  0x2c   :  { %p7209_p1 = pnand %p7208_p0, %p7202_p11 }
  0x2e   :  { %7212 = shalt.err (!%p7209_p1)
}
  0x2f   :  { %76 = dma.hbm_to_vmem [thread:$0]  %s7920_s4, 32, %s74_s30, [#allocation9]  }
  0x30   :  { %s7427_s23 = smov [#allocation11]   ;;  %s7213_s27 = scalar_lea.hbm %s7925_s9, 1024 }
  0x31   :  { %s98_s24 = sshll.u32 %s7427_s23, 4  ;;  %p7214_p2 = scmp.ne.s32.totalorder %s7925_s9, %s7213_s27  ;;  %s99_s24 = int_to_ptr.vmem [resolvable:$true] %s98_s24 }
  0x32   :  { %p7217_p3 = scmp.lt.u32.totalorder %s7213_s27, %s7925_s9 }
  0x34   :  { %p7219_p4 = pnand %p7217_p3, %p7214_p2 }
  0x36   :  { %7222 = shalt.err (!%p7219_p4)
}
  0x37   :  { %s7223_s20 = scalar_lea.vmem %s99_s24, 1024  ;;  %p7228_p6 = scmp.lt.s32.totalorder %s99_s24, %s99_s24 }
  0x38   :  { %p7224_p5 = scmp.ne.s32.totalorder %s99_s24, %s7223_s20  ;;  %p7229_p7 = scmp.lt.s32.totalorder %s7223_s20, %s7223_s20 }
  0x3a   :  { %p7230_p8 = por %p7229_p7, %p7228_p6 }
  0x3c   :  { %p7231_p9 = pnand %p7230_p8, %p7224_p5 }
  0x3e   :  { %7234 = shalt.err (!%p7231_p9)
}
  0x3f   :  { %s7428_s4 = smov 64   ;;  %s7429_s30 = smov 4  }
  0x40   :  { %104 = dma.hbm_to_vmem [thread:$0]  %s7925_s9, 1024, %s99_s24, [#allocation12], %s7428_s4, %s7428_s4, %s7429_s30  }
  0x41   :  { %s7430_s28 = smov [#allocation14]   ;;  %s7431_s23 = smov [#allocation2]  }
  0x42   :  { %s120_s1 = sshll.u32 %s7430_s28, 4  ;;  %s38_s25 = sshll.u32 %s7431_s23, 4  ;;  %s121_s1 = int_to_ptr.vmem [resolvable:$true] %s120_s1  ;;  %s39_s25 = int_to_ptr.vmem [resolvable:$true] %s38_s25 }
  0x43   :  { %s7235_s29 = scalar_lea.hbm %s7927_s11, 2048 }
  0x44   :  { %p7236_p10 = scmp.ne.s32.totalorder %s7927_s11, %s7235_s29  ;;  %p7239_p11 = scmp.lt.u32.totalorder %s7235_s29, %s7927_s11 }
  0x46   :  { %p7241_p12 = pnand %p7239_p11, %p7236_p10 }
  0x48   :  { %7244 = shalt.err (!%p7241_p12)
}
  0x49   :  { %s7245_s9 = scalar_lea.vmem %s121_s1, 2048  ;;  %p7250_p0 = scmp.lt.s32.totalorder %s121_s1, %s121_s1 }
  0x4a   :  { %p7246_p13 = scmp.ne.s32.totalorder %s121_s1, %s7245_s9  ;;  %p7251_p1 = scmp.lt.s32.totalorder %s7245_s9, %s7245_s9 }
  0x4c   :  { %p7252_p2 = por %p7251_p1, %p7250_p0 }
  0x4e   :  { %p7253_p3 = pnand %p7252_p2, %p7246_p13 }
  0x50   :  { %7256 = shalt.err (!%p7253_p3)
}
  0x51   :  { %s7938_s24 = smov 128   ;;  %s7433_s4 = smov 8  }
  0x52   :  { %126 = dma.hbm_to_vmem [thread:$0]  %s7927_s11, 2048, %s121_s1, [#allocation15], %s7938_s24, %s7938_s24, %s7433_s4  }
  0x53   :  { %s7943_s23 = sld [smem:[#allocation28_spill]] }
  0x59   :  { %s7257_s26 = scalar_lea.hbm %s7943_s23, 32768 }
  0x5a   :  { %p7258_p4 = scmp.ne.s32.totalorder %s7943_s23, %s7257_s26  ;;  %p7261_p5 = scmp.lt.u32.totalorder %s7257_s26, %s7943_s23 }
  0x5c   :  { %p7263_p6 = pnand %p7261_p5, %p7258_p4 }
  0x5e   :  { %7266 = shalt.err (!%p7263_p6)
}
  0x5f   :  { %s7267_s21 = scalar_lea.vmem %s39_s25, 32768  ;;  %p7272_p8 = scmp.lt.s32.totalorder %s39_s25, %s39_s25 }
  0x60   :  { %p7268_p7 = scmp.ne.s32.totalorder %s39_s25, %s7267_s21  ;;  %p7273_p9 = scmp.lt.s32.totalorder %s7267_s21, %s7267_s21 }
  0x62   :  { %p7274_p10 = por %p7273_p9, %p7272_p8 }
  0x64   :  { %p7275_p11 = pnand %p7274_p10, %p7268_p7 }
  0x66   :  { %7278 = shalt.err (!%p7275_p11)
}
  0x67   :  { %s7434_s11 = smov 256   ;;  %s7435_s1 = smov 16  }
  0x68   :  { %44 = dma.hbm_to_vmem [thread:$0]  %s7943_s23, 32768, %s39_s25, [#allocation3], %s7434_s11, %s7434_s11, %s7435_s1  }
  0x69   :  { %s7436_s30 = smov [#allocation7]   ;;  %s7437_s2 = smov [#allocation10]  }
  0x6a   :  { %s60_s22 = sshll.u32 %s7436_s30, 4  ;;  %s85_s28 = sshll.u32 %s7437_s2, 4  ;;  %s61_s22 = int_to_ptr.vmem [resolvable:$true] %s60_s22  ;;  %s86_s28 = int_to_ptr.vmem [resolvable:$true] %s85_s28 }
  0x6b   :  { %s7279_s29 = scalar_lea.hbm %s7919_s3, 8192 }
  0x6c   :  { %p7280_p12 = scmp.ne.s32.totalorder %s7919_s3, %s7279_s29  ;;  %p7283_p13 = scmp.lt.u32.totalorder %s7279_s29, %s7919_s3 }
  0x6e   :  { %p7285_p0 = pnand %p7283_p13, %p7280_p12 }
  0x70   :  { %7288 = shalt.err (!%p7285_p0)
}
  0x71   :  { %s7289_s25 = scalar_lea.vmem %s61_s22, 8192  ;;  %p7294_p2 = scmp.lt.s32.totalorder %s61_s22, %s61_s22 }
  0x72   :  { %p7290_p1 = scmp.ne.s32.totalorder %s61_s22, %s7289_s25  ;;  %p7295_p3 = scmp.lt.s32.totalorder %s7289_s25, %s7289_s25 }
  0x74   :  { %p7296_p4 = por %p7295_p3, %p7294_p2 }
  0x76   :  { %p7297_p5 = pnand %p7296_p4, %p7290_p1 }
  0x78   :  { %7300 = shalt.err (!%p7297_p5)
}
  0x79   :  { %s7944_s23 = smov 128   ;;  %s7301_s2 = scalar_lea.hbm %s7922_s6, 16 }
  0x7a   :  { %66 = dma.hbm_to_vmem [thread:$0]  %s7919_s3, 8192, %s61_s22, [#allocation6], %s7944_s23, %s7944_s23, %s7433_s4  }
  0x7b   :  { %p7302_p6 = scmp.ne.s32.totalorder %s7922_s6, %s7301_s2  ;;  %p7305_p7 = scmp.lt.u32.totalorder %s7301_s2, %s7922_s6 }
  0x7d   :  { %p7307_p8 = pnand %p7305_p7, %p7302_p6 }
  0x7f   :  { %7310 = shalt.err (!%p7307_p8)
}
  0x80   :  { %s7311_s19 = scalar_lea.vmem %s86_s28, 16  ;;  %s7315_s21 = scalar_lea.vmem %s86_s28, 32 }
  0x81   :  { %p7312_p9 = scmp.ne.s32.totalorder %s86_s28, %s7311_s19  ;;  %p7316_p10 = scmp.lt.s32.totalorder %s86_s28, %s86_s28 }
  0x82   :  { %p7317_p11 = scmp.lt.s32.totalorder %s7315_s21, %s7311_s19 }
  0x84   :  { %p7318_p12 = por %p7317_p11, %p7316_p10 }
  0x86   :  { %p7319_p13 = pnand %p7318_p12, %p7312_p9 }
  0x88   :  { %7322 = shalt.err (!%p7319_p13)
}
  0x89   :  { %88 = dma.hbm_to_vmem [thread:$0]  %s7922_s6, 16, %s86_s28, [#allocation9]  }
  0x8a   :  { %s7438_s22 = smov [#allocation13]   ;;  %s7439_s23 = smov [#allocation16]  }
  0x8b   :  { %s111_s25 = sshll.u32 %s7438_s22, 4  ;;  %s134_s20 = sshll.u32 %s7439_s23, 4  ;;  %s112_s25 = int_to_ptr.vmem [resolvable:$true] %s111_s25  ;;  %s135_s20 = int_to_ptr.vmem [resolvable:$true] %s134_s20 }
  0x8c   :  { %s7323_s24 = scalar_lea.hbm %s7926_s10, 16 }
  0x8d   :  { %p7324_p0 = scmp.ne.s32.totalorder %s7926_s10, %s7323_s24  ;;  %p7327_p1 = scmp.lt.u32.totalorder %s7323_s24, %s7926_s10 }
  0x8f   :  { %p7329_p2 = pnand %p7327_p1, %p7324_p0 }
  0x91   :  { %7332 = shalt.err (!%p7329_p2)
}
  0x92   :  { %s7333_s6 = scalar_lea.vmem %s112_s25, 16  ;;  %s7337_s28 = scalar_lea.vmem %s112_s25, 32 }
  0x93   :  { %p7334_p3 = scmp.ne.s32.totalorder %s112_s25, %s7333_s6  ;;  %p7338_p4 = scmp.lt.s32.totalorder %s112_s25, %s112_s25 }
  0x94   :  { %p7339_p5 = scmp.lt.s32.totalorder %s7337_s28, %s7333_s6 }
  0x96   :  { %p7340_p6 = por %p7339_p5, %p7338_p4 }
  0x98   :  { %p7341_p7 = pnand %p7340_p6, %p7334_p3 }
  0x9a   :  { %7344 = shalt.err (!%p7341_p7)
}
  0x9b   :  { %114 = dma.hbm_to_vmem [thread:$0]  %s7926_s10, 16, %s112_s25, [#allocation12]  }
  0x9c   :  { %s7345_s4 = scalar_lea.hbm %s7929_s13, 8192 }
  0x9d   :  { %p7346_p8 = scmp.ne.s32.totalorder %s7929_s13, %s7345_s4  ;;  %p7349_p9 = scmp.lt.u32.totalorder %s7345_s4, %s7929_s13 }
  0x9f   :  { %p7351_p10 = pnand %p7349_p9, %p7346_p8 }
  0xa1   :  { %7354 = shalt.err (!%p7351_p10)
}
  0xa2   :  { %s7355_s24 = scalar_lea.vmem %s135_s20, 8192  ;;  %p7360_p12 = scmp.lt.s32.totalorder %s135_s20, %s135_s20 }
  0xa3   :  { %p7356_p11 = scmp.ne.s32.totalorder %s135_s20, %s7355_s24  ;;  %p7361_p13 = scmp.lt.s32.totalorder %s7355_s24, %s7355_s24 }
  0xa5   :  { %p7362_p0 = por %p7361_p13, %p7360_p12 }
  0xa7   :  { %p7363_p1 = pnand %p7362_p0, %p7356_p11 }
  0xa9   :  { %7366 = shalt.err (!%p7363_p1)
}
  0xaa   :  { %140 = dma.hbm_to_vmem [thread:$0]  %s7929_s13, 8192, %s135_s20, [#allocation15], %s7434_s11, %s7434_s11, %s7435_s1  }
  0xab   :  { %s7440_s2 = smov [#allocation17]   ;;  %s7367_s6 = scalar_lea.hbm %s7931_s15, 32768 }
  0xac   :  { %s148_s26 = sshll.u32 %s7440_s2, 4  ;;  %p7368_p2 = scmp.ne.s32.totalorder %s7931_s15, %s7367_s6  ;;  %s149_s26 = int_to_ptr.vmem [resolvable:$true] %s148_s26 }
  0xad   :  { %p7371_p3 = scmp.lt.u32.totalorder %s7367_s6, %s7931_s15 }
  0xaf   :  { %p7373_p4 = pnand %p7371_p3, %p7368_p2 }
  0xb1   :  { %7376 = shalt.err (!%p7373_p4)
}
  0xb2   :  { %s7377_s3 = scalar_lea.vmem %s149_s26, 32768  ;;  %p7382_p6 = scmp.lt.s32.totalorder %s149_s26, %s149_s26 }
  0xb3   :  { %p7378_p5 = scmp.ne.s32.totalorder %s149_s26, %s7377_s3  ;;  %p7383_p7 = scmp.lt.s32.totalorder %s7377_s3, %s7377_s3 }
  0xb5   :  { %p7384_p8 = por %p7383_p7, %p7382_p6 }
  0xb7   :  { %p7385_p9 = pnand %p7384_p8, %p7378_p5 }
  0xb9   :  { %7388 = shalt.err (!%p7385_p9)
}
  0xba   :  { %s7441_s13 = smov 512   ;;  %s7442_s11 = smov 32  }
  0xbb   :  { %154 = dma.hbm_to_vmem [thread:$0]  %s7931_s15, 32768, %s149_s26, [#allocation18], %s7441_s13, %s7441_s13, %s7442_s11  }
  0xbc   :  { %7411 = dma.done.wait [#allocation3], 32768  }
  0xbd   :  { %7412 = vsyncadd [#allocation3], 4294934528 }
  0xbe   :  { %7413 = dma.done.wait [#allocation6], 8256  }
  0xbf   :  { %7414 = vsyncadd [#allocation6], 4294959040 }
  0xc0   :  { %7415 = dma.done.wait [#allocation9], 48  }
  0xc1   :  { %7416 = vsyncadd [#allocation9], 4294967248 }
  0xc2   :  { %7417 = dma.done.wait [#allocation12], 1040  }
  0xc3   :  { %7418 = vsyncadd [#allocation12], 4294966256 }
  0xc4   :  { %7419 = dma.done.wait [#allocation15], 10240  }
  0xc5   :  { %7420 = vsyncadd [#allocation15], 4294957056 }
  0xc6   :  { %7421 = dma.done.wait [#allocation18], 32768  }
  0xc7   :  { %7422 = vsyncadd [#allocation18], 4294934528  ;;  %v6513_v0 = vld [vmem:[#allocation2 + $0x4] ss:$16 sps:$4 sm:$0xff]   ;;  %v6515_v1 = vld [vmem:[#allocation2 + $0xc] ss:$16 sps:$4 sm:$0xff]  }
  0xc8   :  { %1778 = vmatprep.subr.bf16.mxu0 %v6513_v0  ;;  %v6517_v2 = vld [vmem:[#allocation2] ss:$16 sps:$4 sm:$0xff]   ;;  %v6518_v3 = vld [vmem:[#allocation2 + $0x8] ss:$16 sps:$4 sm:$0xff]   ;;  %1942 = vmatprep.subr.bf16.mxu1 %v6515_v1  ;;  %v6519_v4 = vld [vmem:[#allocation2 + $0x24] ss:$16 sps:$4 sm:$0xff]  }
  0xc9   :  { %1779 = vmatpush1.bf16.msra.mxu0 %v6517_v2  ;;  %1943 = vmatpush1.bf16.msra.mxu1 %v6518_v3  ;;  %v6521_v5 = vld [vmem:[#allocation2 + $0x2c] ss:$16 sps:$4 sm:$0xff]   ;;  %v6523_v6 = vld [vmem:[#allocation2 + $0x20] ss:$16 sps:$4 sm:$0xff]   ;;  %v6524_v7 = vld [vmem:[#allocation2 + $0x28] ss:$16 sps:$4 sm:$0xff]  }
  0xca   :  { %1780 = vmatprep.subr.bf16.mxu0 %v6519_v4  ;;  %1944 = vmatprep.subr.bf16.mxu1 %v6521_v5  ;;  %v6525_v8 = vld [vmem:[#allocation2 + $0x44] ss:$16 sps:$4 sm:$0xff]   ;;  %v6527_v9 = vld [vmem:[#allocation2 + $0x4c] ss:$16 sps:$4 sm:$0xff]   ;;  %v6529_v10 = vld [vmem:[#allocation2 + $0x40] ss:$16 sps:$4 sm:$0xff]  }
  0xcb   :  { %v6530_v11 = vld [vmem:[#allocation2 + $0x48] ss:$16 sps:$4 sm:$0xff]   ;;  %v6531_v12 = vld [vmem:[#allocation2 + $0x64] ss:$16 sps:$4 sm:$0xff]   ;;  %v6533_v13 = vld [vmem:[#allocation2 + $0x6c] ss:$16 sps:$4 sm:$0xff]  }
  0xcc   :  { %v6535_v14 = vld [vmem:[#allocation2 + $0x60] ss:$16 sps:$4 sm:$0xff]   ;;  %v6536_v15 = vld [vmem:[#allocation2 + $0x68] ss:$16 sps:$4 sm:$0xff]   ;;  %v6537_v16 = vld [vmem:[#allocation2 + $0x84] ss:$16 sps:$4 sm:$0xff]  }
  0xcd   :  { %1781 = vmatpush1.bf16.msra.mxu0 %v6523_v6  ;;  %1945 = vmatpush1.bf16.msra.mxu1 %v6524_v7  ;;  %v6539_v17 = vld [vmem:[#allocation2 + $0x8c] ss:$16 sps:$4 sm:$0xff]   ;;  %v6541_v18 = vld [vmem:[#allocation2 + $0x80] ss:$16 sps:$4 sm:$0xff]   ;;  %v6542_v19 = vld [vmem:[#allocation2 + $0x88] ss:$16 sps:$4 sm:$0xff]  }
  0xce   :  { %1782 = vmatprep.subr.bf16.mxu0 %v6525_v8  ;;  %1946 = vmatprep.subr.bf16.mxu1 %v6527_v9  ;;  %v6543_v20 = vld [vmem:[#allocation2 + $0xa4] ss:$16 sps:$4 sm:$0xff]   ;;  %v6545_v21 = vld [vmem:[#allocation2 + $0xac] ss:$16 sps:$4 sm:$0xff]   ;;  %v6547_v22 = vld [vmem:[#allocation2 + $0xa0] ss:$16 sps:$4 sm:$0xff]  }
  0xcf   :  { %v6548_v23 = vld [vmem:[#allocation2 + $0xa8] ss:$16 sps:$4 sm:$0xff]   ;;  %v6549_v24 = vld [vmem:[#allocation2 + $0xc4] ss:$16 sps:$4 sm:$0xff]   ;;  %v6551_v25 = vld [vmem:[#allocation2 + $0xcc] ss:$16 sps:$4 sm:$0xff]  }
  0xd0   :  { %v6553_v26 = vld [vmem:[#allocation2 + $0xc0] ss:$16 sps:$4 sm:$0xff]   ;;  %v6554_v27 = vld [vmem:[#allocation2 + $0xc8] ss:$16 sps:$4 sm:$0xff]   ;;  %v6555_v28 = vld [vmem:[#allocation2 + $0xe4] ss:$16 sps:$4 sm:$0xff]  }
  0xd1   :  { %1783 = vmatpush1.bf16.msra.mxu0 %v6529_v10  ;;  %1947 = vmatpush1.bf16.msra.mxu1 %v6530_v11  ;;  %v6557_v29 = vld [vmem:[#allocation2 + $0xec] ss:$16 sps:$4 sm:$0xff]   ;;  %v6559_v30 = vld [vmem:[#allocation2 + $0xe0] ss:$16 sps:$4 sm:$0xff]   ;;  %v6560_v31 = vld [vmem:[#allocation2 + $0xe8] ss:$16 sps:$4 sm:$0xff]  }
  0xd2   :  { %1784 = vmatprep.subr.bf16.mxu0 %v6531_v12  ;;  %1948 = vmatprep.subr.bf16.mxu1 %v6533_v13  ;;  %v6561_v32 = vld [vmem:[#allocation2 + $0x104] ss:$16 sps:$4 sm:$0xff]   ;;  %v6563_v33 = vld [vmem:[#allocation2 + $0x10c] ss:$16 sps:$4 sm:$0xff]   ;;  %v6565_v34 = vld [vmem:[#allocation2 + $0x100] ss:$16 sps:$4 sm:$0xff]  }
  0xd3   :  { %v6566_v35 = vld [vmem:[#allocation2 + $0x108] ss:$16 sps:$4 sm:$0xff]   ;;  %v6567_v36 = vld [vmem:[#allocation2 + $0x124] ss:$16 sps:$4 sm:$0xff]   ;;  %v6569_v37 = vld [vmem:[#allocation2 + $0x12c] ss:$16 sps:$4 sm:$0xff]  }
  0xd4   :  { %v6571_v38 = vld [vmem:[#allocation2 + $0x120] ss:$16 sps:$4 sm:$0xff]   ;;  %v6572_v39 = vld [vmem:[#allocation2 + $0x128] ss:$16 sps:$4 sm:$0xff]   ;;  %v6573_v40 = vld [vmem:[#allocation2 + $0x144] ss:$16 sps:$4 sm:$0xff]  }
  0xd5   :  { %1785 = vmatpush1.bf16.msra.mxu0 %v6535_v14  ;;  %1949 = vmatpush1.bf16.msra.mxu1 %v6536_v15  ;;  %v6575_v41 = vld [vmem:[#allocation2 + $0x14c] ss:$16 sps:$4 sm:$0xff]   ;;  %v6577_v42 = vld [vmem:[#allocation2 + $0x140] ss:$16 sps:$4 sm:$0xff]   ;;  %v6578_v43 = vld [vmem:[#allocation2 + $0x148] ss:$16 sps:$4 sm:$0xff]  }
  0xd6   :  { %1786 = vmatprep.subr.bf16.mxu0 %v6537_v16  ;;  %1950 = vmatprep.subr.bf16.mxu1 %v6539_v17  ;;  %v6579_v44 = vld [vmem:[#allocation2 + $0x164] ss:$16 sps:$4 sm:$0xff]   ;;  %v6581_v45 = vld [vmem:[#allocation2 + $0x16c] ss:$16 sps:$4 sm:$0xff]   ;;  %s7945_s22 = sld [smem:[#allocation27_spill]]  ;;  %vm7444_vm0 = vmmov 0  }
  0xd7   :  { %v6583_v47 = vld [vmem:[#allocation2 + $0x160] ss:$16 sps:$4 sm:$0xff]   ;;  %v6584_v49 = vld [vmem:[#allocation2 + $0x168] ss:$16 sps:$4 sm:$0xff]   ;;  %v6585_v50 = vld [vmem:[#allocation2 + $0x184] ss:$16 sps:$4 sm:$0xff]  }
  0xd8   :  { %v6587_v51 = vld [vmem:[#allocation2 + $0x18c] ss:$16 sps:$4 sm:$0xff]   ;;  %v6589_v52 = vld [vmem:[#allocation2 + $0x180] ss:$16 sps:$4 sm:$0xff]   ;;  %v6590_v53 = vld [vmem:[#allocation2 + $0x188] ss:$16 sps:$4 sm:$0xff]  }
  0xd9   :  { %1787 = vmatpush1.bf16.msra.mxu0 %v6541_v18  ;;  %1951 = vmatpush1.bf16.msra.mxu1 %v6542_v19  ;;  %v6591_v54 = vld [vmem:[#allocation2 + $0x1a4] ss:$16 sps:$4 sm:$0xff]   ;;  %v6593_v55 = vld [vmem:[#allocation2 + $0x1ac] ss:$16 sps:$4 sm:$0xff]   ;;  %v6595_v56 = vld [vmem:[#allocation2 + $0x1a0] ss:$16 sps:$4 sm:$0xff]  }
  0xda   :  { %1788 = vmatprep.subr.bf16.mxu0 %v6543_v20  ;;  %1952 = vmatprep.subr.bf16.mxu1 %v6545_v21  ;;  %v6596_v57 = vld [vmem:[#allocation2 + $0x1a8] ss:$16 sps:$4 sm:$0xff]   ;;  %v6597_v58 = vld [vmem:[#allocation2 + $0x1c4] ss:$16 sps:$4 sm:$0xff]   ;;  %v6599_v59 = vld [vmem:[#allocation2 + $0x1cc] ss:$16 sps:$4 sm:$0xff]  }
  0xdb   :  { %v6601_v60 = vld [vmem:[#allocation2 + $0x1c0] ss:$16 sps:$4 sm:$0xff]   ;;  %v6602_v61 = vld [vmem:[#allocation2 + $0x1c8] ss:$16 sps:$4 sm:$0xff]   ;;  %v6603_v62 = vld [vmem:[#allocation2 + $0x1e4] ss:$16 sps:$4 sm:$0xff]  }
  0xdc   :  { %v188_v46 = vld [vmem:[%s7945_s22] sm:$0xff]  ;;  %v6605_v63 = vld [vmem:[#allocation2 + $0x1ec] ss:$16 sps:$4 sm:$0xff]   ;;  %v6608_v1 = vld [vmem:[#allocation2 + $0x1e8] ss:$16 sps:$4 sm:$0xff]  }
  0xdd   :  { %1789 = vmatpush1.bf16.msra.mxu0 %v6547_v22  ;;  %1953 = vmatpush1.bf16.msra.mxu1 %v6548_v23  ;;  %v5647_v48 = vcombine.high %v188_v46, %v188_v46  ;;  %v6607_v0 = vld [vmem:[#allocation2 + $0x1e0] ss:$16 sps:$4 sm:$0xff]   ;;  %v6613_v2 = vld [vmem:[#allocation2 + $0x204] ss:$16 sps:$4 sm:$0xff]   ;;  %v6616_v3 = vld [vmem:[#allocation2 + $0x20c] ss:$16 sps:$4 sm:$0xff]   ;;  %v5646_v4 = vcombine.low %v188_v46, %v188_v46 }
  0xde   :  { %1790 = vmatprep.subr.bf16.mxu0 %v6549_v24  ;;  %1954 = vmatprep.subr.bf16.mxu1 %v6551_v25  ;;  %v6611_v5 = vld [vmem:[#allocation2 + $0x200] ss:$16 sps:$4 sm:$0xff]   ;;  %v6614_v6 = vld [vmem:[#allocation2 + $0x208] ss:$16 sps:$4 sm:$0xff]   ;;  %v6619_v7 = vld [vmem:[#allocation2 + $0x224] ss:$16 sps:$4 sm:$0xff]  }
  0xdf   :  { %1810 = vmatprep.mubr.bf16.mxu0 %v5647_v48  ;;  %1974 = vmatprep.mubr.bf16.mxu1 %v5647_v48  ;;  %v6622_v8 = vld [vmem:[#allocation2 + $0x22c] ss:$16 sps:$4 sm:$0xff]   ;;  %v6617_v9 = vld [vmem:[#allocation2 + $0x220] ss:$16 sps:$4 sm:$0xff]   ;;  %v6620_v10 = vld [vmem:[#allocation2 + $0x228] ss:$16 sps:$4 sm:$0xff]  }
  0xe0   :  { %v6625_v11 = vld [vmem:[#allocation2 + $0x244] ss:$16 sps:$4 sm:$0xff]   ;;  %v6628_v12 = vld [vmem:[#allocation2 + $0x24c] ss:$16 sps:$4 sm:$0xff]   ;;  %v6623_v13 = vld [vmem:[#allocation2 + $0x240] ss:$16 sps:$4 sm:$0xff]  }
  0xe1   :  { %1791 = vmatpush1.bf16.msra.mxu0 %v6553_v26  ;;  %1955 = vmatpush1.bf16.msra.mxu1 %v6554_v27  ;;  %v6626_v14 = vld [vmem:[#allocation2 + $0x248] ss:$16 sps:$4 sm:$0xff]   ;;  %v6631_v15 = vld [vmem:[#allocation2 + $0x264] ss:$16 sps:$4 sm:$0xff]   ;;  %v6634_v16 = vld [vmem:[#allocation2 + $0x26c] ss:$16 sps:$4 sm:$0xff]  }
  0xe2   :  { %1792 = vmatprep.subr.bf16.mxu0 %v6555_v28  ;;  %1956 = vmatprep.subr.bf16.mxu1 %v6557_v29  ;;  %v6629_v17 = vld [vmem:[#allocation2 + $0x260] ss:$16 sps:$4 sm:$0xff]   ;;  %v6632_v18 = vld [vmem:[#allocation2 + $0x268] ss:$16 sps:$4 sm:$0xff]   ;;  %v6637_v19 = vld [vmem:[#allocation2 + $0x284] ss:$16 sps:$4 sm:$0xff]  }
  0xe3   :  { %v6640_v20 = vld [vmem:[#allocation2 + $0x28c] ss:$16 sps:$4 sm:$0xff]   ;;  %v6635_v21 = vld [vmem:[#allocation2 + $0x280] ss:$16 sps:$4 sm:$0xff]   ;;  %v6638_v22 = vld [vmem:[#allocation2 + $0x288] ss:$16 sps:$4 sm:$0xff]  }
  0xe4   :  { %v6643_v23 = vld [vmem:[#allocation2 + $0x2a4] ss:$16 sps:$4 sm:$0xff]   ;;  %v6646_v24 = vld [vmem:[#allocation2 + $0x2ac] ss:$16 sps:$4 sm:$0xff]   ;;  %v6641_v25 = vld [vmem:[#allocation2 + $0x2a0] ss:$16 sps:$4 sm:$0xff]  }
  0xe5   :  { %1793 = vmatpush1.bf16.msra.mxu0 %v6559_v30  ;;  %1957 = vmatpush1.bf16.msra.mxu1 %v6560_v31  ;;  %v6644_v26 = vld [vmem:[#allocation2 + $0x2a8] ss:$16 sps:$4 sm:$0xff]   ;;  %v6649_v27 = vld [vmem:[#allocation2 + $0x2c4] ss:$16 sps:$4 sm:$0xff]   ;;  %v6652_v28 = vld [vmem:[#allocation2 + $0x2cc] ss:$16 sps:$4 sm:$0xff]  }
  0xe6   :  { %1794 = vmatprep.subr.bf16.mxu0 %v6561_v32  ;;  %1958 = vmatprep.subr.bf16.mxu1 %v6563_v33  ;;  %v7680_v29 = vld [vmem:[%s7945_s22 + $0x8] sm:$0xff]  ;;  %v6647_v31 = vld [vmem:[#allocation2 + $0x2c0] ss:$16 sps:$4 sm:$0xff]   ;;  %v6655_v33 = vld [vmem:[#allocation2 + $0x2e4] ss:$16 sps:$4 sm:$0xff]  }
  0xe7   :  { %v5649_v30 = vcombine.high %v7680_v29, %v7680_v29  ;;  %v6650_v32 = vld [vmem:[#allocation2 + $0x2c8] ss:$16 sps:$4 sm:$0xff]   ;;  %v6676_v46 = vld [vmem:[#allocation2 + $0x34c] ss:$16 sps:$4 sm:$0xff]  }
  0xe8   :  { %v6674_v48 = vld [vmem:[#allocation2 + $0x348] ss:$16 sps:$4 sm:$0xff]  }
  0xe9   :  { %1795 = vmatpush1.bf16.msra.mxu0 %v6565_v34  ;;  %1959 = vmatpush1.bf16.msra.mxu1 %v6566_v35  ;;  %v6658_v34 = vld [vmem:[#allocation2 + $0x2ec] ss:$16 sps:$4 sm:$0xff]   ;;  %v6653_v35 = vld [vmem:[#allocation2 + $0x2e0] ss:$16 sps:$4 sm:$0xff]  }
  0xea   :  { %1796 = vmatprep.subr.bf16.mxu0 %v6567_v36  ;;  %1960 = vmatprep.subr.bf16.mxu1 %v6569_v37  ;;  %v6656_v36 = vld [vmem:[#allocation2 + $0x2e8] ss:$16 sps:$4 sm:$0xff]   ;;  %v6661_v37 = vld [vmem:[#allocation2 + $0x304] ss:$16 sps:$4 sm:$0xff]  }
  0xed   :  { %1797 = vmatpush1.bf16.msra.mxu0 %v6571_v38  ;;  %1961 = vmatpush1.bf16.msra.mxu1 %v6572_v39  ;;  %v6664_v38 = vld [vmem:[#allocation2 + $0x30c] ss:$16 sps:$4 sm:$0xff]   ;;  %v6659_v39 = vld [vmem:[#allocation2 + $0x300] ss:$16 sps:$4 sm:$0xff]  }
  0xee   :  { %1798 = vmatprep.subr.bf16.mxu0 %v6573_v40  ;;  %1962 = vmatprep.subr.bf16.mxu1 %v6575_v41  ;;  %v6662_v40 = vld [vmem:[#allocation2 + $0x308] ss:$16 sps:$4 sm:$0xff]   ;;  %v6667_v41 = vld [vmem:[#allocation2 + $0x324] ss:$16 sps:$4 sm:$0xff]  }
  0xf1   :  { %1799 = vmatpush1.bf16.msra.mxu0 %v6577_v42  ;;  %1963 = vmatpush1.bf16.msra.mxu1 %v6578_v43  ;;  %v6670_v42 = vld [vmem:[#allocation2 + $0x32c] ss:$16 sps:$4 sm:$0xff]   ;;  %v6665_v43 = vld [vmem:[#allocation2 + $0x320] ss:$16 sps:$4 sm:$0xff]  }
  0xf2   :  { %1800 = vmatprep.subr.bf16.mxu0 %v6579_v44  ;;  %1964 = vmatprep.subr.bf16.mxu1 %v6581_v45  ;;  %v6668_v44 = vld [vmem:[#allocation2 + $0x328] ss:$16 sps:$4 sm:$0xff]   ;;  %v6673_v45 = vld [vmem:[#allocation2 + $0x344] ss:$16 sps:$4 sm:$0xff]  }
  0xf5   :  { %1801 = vmatpush1.bf16.msra.mxu0 %v6583_v47  ;;  %1965 = vmatpush1.bf16.msra.mxu1 %v6584_v49  ;;  %v6671_v47 = vld [vmem:[#allocation2 + $0x340] ss:$16 sps:$4 sm:$0xff]   ;;  %v6679_v49 = vld [vmem:[#allocation2 + $0x364] ss:$16 sps:$4 sm:$0xff]  }
  0xf6   :  { %1802 = vmatprep.subr.bf16.mxu0 %v6585_v50  ;;  %1966 = vmatprep.subr.bf16.mxu1 %v6587_v51  ;;  %v6682_v50 = vld [vmem:[#allocation2 + $0x36c] ss:$16 sps:$4 sm:$0xff]   ;;  %v6677_v51 = vld [vmem:[#allocation2 + $0x360] ss:$16 sps:$4 sm:$0xff]  }
  0xf9   :  { %1803 = vmatpush1.bf16.msra.mxu0 %v6589_v52  ;;  %1967 = vmatpush1.bf16.msra.mxu1 %v6590_v53  ;;  %v6680_v52 = vld [vmem:[#allocation2 + $0x368] ss:$16 sps:$4 sm:$0xff]   ;;  %v6685_v53 = vld [vmem:[#allocation2 + $0x384] ss:$16 sps:$4 sm:$0xff]  }
  0xfa   :  { %1804 = vmatprep.subr.bf16.mxu0 %v6591_v54  ;;  %1968 = vmatprep.subr.bf16.mxu1 %v6593_v55  ;;  %v6688_v54 = vld [vmem:[#allocation2 + $0x38c] ss:$16 sps:$4 sm:$0xff]   ;;  %v6683_v55 = vld [vmem:[#allocation2 + $0x380] ss:$16 sps:$4 sm:$0xff]  }
  0xfd   :  { %1805 = vmatpush1.bf16.msra.mxu0 %v6595_v56  ;;  %1969 = vmatpush1.bf16.msra.mxu1 %v6596_v57  ;;  %v6686_v56 = vld [vmem:[#allocation2 + $0x388] ss:$16 sps:$4 sm:$0xff]   ;;  %v6691_v57 = vld [vmem:[#allocation2 + $0x3a4] ss:$16 sps:$4 sm:$0xff]  }
  0xfe   :  { %1806 = vmatprep.subr.bf16.mxu0 %v6597_v58  ;;  %1970 = vmatprep.subr.bf16.mxu1 %v6599_v59  ;;  %v6694_v58 = vld [vmem:[#allocation2 + $0x3ac] ss:$16 sps:$4 sm:$0xff]   ;;  %v6689_v59 = vld [vmem:[#allocation2 + $0x3a0] ss:$16 sps:$4 sm:$0xff]  }
 0x101   :  { %1807 = vmatpush1.bf16.msra.mxu0 %v6601_v60  ;;  %1971 = vmatpush1.bf16.msra.mxu1 %v6602_v61  ;;  %v6692_v60 = vld [vmem:[#allocation2 + $0x3a8] ss:$16 sps:$4 sm:$0xff]   ;;  %v6697_v61 = vld [vmem:[#allocation2 + $0x3c4] ss:$16 sps:$4 sm:$0xff]  }
 0x102   :  { %1808 = vmatprep.subr.bf16.mxu0 %v6603_v62  ;;  %1972 = vmatprep.subr.bf16.mxu1 %v6605_v63  ;;  %v6700_v62 = vld [vmem:[#allocation2 + $0x3cc] ss:$16 sps:$4 sm:$0xff]   ;;  %v6695_v63 = vld [vmem:[#allocation2 + $0x3c0] ss:$16 sps:$4 sm:$0xff]  }
 0x105   :  { %1809 = vmatpush1.bf16.msra.mxu0 %v6607_v0  ;;  %1973 = vmatpush1.bf16.msra.mxu1 %v6608_v1  ;;  %v6698_v0 = vld [vmem:[#allocation2 + $0x3c8] ss:$16 sps:$4 sm:$0xff]   ;;  %v6703_v1 = vld [vmem:[#allocation2 + $0x3e4] ss:$16 sps:$4 sm:$0xff]  }
 0x106   :  { %1819 = vmatprep.subr.bf16.mxu0 %v6613_v2  ;;  %1983 = vmatprep.subr.bf16.mxu1 %v6616_v3  ;;  %v6706_v2 = vld [vmem:[#allocation2 + $0x3ec] ss:$16 sps:$4 sm:$0xff]   ;;  %v6701_v3 = vld [vmem:[#allocation2 + $0x3e0] ss:$16 sps:$4 sm:$0xff]  }
 0x108   :  { %1811 = vmatmul.mubr.bf16.vlgmr.msra.gmra.mrb[0].mxu0 %v5646_v4  ;;  %1975 = vmatmul.mubr.bf16.vlgmr.msra.gmra.mrb[0].mxu1 %v5646_v4  ;;  %v6704_v4 = vld [vmem:[#allocation2 + $0x3e8] ss:$16 sps:$4 sm:$0xff]  }
 0x109   :  { %1820 = vmatpush1.bf16.msra.mxu0 %v6611_v5  ;;  %1984 = vmatpush1.bf16.msra.mxu1 %v6614_v6  ;;  %v6711_v5 = vld [vmem:[#allocation2 + $0x404] ss:$16 sps:$4 sm:$0xff]   ;;  %v6714_v6 = vld [vmem:[#allocation2 + $0x40c] ss:$16 sps:$4 sm:$0xff]  }
 0x10a   :  { %1821 = vmatprep.subr.bf16.mxu0 %v6619_v7  ;;  %1985 = vmatprep.subr.bf16.mxu1 %v6622_v8  ;;  %v5648_v7 = vcombine.low %v7680_v29, %v7680_v29  ;;  %v6709_v8 = vld [vmem:[#allocation2 + $0x400] ss:$16 sps:$4 sm:$0xff]   ;;  %v6744_v29 = vld [vmem:[#allocation2 + $0x4ac] ss:$16 sps:$4 sm:$0xff]  }
 0x10b   :  { %1851 = vmatprep.mubr.bf16.mxu0 %v5649_v30  ;;  %2015 = vmatprep.mubr.bf16.mxu1 %v5649_v30  ;;  %v6739_v30 = vld [vmem:[#allocation2 + $0x4a0] ss:$16 sps:$4 sm:$0xff]  }
 0x10d   :  { %1822 = vmatpush1.bf16.msra.mxu0 %v6617_v9  ;;  %1986 = vmatpush1.bf16.msra.mxu1 %v6620_v10  ;;  %v6712_v9 = vld [vmem:[#allocation2 + $0x408] ss:$16 sps:$4 sm:$0xff]   ;;  %v6717_v10 = vld [vmem:[#allocation2 + $0x424] ss:$16 sps:$4 sm:$0xff]  }
 0x10e   :  { %1823 = vmatprep.subr.bf16.mxu0 %v6625_v11  ;;  %1987 = vmatprep.subr.bf16.mxu1 %v6628_v12  ;;  %v7689_v11 = vld [vmem:[%s7945_s22 + $0x10] sm:$0xff]  ;;  %v6720_v12 = vld [vmem:[#allocation2 + $0x42c] ss:$16 sps:$4 sm:$0xff]  }
 0x111   :  { %1824 = vmatpush1.bf16.msra.mxu0 %v6623_v13  ;;  %1988 = vmatpush1.bf16.msra.mxu1 %v6626_v14  ;;  %v5651_v13 = vcombine.high %v7689_v11, %v7689_v11  ;;  %v6715_v14 = vld [vmem:[#allocation2 + $0x420] ss:$16 sps:$4 sm:$0xff]  }
 0x112   :  { %1825 = vmatprep.subr.bf16.mxu0 %v6631_v15  ;;  %1989 = vmatprep.subr.bf16.mxu1 %v6634_v16  ;;  %v6718_v15 = vld [vmem:[#allocation2 + $0x428] ss:$16 sps:$4 sm:$0xff]   ;;  %v6723_v16 = vld [vmem:[#allocation2 + $0x444] ss:$16 sps:$4 sm:$0xff]  }
 0x115   :  { %1826 = vmatpush1.bf16.msra.mxu0 %v6629_v17  ;;  %1990 = vmatpush1.bf16.msra.mxu1 %v6632_v18  ;;  %v6726_v17 = vld [vmem:[#allocation2 + $0x44c] ss:$16 sps:$4 sm:$0xff]   ;;  %v6721_v18 = vld [vmem:[#allocation2 + $0x440] ss:$16 sps:$4 sm:$0xff]  }
 0x116   :  { %1827 = vmatprep.subr.bf16.mxu0 %v6637_v19  ;;  %1991 = vmatprep.subr.bf16.mxu1 %v6640_v20  ;;  %v6724_v19 = vld [vmem:[#allocation2 + $0x448] ss:$16 sps:$4 sm:$0xff]   ;;  %v6729_v20 = vld [vmem:[#allocation2 + $0x464] ss:$16 sps:$4 sm:$0xff]  }
 0x119   :  { %1828 = vmatpush1.bf16.msra.mxu0 %v6635_v21  ;;  %1992 = vmatpush1.bf16.msra.mxu1 %v6638_v22  ;;  %v6732_v21 = vld [vmem:[#allocation2 + $0x46c] ss:$16 sps:$4 sm:$0xff]   ;;  %v6727_v22 = vld [vmem:[#allocation2 + $0x460] ss:$16 sps:$4 sm:$0xff]  }
 0x11a   :  { %1829 = vmatprep.subr.bf16.mxu0 %v6643_v23  ;;  %1993 = vmatprep.subr.bf16.mxu1 %v6646_v24  ;;  %v6730_v23 = vld [vmem:[#allocation2 + $0x468] ss:$16 sps:$4 sm:$0xff]   ;;  %v6735_v24 = vld [vmem:[#allocation2 + $0x484] ss:$16 sps:$4 sm:$0xff]  }
 0x11d   :  { %1830 = vmatpush1.bf16.msra.mxu0 %v6641_v25  ;;  %1994 = vmatpush1.bf16.msra.mxu1 %v6644_v26  ;;  %v6738_v25 = vld [vmem:[#allocation2 + $0x48c] ss:$16 sps:$4 sm:$0xff]   ;;  %v6733_v26 = vld [vmem:[#allocation2 + $0x480] ss:$16 sps:$4 sm:$0xff]  }
 0x11e   :  { %1831 = vmatprep.subr.bf16.mxu0 %v6649_v27  ;;  %1995 = vmatprep.subr.bf16.mxu1 %v6652_v28  ;;  %v6736_v27 = vld [vmem:[#allocation2 + $0x488] ss:$16 sps:$4 sm:$0xff]   ;;  %v6741_v28 = vld [vmem:[#allocation2 + $0x4a4] ss:$16 sps:$4 sm:$0xff]  }
 0x121   :  { %1832 = vmatpush1.bf16.msra.mxu0 %v6647_v31  ;;  %1996 = vmatpush1.bf16.msra.mxu1 %v6650_v32  ;;  %v6742_v31 = vld [vmem:[#allocation2 + $0x4a8] ss:$16 sps:$4 sm:$0xff]   ;;  %v6747_v32 = vld [vmem:[#allocation2 + $0x4c4] ss:$16 sps:$4 sm:$0xff]  }
 0x122   :  { %1833 = vmatprep.subr.bf16.mxu0 %v6655_v33  ;;  %1997 = vmatprep.subr.bf16.mxu1 %v6658_v34  ;;  %v6750_v33 = vld [vmem:[#allocation2 + $0x4cc] ss:$16 sps:$4 sm:$0xff]   ;;  %v6745_v34 = vld [vmem:[#allocation2 + $0x4c0] ss:$16 sps:$4 sm:$0xff]  }
 0x125   :  { %1834 = vmatpush1.bf16.msra.mxu0 %v6653_v35  ;;  %1998 = vmatpush1.bf16.msra.mxu1 %v6656_v36  ;;  %v6748_v35 = vld [vmem:[#allocation2 + $0x4c8] ss:$16 sps:$4 sm:$0xff]   ;;  %v6753_v36 = vld [vmem:[#allocation2 + $0x4e4] ss:$16 sps:$4 sm:$0xff]  }
 0x126   :  { %1835 = vmatprep.subr.bf16.mxu0 %v6661_v37  ;;  %1999 = vmatprep.subr.bf16.mxu1 %v6664_v38  ;;  %v6756_v37 = vld [vmem:[#allocation2 + $0x4ec] ss:$16 sps:$4 sm:$0xff]   ;;  %v6751_v38 = vld [vmem:[#allocation2 + $0x4e0] ss:$16 sps:$4 sm:$0xff]  }
 0x129   :  { %1836 = vmatpush1.bf16.msra.mxu0 %v6659_v39  ;;  %2000 = vmatpush1.bf16.msra.mxu1 %v6662_v40  ;;  %v6754_v39 = vld [vmem:[#allocation2 + $0x4e8] ss:$16 sps:$4 sm:$0xff]   ;;  %v6759_v40 = vld [vmem:[#allocation2 + $0x504] ss:$16 sps:$4 sm:$0xff]  }
 0x12a   :  { %1837 = vmatprep.subr.bf16.mxu0 %v6667_v41  ;;  %2001 = vmatprep.subr.bf16.mxu1 %v6670_v42  ;;  %v6762_v41 = vld [vmem:[#allocation2 + $0x50c] ss:$16 sps:$4 sm:$0xff]   ;;  %v6757_v42 = vld [vmem:[#allocation2 + $0x500] ss:$16 sps:$4 sm:$0xff]  }
 0x12d   :  { %1838 = vmatpush1.bf16.msra.mxu0 %v6665_v43  ;;  %2002 = vmatpush1.bf16.msra.mxu1 %v6668_v44  ;;  %v6760_v43 = vld [vmem:[#allocation2 + $0x508] ss:$16 sps:$4 sm:$0xff]   ;;  %v6765_v44 = vld [vmem:[#allocation2 + $0x524] ss:$16 sps:$4 sm:$0xff]  }
 0x12e   :  { %1839 = vmatprep.subr.bf16.mxu0 %v6673_v45  ;;  %2003 = vmatprep.subr.bf16.mxu1 %v6676_v46  ;;  %v6768_v45 = vld [vmem:[#allocation2 + $0x52c] ss:$16 sps:$4 sm:$0xff]   ;;  %v6763_v46 = vld [vmem:[#allocation2 + $0x520] ss:$16 sps:$4 sm:$0xff]  }
 0x131   :  { %1840 = vmatpush1.bf16.msra.mxu0 %v6671_v47  ;;  %2004 = vmatpush1.bf16.msra.mxu1 %v6674_v48  ;;  %v6766_v47 = vld [vmem:[#allocation2 + $0x528] ss:$16 sps:$4 sm:$0xff]   ;;  %v6771_v48 = vld [vmem:[#allocation2 + $0x544] ss:$16 sps:$4 sm:$0xff]  }
 0x132   :  { %1841 = vmatprep.subr.bf16.mxu0 %v6679_v49  ;;  %2005 = vmatprep.subr.bf16.mxu1 %v6682_v50  ;;  %v6774_v49 = vld [vmem:[#allocation2 + $0x54c] ss:$16 sps:$4 sm:$0xff]   ;;  %v6769_v50 = vld [vmem:[#allocation2 + $0x540] ss:$16 sps:$4 sm:$0xff]  }
 0x135   :  { %1842 = vmatpush1.bf16.msra.mxu0 %v6677_v51  ;;  %2006 = vmatpush1.bf16.msra.mxu1 %v6680_v52  ;;  %v6772_v51 = vld [vmem:[#allocation2 + $0x548] ss:$16 sps:$4 sm:$0xff]   ;;  %v6777_v52 = vld [vmem:[#allocation2 + $0x564] ss:$16 sps:$4 sm:$0xff]  }
 0x136   :  { %1843 = vmatprep.subr.bf16.mxu0 %v6685_v53  ;;  %2007 = vmatprep.subr.bf16.mxu1 %v6688_v54  ;;  %v6780_v53 = vld [vmem:[#allocation2 + $0x56c] ss:$16 sps:$4 sm:$0xff]   ;;  %v6775_v54 = vld [vmem:[#allocation2 + $0x560] ss:$16 sps:$4 sm:$0xff]  }
 0x139   :  { %1844 = vmatpush1.bf16.msra.mxu0 %v6683_v55  ;;  %2008 = vmatpush1.bf16.msra.mxu1 %v6686_v56  ;;  %v6778_v55 = vld [vmem:[#allocation2 + $0x568] ss:$16 sps:$4 sm:$0xff]   ;;  %v6783_v56 = vld [vmem:[#allocation2 + $0x584] ss:$16 sps:$4 sm:$0xff]  }
 0x13a   :  { %1845 = vmatprep.subr.bf16.mxu0 %v6691_v57  ;;  %2009 = vmatprep.subr.bf16.mxu1 %v6694_v58  ;;  %v6786_v57 = vld [vmem:[#allocation2 + $0x58c] ss:$16 sps:$4 sm:$0xff]   ;;  %v6781_v58 = vld [vmem:[#allocation2 + $0x580] ss:$16 sps:$4 sm:$0xff]  }
 0x13d   :  { %1846 = vmatpush1.bf16.msra.mxu0 %v6689_v59  ;;  %2010 = vmatpush1.bf16.msra.mxu1 %v6692_v60  ;;  %v6784_v59 = vld [vmem:[#allocation2 + $0x588] ss:$16 sps:$4 sm:$0xff]   ;;  %v6789_v60 = vld [vmem:[#allocation2 + $0x5a4] ss:$16 sps:$4 sm:$0xff]  }
 0x13e   :  { %1847 = vmatprep.subr.bf16.mxu0 %v6697_v61  ;;  %2011 = vmatprep.subr.bf16.mxu1 %v6700_v62  ;;  %v6792_v61 = vld [vmem:[#allocation2 + $0x5ac] ss:$16 sps:$4 sm:$0xff]   ;;  %v6787_v62 = vld [vmem:[#allocation2 + $0x5a0] ss:$16 sps:$4 sm:$0xff]  }
 0x141   :  { %1848 = vmatpush1.bf16.msra.mxu0 %v6695_v63  ;;  %2012 = vmatpush1.bf16.msra.mxu1 %v6698_v0  ;;  %v6790_v63 = vld [vmem:[#allocation2 + $0x5a8] ss:$16 sps:$4 sm:$0xff]   ;;  %v6795_v0 = vld [vmem:[#allocation2 + $0x5c4] ss:$16 sps:$4 sm:$0xff]  }
 0x142   :  { %1849 = vmatprep.subr.bf16.mxu0 %v6703_v1  ;;  %2013 = vmatprep.subr.bf16.mxu1 %v6706_v2  ;;  %v6798_v1 = vld [vmem:[#allocation2 + $0x5cc] ss:$16 sps:$4 sm:$0xff]   ;;  %v6793_v2 = vld [vmem:[#allocation2 + $0x5c0] ss:$16 sps:$4 sm:$0xff]  }
 0x145   :  { %1850 = vmatpush1.bf16.msra.mxu0 %v6701_v3  ;;  %2014 = vmatpush1.bf16.msra.mxu1 %v6704_v4  ;;  %v6796_v3 = vld [vmem:[#allocation2 + $0x5c8] ss:$16 sps:$4 sm:$0xff]   ;;  %v6801_v4 = vld [vmem:[#allocation2 + $0x5e4] ss:$16 sps:$4 sm:$0xff]  }
 0x146   :  { %1860 = vmatprep.subr.bf16.mxu0 %v6711_v5  ;;  %2024 = vmatprep.subr.bf16.mxu1 %v6714_v6  ;;  %v6804_v5 = vld [vmem:[#allocation2 + $0x5ec] ss:$16 sps:$4 sm:$0xff]   ;;  %v6799_v6 = vld [vmem:[#allocation2 + $0x5e0] ss:$16 sps:$4 sm:$0xff]  }
 0x148   :  { %1852 = vmatmul.mubr.bf16.vlgmr.msra.gmra.mrb[0].mxu0 %v5648_v7  ;;  %2016 = vmatmul.mubr.bf16.vlgmr.msra.gmra.mrb[0].mxu1 %v5648_v7  ;;  %v6802_v7 = vld [vmem:[#allocation2 + $0x5e8] ss:$16 sps:$4 sm:$0xff]  }
 0x149   :  { %1861 = vmatpush1.bf16.msra.mxu0 %v6709_v8  ;;  %2025 = vmatpush1.bf16.msra.mxu1 %v6712_v9  ;;  %v6809_v8 = vld [vmem:[#allocation2 + $0x604] ss:$16 sps:$4 sm:$0xff]   ;;  %v6812_v9 = vld [vmem:[#allocation2 + $0x60c] ss:$16 sps:$4 sm:$0xff]  }
 0x14a   :  { %1862 = vmatprep.subr.bf16.mxu0 %v6717_v10  ;;  %2026 = vmatprep.subr.bf16.mxu1 %v6720_v12  ;;  %v6807_v10 = vld [vmem:[#allocation2 + $0x600] ss:$16 sps:$4 sm:$0xff]   ;;  %v6810_v12 = vld [vmem:[#allocation2 + $0x608] ss:$16 sps:$4 sm:$0xff]  }
 0x14b   :  { %1892 = vmatprep.mubr.bf16.mxu0 %v5651_v13  ;;  %2056 = vmatprep.mubr.bf16.mxu1 %v5651_v13  ;;  %v7696_v13 = vld [vmem:[%s7945_s22 + $0x18] sm:$0xff] }
 0x14d   :  { %1863 = vmatpush1.bf16.msra.mxu0 %v6715_v14  ;;  %2027 = vmatpush1.bf16.msra.mxu1 %v6718_v15  ;;  %v5650_v14 = vcombine.low %v7689_v11, %v7689_v11  ;;  %v6815_v15 = vld [vmem:[#allocation2 + $0x624] ss:$16 sps:$4 sm:$0xff]   ;;  %v6819_v11 = vld [vmem:[#allocation2 + $0x640] ss:$16 sps:$4 sm:$0xff]  }
 0x14e   :  { %1864 = vmatprep.subr.bf16.mxu0 %v6723_v16  ;;  %2028 = vmatprep.subr.bf16.mxu1 %v6726_v17  ;;  %v6818_v16 = vld [vmem:[#allocation2 + $0x62c] ss:$16 sps:$4 sm:$0xff]   ;;  %v6813_v17 = vld [vmem:[#allocation2 + $0x620] ss:$16 sps:$4 sm:$0xff]  }
 0x151   :  { %1865 = vmatpush1.bf16.msra.mxu0 %v6721_v18  ;;  %2029 = vmatpush1.bf16.msra.mxu1 %v6724_v19  ;;  %v6816_v18 = vld [vmem:[#allocation2 + $0x628] ss:$16 sps:$4 sm:$0xff]   ;;  %v5653_v19 = vcombine.high %v7696_v13, %v7696_v13 }
 0x152   :  { %1866 = vmatprep.subr.bf16.mxu0 %v6729_v20  ;;  %2030 = vmatprep.subr.bf16.mxu1 %v6732_v21  ;;  %v6821_v20 = vld [vmem:[#allocation2 + $0x644] ss:$16 sps:$4 sm:$0xff]   ;;  %v6824_v21 = vld [vmem:[#allocation2 + $0x64c] ss:$16 sps:$4 sm:$0xff]  }
 0x155   :  { %1867 = vmatpush1.bf16.msra.mxu0 %v6727_v22  ;;  %2031 = vmatpush1.bf16.msra.mxu1 %v6730_v23  ;;  %v6822_v22 = vld [vmem:[#allocation2 + $0x648] ss:$16 sps:$4 sm:$0xff]   ;;  %v6827_v23 = vld [vmem:[#allocation2 + $0x664] ss:$16 sps:$4 sm:$0xff]  }
 0x156   :  { %1868 = vmatprep.subr.bf16.mxu0 %v6735_v24  ;;  %2032 = vmatprep.subr.bf16.mxu1 %v6738_v25  ;;  %v6830_v24 = vld [vmem:[#allocation2 + $0x66c] ss:$16 sps:$4 sm:$0xff]   ;;  %v6825_v25 = vld [vmem:[#allocation2 + $0x660] ss:$16 sps:$4 sm:$0xff]  }
 0x159   :  { %1869 = vmatpush1.bf16.msra.mxu0 %v6733_v26  ;;  %2033 = vmatpush1.bf16.msra.mxu1 %v6736_v27  ;;  %v6828_v26 = vld [vmem:[#allocation2 + $0x668] ss:$16 sps:$4 sm:$0xff]   ;;  %v6833_v27 = vld [vmem:[#allocation2 + $0x684] ss:$16 sps:$4 sm:$0xff]  }
 0x15a   :  { %1870 = vmatprep.subr.bf16.mxu0 %v6741_v28  ;;  %2034 = vmatprep.subr.bf16.mxu1 %v6744_v29  ;;  %v6836_v28 = vld [vmem:[#allocation2 + $0x68c] ss:$16 sps:$4 sm:$0xff]   ;;  %v6831_v29 = vld [vmem:[#allocation2 + $0x680] ss:$16 sps:$4 sm:$0xff]  }
 0x15d   :  { %1871 = vmatpush1.bf16.msra.mxu0 %v6739_v30  ;;  %2035 = vmatpush1.bf16.msra.mxu1 %v6742_v31  ;;  %v6834_v30 = vld [vmem:[#allocation2 + $0x688] ss:$16 sps:$4 sm:$0xff]   ;;  %v6839_v31 = vld [vmem:[#allocation2 + $0x6a4] ss:$16 sps:$4 sm:$0xff]  }
 0x15e   :  { %1872 = vmatprep.subr.bf16.mxu0 %v6747_v32  ;;  %2036 = vmatprep.subr.bf16.mxu1 %v6750_v33  ;;  %v6842_v32 = vld [vmem:[#allocation2 + $0x6ac] ss:$16 sps:$4 sm:$0xff]   ;;  %v6837_v33 = vld [vmem:[#allocation2 + $0x6a0] ss:$16 sps:$4 sm:$0xff]  }
 0x161   :  { %1873 = vmatpush1.bf16.msra.mxu0 %v6745_v34  ;;  %2037 = vmatpush1.bf16.msra.mxu1 %v6748_v35  ;;  %v6840_v34 = vld [vmem:[#allocation2 + $0x6a8] ss:$16 sps:$4 sm:$0xff]   ;;  %v6845_v35 = vld [vmem:[#allocation2 + $0x6c4] ss:$16 sps:$4 sm:$0xff]  }
 0x162   :  { %1874 = vmatprep.subr.bf16.mxu0 %v6753_v36  ;;  %2038 = vmatprep.subr.bf16.mxu1 %v6756_v37  ;;  %v6848_v36 = vld [vmem:[#allocation2 + $0x6cc] ss:$16 sps:$4 sm:$0xff]   ;;  %v6843_v37 = vld [vmem:[#allocation2 + $0x6c0] ss:$16 sps:$4 sm:$0xff]  }
 0x165   :  { %1875 = vmatpush1.bf16.msra.mxu0 %v6751_v38  ;;  %2039 = vmatpush1.bf16.msra.mxu1 %v6754_v39  ;;  %v6846_v38 = vld [vmem:[#allocation2 + $0x6c8] ss:$16 sps:$4 sm:$0xff]   ;;  %v6851_v39 = vld [vmem:[#allocation2 + $0x6e4] ss:$16 sps:$4 sm:$0xff]  }
 0x166   :  { %1876 = vmatprep.subr.bf16.mxu0 %v6759_v40  ;;  %2040 = vmatprep.subr.bf16.mxu1 %v6762_v41  ;;  %v6854_v40 = vld [vmem:[#allocation2 + $0x6ec] ss:$16 sps:$4 sm:$0xff]   ;;  %v6849_v41 = vld [vmem:[#allocation2 + $0x6e0] ss:$16 sps:$4 sm:$0xff]  }
 0x169   :  { %1877 = vmatpush1.bf16.msra.mxu0 %v6757_v42  ;;  %2041 = vmatpush1.bf16.msra.mxu1 %v6760_v43  ;;  %v6852_v42 = vld [vmem:[#allocation2 + $0x6e8] ss:$16 sps:$4 sm:$0xff]   ;;  %v6857_v43 = vld [vmem:[#allocation2 + $0x704] ss:$16 sps:$4 sm:$0xff]  }
 0x16a   :  { %1878 = vmatprep.subr.bf16.mxu0 %v6765_v44  ;;  %2042 = vmatprep.subr.bf16.mxu1 %v6768_v45  ;;  %v6860_v44 = vld [vmem:[#allocation2 + $0x70c] ss:$16 sps:$4 sm:$0xff]   ;;  %v6855_v45 = vld [vmem:[#allocation2 + $0x700] ss:$16 sps:$4 sm:$0xff]  }
 0x16d   :  { %1879 = vmatpush1.bf16.msra.mxu0 %v6763_v46  ;;  %2043 = vmatpush1.bf16.msra.mxu1 %v6766_v47  ;;  %v6858_v46 = vld [vmem:[#allocation2 + $0x708] ss:$16 sps:$4 sm:$0xff]   ;;  %v6863_v47 = vld [vmem:[#allocation2 + $0x724] ss:$16 sps:$4 sm:$0xff]  }
 0x16e   :  { %1880 = vmatprep.subr.bf16.mxu0 %v6771_v48  ;;  %2044 = vmatprep.subr.bf16.mxu1 %v6774_v49  ;;  %v6866_v48 = vld [vmem:[#allocation2 + $0x72c] ss:$16 sps:$4 sm:$0xff]   ;;  %v6861_v49 = vld [vmem:[#allocation2 + $0x720] ss:$16 sps:$4 sm:$0xff]  }
 0x171   :  { %1881 = vmatpush1.bf16.msra.mxu0 %v6769_v50  ;;  %2045 = vmatpush1.bf16.msra.mxu1 %v6772_v51  ;;  %v6864_v50 = vld [vmem:[#allocation2 + $0x728] ss:$16 sps:$4 sm:$0xff]   ;;  %v6869_v51 = vld [vmem:[#allocation2 + $0x744] ss:$16 sps:$4 sm:$0xff]  }
 0x172   :  { %1882 = vmatprep.subr.bf16.mxu0 %v6777_v52  ;;  %2046 = vmatprep.subr.bf16.mxu1 %v6780_v53  ;;  %v6872_v52 = vld [vmem:[#allocation2 + $0x74c] ss:$16 sps:$4 sm:$0xff]   ;;  %v6867_v53 = vld [vmem:[#allocation2 + $0x740] ss:$16 sps:$4 sm:$0xff]  }
 0x175   :  { %1883 = vmatpush1.bf16.msra.mxu0 %v6775_v54  ;;  %2047 = vmatpush1.bf16.msra.mxu1 %v6778_v55  ;;  %v6870_v54 = vld [vmem:[#allocation2 + $0x748] ss:$16 sps:$4 sm:$0xff]   ;;  %v6875_v55 = vld [vmem:[#allocation2 + $0x764] ss:$16 sps:$4 sm:$0xff]  }
 0x176   :  { %1884 = vmatprep.subr.bf16.mxu0 %v6783_v56  ;;  %2048 = vmatprep.subr.bf16.mxu1 %v6786_v57  ;;  %v6878_v56 = vld [vmem:[#allocation2 + $0x76c] ss:$16 sps:$4 sm:$0xff]   ;;  %v6873_v57 = vld [vmem:[#allocation2 + $0x760] ss:$16 sps:$4 sm:$0xff]  }
 0x179   :  { %1885 = vmatpush1.bf16.msra.mxu0 %v6781_v58  ;;  %2049 = vmatpush1.bf16.msra.mxu1 %v6784_v59  ;;  %v6876_v58 = vld [vmem:[#allocation2 + $0x768] ss:$16 sps:$4 sm:$0xff]   ;;  %v6881_v59 = vld [vmem:[#allocation2 + $0x784] ss:$16 sps:$4 sm:$0xff]  }
 0x17a   :  { %1886 = vmatprep.subr.bf16.mxu0 %v6789_v60  ;;  %2050 = vmatprep.subr.bf16.mxu1 %v6792_v61  ;;  %v6884_v60 = vld [vmem:[#allocation2 + $0x78c] ss:$16 sps:$4 sm:$0xff]   ;;  %v6879_v61 = vld [vmem:[#allocation2 + $0x780] ss:$16 sps:$4 sm:$0xff]  }
 0x17d   :  { %1887 = vmatpush1.bf16.msra.mxu0 %v6787_v62  ;;  %2051 = vmatpush1.bf16.msra.mxu1 %v6790_v63  ;;  %v6882_v62 = vld [vmem:[#allocation2 + $0x788] ss:$16 sps:$4 sm:$0xff]   ;;  %v6887_v63 = vld [vmem:[#allocation2 + $0x7a4] ss:$16 sps:$4 sm:$0xff]  }
 0x17e   :  { %1888 = vmatprep.subr.bf16.mxu0 %v6795_v0  ;;  %2052 = vmatprep.subr.bf16.mxu1 %v6798_v1  ;;  %v6890_v0 = vld [vmem:[#allocation2 + $0x7ac] ss:$16 sps:$4 sm:$0xff]   ;;  %v6885_v1 = vld [vmem:[#allocation2 + $0x7a0] ss:$16 sps:$4 sm:$0xff]  }
 0x181   :  { %1889 = vmatpush1.bf16.msra.mxu0 %v6793_v2  ;;  %2053 = vmatpush1.bf16.msra.mxu1 %v6796_v3  ;;  %v6888_v2 = vld [vmem:[#allocation2 + $0x7a8] ss:$16 sps:$4 sm:$0xff]   ;;  %v6893_v3 = vld [vmem:[#allocation2 + $0x7c4] ss:$16 sps:$4 sm:$0xff]  }
 0x182   :  { %1890 = vmatprep.subr.bf16.mxu0 %v6801_v4  ;;  %2054 = vmatprep.subr.bf16.mxu1 %v6804_v5  ;;  %v6896_v4 = vld [vmem:[#allocation2 + $0x7cc] ss:$16 sps:$4 sm:$0xff]   ;;  %v6891_v5 = vld [vmem:[#allocation2 + $0x7c0] ss:$16 sps:$4 sm:$0xff]  }
 0x185   :  { %1891 = vmatpush1.bf16.msra.mxu0 %v6799_v6  ;;  %2055 = vmatpush1.bf16.msra.mxu1 %v6802_v7  ;;  %v6894_v6 = vld [vmem:[#allocation2 + $0x7c8] ss:$16 sps:$4 sm:$0xff]   ;;  %v6899_v7 = vld [vmem:[#allocation2 + $0x7e4] ss:$16 sps:$4 sm:$0xff]  }
 0x186   :  { %1901 = vmatprep.subr.bf16.mxu0 %v6809_v8  ;;  %2065 = vmatprep.subr.bf16.mxu1 %v6812_v9  ;;  %v6902_v8 = vld [vmem:[#allocation2 + $0x7ec] ss:$16 sps:$4 sm:$0xff]   ;;  %v6897_v9 = vld [vmem:[#allocation2 + $0x7e0] ss:$16 sps:$4 sm:$0xff]  }
 0x188   :  { %1893 = vmatmul.mubr.bf16.vlgmr.msra.gmra.mrb[0].mxu0 %v5650_v14  ;;  %2057 = vmatmul.mubr.bf16.vlgmr.msra.gmra.mrb[0].mxu1 %v5650_v14  ;;  %v5652_v14 = vcombine.low %v7696_v13, %v7696_v13  ;;  %v6917_v13 = vld [vmem:[#allocation7 + $0x40] ss:$8 sps:$4 sm:$0xff]  }
 0x189   :  { %1902 = vmatpush1.bf16.msra.mxu0 %v6807_v10  ;;  %2066 = vmatpush1.bf16.msra.mxu1 %v6810_v12  ;;  %v6900_v10 = vld [vmem:[#allocation2 + $0x7e8] ss:$16 sps:$4 sm:$0xff]  }
 0x18a   :  { %1903 = vmatprep.subr.bf16.mxu0 %v6815_v15  ;;  %2067 = vmatprep.subr.bf16.mxu1 %v6818_v16  ;;  %v6907_v12 = vld [vmem:[#allocation7 + $0x4] ss:$8 sps:$4 sm:$0xff]   ;;  %v6905_v15 = vld [vmem:[#allocation7] ss:$8 sps:$4 sm:$0xff]   ;;  %v6910_v16 = vld [vmem:[#allocation7 + $0x14] ss:$8 sps:$4 sm:$0xff]  }
 0x18b   :  { %1933 = vmatprep.mubr.bf16.mxu0 %v5653_v19  ;;  %2097 = vmatprep.mubr.bf16.mxu1 %v5653_v19  ;;  %v6911_v19 = vld [vmem:[#allocation7 + $0x20] ss:$8 sps:$4 sm:$0xff]  }
 0x18d   :  { %1904 = vmatpush1.bf16.msra.mxu0 %v6813_v17  ;;  %2068 = vmatpush1.bf16.msra.mxu1 %v6816_v18  ;;  %v6908_v17 = vld [vmem:[#allocation7 + $0x10] ss:$8 sps:$4 sm:$0xff]   ;;  %v6913_v18 = vld [vmem:[#allocation7 + $0x24] ss:$8 sps:$4 sm:$0xff]  }
 0x18e   :  { %1905 = vmatprep.subr.bf16.mxu0 %v6821_v20  ;;  %2069 = vmatprep.subr.bf16.mxu1 %v6824_v21  ;;  %v6916_v20 = vld [vmem:[#allocation7 + $0x34] ss:$8 sps:$4 sm:$0xff]   ;;  %v6914_v21 = vld [vmem:[#allocation7 + $0x30] ss:$8 sps:$4 sm:$0xff]  }
 0x191   :  { %1906 = vmatpush1.bf16.msra.mxu0 %v6819_v11  ;;  %2070 = vmatpush1.bf16.msra.mxu1 %v6822_v22  ;;  %v6919_v11 = vld [vmem:[#allocation7 + $0x44] ss:$8 sps:$4 sm:$0xff]   ;;  %v6922_v22 = vld [vmem:[#allocation7 + $0x54] ss:$8 sps:$4 sm:$0xff]  }
 0x192   :  { %1907 = vmatprep.subr.bf16.mxu0 %v6827_v23  ;;  %2071 = vmatprep.subr.bf16.mxu1 %v6830_v24  ;;  %v6920_v23 = vld [vmem:[#allocation7 + $0x50] ss:$8 sps:$4 sm:$0xff]   ;;  %v6925_v24 = vld [vmem:[#allocation7 + $0x64] ss:$8 sps:$4 sm:$0xff]  }
 0x195   :  { %1908 = vmatpush1.bf16.msra.mxu0 %v6825_v25  ;;  %2072 = vmatpush1.bf16.msra.mxu1 %v6828_v26  ;;  %v6923_v25 = vld [vmem:[#allocation7 + $0x60] ss:$8 sps:$4 sm:$0xff]   ;;  %v6928_v26 = vld [vmem:[#allocation7 + $0x74] ss:$8 sps:$4 sm:$0xff]  }
 0x196   :  { %1909 = vmatprep.subr.bf16.mxu0 %v6833_v27  ;;  %2073 = vmatprep.subr.bf16.mxu1 %v6836_v28  ;;  %v6926_v27 = vld [vmem:[#allocation7 + $0x70] ss:$8 sps:$4 sm:$0xff]   ;;  %v6931_v28 = vld [vmem:[#allocation7 + $0x84] ss:$8 sps:$4 sm:$0xff]  }
 0x199   :  { %1910 = vmatpush1.bf16.msra.mxu0 %v6831_v29  ;;  %2074 = vmatpush1.bf16.msra.mxu1 %v6834_v30  ;;  %v6929_v29 = vld [vmem:[#allocation7 + $0x80] ss:$8 sps:$4 sm:$0xff]   ;;  %v6934_v30 = vld [vmem:[#allocation7 + $0x94] ss:$8 sps:$4 sm:$0xff]  }
 0x19a   :  { %1911 = vmatprep.subr.bf16.mxu0 %v6839_v31  ;;  %2075 = vmatprep.subr.bf16.mxu1 %v6842_v32  ;;  %v6932_v31 = vld [vmem:[#allocation7 + $0x90] ss:$8 sps:$4 sm:$0xff]   ;;  %v6937_v32 = vld [vmem:[#allocation7 + $0xa4] ss:$8 sps:$4 sm:$0xff]  }
 0x19d   :  { %1912 = vmatpush1.bf16.msra.mxu0 %v6837_v33  ;;  %2076 = vmatpush1.bf16.msra.mxu1 %v6840_v34  ;;  %v6935_v33 = vld [vmem:[#allocation7 + $0xa0] ss:$8 sps:$4 sm:$0xff]   ;;  %v6940_v34 = vld [vmem:[#allocation7 + $0xb4] ss:$8 sps:$4 sm:$0xff]  }
 0x19e   :  { %1913 = vmatprep.subr.bf16.mxu0 %v6845_v35  ;;  %2077 = vmatprep.subr.bf16.mxu1 %v6848_v36  ;;  %v6938_v35 = vld [vmem:[#allocation7 + $0xb0] ss:$8 sps:$4 sm:$0xff]   ;;  %v6943_v36 = vld [vmem:[#allocation7 + $0xc4] ss:$8 sps:$4 sm:$0xff]  }
 0x1a1   :  { %1914 = vmatpush1.bf16.msra.mxu0 %v6843_v37  ;;  %2078 = vmatpush1.bf16.msra.mxu1 %v6846_v38  ;;  %v6941_v37 = vld [vmem:[#allocation7 + $0xc0] ss:$8 sps:$4 sm:$0xff]   ;;  %v6946_v38 = vld [vmem:[#allocation7 + $0xd4] ss:$8 sps:$4 sm:$0xff]  }
 0x1a2   :  { %1915 = vmatprep.subr.bf16.mxu0 %v6851_v39  ;;  %2079 = vmatprep.subr.bf16.mxu1 %v6854_v40  ;;  %v6944_v39 = vld [vmem:[#allocation7 + $0xd0] ss:$8 sps:$4 sm:$0xff]   ;;  %v6949_v40 = vld [vmem:[#allocation7 + $0xe4] ss:$8 sps:$4 sm:$0xff]  }
 0x1a5   :  { %1916 = vmatpush1.bf16.msra.mxu0 %v6849_v41  ;;  %2080 = vmatpush1.bf16.msra.mxu1 %v6852_v42  ;;  %v6947_v41 = vld [vmem:[#allocation7 + $0xe0] ss:$8 sps:$4 sm:$0xff]   ;;  %v6952_v42 = vld [vmem:[#allocation7 + $0xf4] ss:$8 sps:$4 sm:$0xff]  }
 0x1a6   :  { %1917 = vmatprep.subr.bf16.mxu0 %v6857_v43  ;;  %2081 = vmatprep.subr.bf16.mxu1 %v6860_v44  ;;  %v6950_v43 = vld [vmem:[#allocation7 + $0xf0] ss:$8 sps:$4 sm:$0xff]   ;;  %v6955_v44 = vld [vmem:[#allocation7 + $0x104] ss:$8 sps:$4 sm:$0xff]  }
 0x1a9   :  { %1918 = vmatpush1.bf16.msra.mxu0 %v6855_v45  ;;  %2082 = vmatpush1.bf16.msra.mxu1 %v6858_v46  ;;  %v7001_v45 = vld [vmem:[%s7921_s5 + $0x40] sm:$0xff]  }
 0x1aa   :  { %1919 = vmatprep.subr.bf16.mxu0 %v6863_v47  ;;  %2083 = vmatprep.subr.bf16.mxu1 %v6866_v48  ;;  %v7002_v46 = vld [vmem:[%s7921_s5] sm:$0xff]   ;;  %v7003_v47 = vld [vmem:[%s7921_s5 + $0x48] sm:$0xff]  }
 0x1ab   :  { %v7004_v48 = vld [vmem:[%s7921_s5 + $0x8] sm:$0xff]  }
 0x1ad   :  { %1920 = vmatpush1.bf16.msra.mxu0 %v6861_v49  ;;  %2084 = vmatpush1.bf16.msra.mxu1 %v6864_v50  ;;  %v7005_v49 = vld [vmem:[%s7921_s5 + $0x50] sm:$0xff]  }
 0x1ae   :  { %1921 = vmatprep.subr.bf16.mxu0 %v6869_v51  ;;  %2085 = vmatprep.subr.bf16.mxu1 %v6872_v52  ;;  %v7006_v50 = vld [vmem:[%s7921_s5 + $0x10] sm:$0xff]   ;;  %v7007_v51 = vld [vmem:[%s7921_s5 + $0x58] sm:$0xff]  }
 0x1af   :  { %v7008_v52 = vld [vmem:[%s7921_s5 + $0x18] sm:$0xff]  }
 0x1b1   :  { %1922 = vmatpush1.bf16.msra.mxu0 %v6867_v53  ;;  %2086 = vmatpush1.bf16.msra.mxu1 %v6870_v54  ;;  %v7009_v53 = vld [vmem:[%s7921_s5 + $0x60] sm:$0xff]  }
 0x1b2   :  { %1923 = vmatprep.subr.bf16.mxu0 %v6875_v55  ;;  %2087 = vmatprep.subr.bf16.mxu1 %v6878_v56  ;;  %v7010_v54 = vld [vmem:[%s7921_s5 + $0x20] sm:$0xff]   ;;  %v7011_v55 = vld [vmem:[%s7921_s5 + $0x68] sm:$0xff]  }
 0x1b3   :  { %v7012_v56 = vld [vmem:[%s7921_s5 + $0x28] sm:$0xff]  }
 0x1b5   :  { %1924 = vmatpush1.bf16.msra.mxu0 %v6873_v57  ;;  %2088 = vmatpush1.bf16.msra.mxu1 %v6876_v58  ;;  %v450_v57 = vlaneseq }
 0x1b6   :  { %1925 = vmatprep.subr.bf16.mxu0 %v6881_v59  ;;  %2089 = vmatprep.subr.bf16.mxu1 %v6884_v60  ;;  %v7745_v60 = vld [vmem:[#allocation5] sm:$0xf] }
 0x1b7   :  { %v7740_v58 = vshrl.u32 %v450_v57, 7  ;;  %v7015_v57 = vld [vmem:[%s7921_s5 + $0x78] sm:$0xff]  }
 0x1b9   :  { %1926 = vmatpush1.bf16.msra.mxu0 %v6879_v61  ;;  %2090 = vmatpush1.bf16.msra.mxu1 %v6882_v62  ;;  %v7743_v59 = vsub.s32 0, %v7740_v58  ;;  %v7748_v61 = vsub.s32 1, %v7740_v58  ;;  %v7751_v62 = vsub.s32 3, %v7740_v58 }
 0x1ba   :  { %1927 = vmatprep.subr.bf16.mxu0 %v6887_v63  ;;  %2091 = vmatprep.subr.bf16.mxu1 %v6890_v0 }
 0x1bb   :  { %v453_v63 = vrot.slane %v7745_v60, %v7743_v59  ;;  %v457_v0 = vrot.slane %v7745_v60, %v7748_v61 }
 0x1bd   :  { %1928 = vmatpush1.bf16.msra.mxu0 %v6885_v1  ;;  %2092 = vmatpush1.bf16.msra.mxu1 %v6888_v2  ;;  %v465_v1 = vrot.slane %v7745_v60, %v7751_v62 }
 0x1be   :  { %1929 = vmatprep.subr.bf16.mxu0 %v6893_v3  ;;  %2093 = vmatprep.subr.bf16.mxu1 %v6896_v4 }
 0x1c1   :  { %1930 = vmatpush1.bf16.msra.mxu0 %v6891_v5  ;;  %2094 = vmatpush1.bf16.msra.mxu1 %v6894_v6 }
 0x1c2   :  { %1931 = vmatprep.subr.bf16.mxu0 %v6899_v7  ;;  %2095 = vmatprep.subr.bf16.mxu1 %v6902_v8 }
 0x1c5   :  { %1932 = vmatpush1.bf16.msra.mxu0 %v6897_v9  ;;  %2096 = vmatpush1.bf16.msra.mxu1 %v6900_v10 }
 0x1c6   :  { %2510 = vmatprep.subr.bf16.mxu0 %v6907_v12  ;;  %6353 = vmatprep.subr.bf16.mxu1 %v7001_v45  ;;  %v6994_v45 = vld [vmem:[#allocation7 + $0x1d4] ss:$8 sps:$4 sm:$0xff]  }
 0x1c8   :  { %1934 = vmatmul.mubr.bf16.vlgmr.msra.gmra.mrb[0].mxu0 %v5652_v14  ;;  %2098 = vmatmul.mubr.bf16.vlgmr.msra.gmra.mrb[0].mxu1 %v5652_v14 }
 0x1c9   :  { %2511 = vmatpush1.bf16.msra.mxu0 %v6905_v15  ;;  %6354 = vmatpush3.bf16.msra.mxu1 %v7002_v46  ;;  %v6992_v46 = vld [vmem:[#allocation7 + $0x1d0] ss:$8 sps:$4 sm:$0xff]  }
 0x1ca   :  { %2512 = vmatprep.subr.bf16.mxu0 %v6910_v16  ;;  %6355 = vmatprep.subr.bf16.mxu1 %v7003_v47 }
 0x1cd   :  { %2513 = vmatpush1.bf16.msra.mxu0 %v6908_v17  ;;  %6356 = vmatpush3.bf16.msra.mxu1 %v7004_v48  ;;  %v6997_v48 = vld [vmem:[#allocation7 + $0x1e4] ss:$8 sps:$4 sm:$0xff]  }
 0x1ce   :  { %2514 = vmatprep.subr.bf16.mxu0 %v6913_v18  ;;  %6357 = vmatprep.subr.bf16.mxu1 %v7005_v49  ;;  %v6995_v49 = vld [vmem:[#allocation7 + $0x1e0] ss:$8 sps:$4 sm:$0xff]  }
 0x1d1   :  { %2515 = vmatpush1.bf16.msra.mxu0 %v6911_v19  ;;  %6358 = vmatpush3.bf16.msra.mxu1 %v7006_v50  ;;  %v6953_v19 = vld [vmem:[#allocation7 + $0x100] ss:$8 sps:$4 sm:$0xff]  }
 0x1d2   :  { %2516 = vmatprep.subr.bf16.mxu0 %v6916_v20  ;;  %6359 = vmatprep.subr.bf16.mxu1 %v7007_v51  ;;  %v7000_v51 = vld [vmem:[#allocation7 + $0x1f4] ss:$8 sps:$4 sm:$0xff]  }
 0x1d5   :  { %2517 = vmatpush1.bf16.msra.mxu0 %v6914_v21  ;;  %6360 = vmatpush3.bf16.msra.mxu1 %v7008_v52  ;;  %v6958_v21 = vld [vmem:[#allocation7 + $0x114] ss:$8 sps:$4 sm:$0xff]   ;;  %v6998_v52 = vld [vmem:[#allocation7 + $0x1f0] ss:$8 sps:$4 sm:$0xff]  }
 0x1d6   :  { %2518 = vmatprep.subr.bf16.mxu0 %v6919_v11  ;;  %6361 = vmatprep.subr.bf16.mxu1 %v7009_v53 }
 0x1d9   :  { %2519 = vmatpush1.bf16.msra.mxu0 %v6917_v13  ;;  %6362 = vmatpush3.bf16.msra.mxu1 %v7010_v54  ;;  %v6956_v13 = vld [vmem:[#allocation7 + $0x110] ss:$8 sps:$4 sm:$0xff]  }
 0x1da   :  { %2520 = vmatprep.subr.bf16.mxu0 %v6922_v22  ;;  %6363 = vmatprep.subr.bf16.mxu1 %v7011_v55  ;;  %v6961_v22 = vld [vmem:[#allocation7 + $0x124] ss:$8 sps:$4 sm:$0xff]  }
 0x1db   :  { %v7013_v55 = vld [vmem:[%s7921_s5 + $0x70] sm:$0xff]  }
 0x1dd   :  { %2521 = vmatpush1.bf16.msra.mxu0 %v6920_v23  ;;  %6364 = vmatpush3.bf16.msra.mxu1 %v7012_v56  ;;  %v6959_v23 = vld [vmem:[#allocation7 + $0x120] ss:$8 sps:$4 sm:$0xff]   ;;  %v7014_v56 = vld [vmem:[%s7921_s5 + $0x30] sm:$0xff]  }
 0x1de   :  { %2522 = vmatprep.subr.bf16.mxu0 %v6925_v24  ;;  %v6964_v24 = vld [vmem:[#allocation7 + $0x134] ss:$8 sps:$4 sm:$0xff]   ;;  %6365 = vmatprep.subr.bf16.mxu1 %v7013_v55  ;;  %v7045_v55 = vld [vmem:[#allocation14 + $0x40] ss:$8 sps:$4 sm:$0xff]  }
 0x1e1   :  { %2523 = vmatpush1.bf16.msra.mxu0 %v6923_v25  ;;  %v6962_v25 = vld [vmem:[#allocation7 + $0x130] ss:$8 sps:$4 sm:$0xff]   ;;  %6366 = vmatpush3.bf16.msra.mxu1 %v7014_v56 }
 0x1e2   :  { %2524 = vmatprep.subr.bf16.mxu0 %v6928_v26  ;;  %v6967_v26 = vld [vmem:[#allocation7 + $0x144] ss:$8 sps:$4 sm:$0xff]   ;;  %6367 = vmatprep.subr.bf16.mxu1 %v7015_v57  ;;  %v7048_v57 = vld [vmem:[#allocation14 + $0x50] ss:$8 sps:$4 sm:$0xff]  }
 0x1e3   :  { %v7050_v56 = vld [vmem:[#allocation14 + $0x54] ss:$8 sps:$4 sm:$0xff]  }
 0x1e5   :  { %2525 = vmatpush1.bf16.msra.mxu0 %v6926_v27  ;;  %v6965_v27 = vld [vmem:[#allocation7 + $0x140] ss:$8 sps:$4 sm:$0xff]  }
 0x1e6   :  { %2526 = vmatprep.subr.bf16.mxu0 %v6931_v28  ;;  %v6970_v28 = vld [vmem:[#allocation7 + $0x154] ss:$8 sps:$4 sm:$0xff]  }
 0x1e9   :  { %2527 = vmatpush1.bf16.msra.mxu0 %v6929_v29  ;;  %v6968_v29 = vld [vmem:[#allocation7 + $0x150] ss:$8 sps:$4 sm:$0xff]  }
 0x1ea   :  { %2528 = vmatprep.subr.bf16.mxu0 %v6934_v30  ;;  %v6973_v30 = vld [vmem:[#allocation7 + $0x164] ss:$8 sps:$4 sm:$0xff]  }
 0x1ed   :  { %2529 = vmatpush1.bf16.msra.mxu0 %v6932_v31  ;;  %v6971_v31 = vld [vmem:[#allocation7 + $0x160] ss:$8 sps:$4 sm:$0xff]  }
 0x1ee   :  { %2530 = vmatprep.subr.bf16.mxu0 %v6937_v32  ;;  %v6976_v32 = vld [vmem:[#allocation7 + $0x174] ss:$8 sps:$4 sm:$0xff]  }
 0x1f1   :  { %2531 = vmatpush1.bf16.msra.mxu0 %v6935_v33  ;;  %v6974_v33 = vld [vmem:[#allocation7 + $0x170] ss:$8 sps:$4 sm:$0xff]  }
 0x1f2   :  { %2532 = vmatprep.subr.bf16.mxu0 %v6940_v34  ;;  %v6979_v34 = vld [vmem:[#allocation7 + $0x184] ss:$8 sps:$4 sm:$0xff]  }
 0x1f5   :  { %2533 = vmatpush1.bf16.msra.mxu0 %v6938_v35  ;;  %v6977_v35 = vld [vmem:[#allocation7 + $0x180] ss:$8 sps:$4 sm:$0xff]  }
 0x1f6   :  { %2534 = vmatprep.subr.bf16.mxu0 %v6943_v36  ;;  %v6982_v36 = vld [vmem:[#allocation7 + $0x194] ss:$8 sps:$4 sm:$0xff]  }
 0x1f9   :  { %2535 = vmatpush1.bf16.msra.mxu0 %v6941_v37  ;;  %v6980_v37 = vld [vmem:[#allocation7 + $0x190] ss:$8 sps:$4 sm:$0xff]  }
 0x1fa   :  { %2536 = vmatprep.subr.bf16.mxu0 %v6946_v38  ;;  %v6985_v38 = vld [vmem:[#allocation7 + $0x1a4] ss:$8 sps:$4 sm:$0xff]  }
 0x1fd   :  { %2537 = vmatpush1.bf16.msra.mxu0 %v6944_v39  ;;  %v6983_v39 = vld [vmem:[#allocation7 + $0x1a0] ss:$8 sps:$4 sm:$0xff]  }
 0x1fe   :  { %2538 = vmatprep.subr.bf16.mxu0 %v6949_v40  ;;  %v6988_v40 = vld [vmem:[#allocation7 + $0x1b4] ss:$8 sps:$4 sm:$0xff]  }
 0x201   :  { %2539 = vmatpush1.bf16.msra.mxu0 %v6947_v41  ;;  %v6986_v41 = vld [vmem:[#allocation7 + $0x1b0] ss:$8 sps:$4 sm:$0xff]  }
 0x202   :  { %2540 = vmatprep.subr.bf16.mxu0 %v6952_v42  ;;  %v6991_v42 = vld [vmem:[#allocation7 + $0x1c4] ss:$8 sps:$4 sm:$0xff]  }
 0x205   :  { %2541 = vmatpush1.bf16.msra.mxu0 %v6950_v43  ;;  %v6989_v43 = vld [vmem:[#allocation7 + $0x1c0] ss:$8 sps:$4 sm:$0xff]  }
 0x206   :  { %2551 = vmatprep.subr.bf16.mxu0 %v6955_v44  ;;  %v7762_v44 = vsub.s32 2, %v7740_v58 }
 0x208   :  { %v461_v47 = vrot.slane %v7745_v60, %v7762_v44  ;;  %v7016_v60 = vld [vmem:[%s7921_s5 + $0x38] sm:$0xff]  }
 0x209   :  { %6368 = vmatpush3.bf16.msra.mxu1 %v7016_v60  ;;  %v7053_v60 = vld [vmem:[#allocation14 + $0x64] ss:$8 sps:$4 sm:$0xff]  }
 0x29b   :  { %v1935_v2 = vpop.f32.mrb[0].mxu0  ;;  %v7759_v3 = vpop.f32.mrb[0].mxu1 }
 0x29c   :  { %v6433_v4 = vadd.f32 %v1935_v2, %v453_v63  ;;  %v1937_v5 = vpop.f32.mrb[1].mxu0  ;;  %v2101_v6 = vpop.f32.mrb[1].mxu1  ;;  %v6435_v50 = vadd.f32 %v7759_v3, %v461_v47  ;;  %v7443_v63 = vmov 0.0  }
 0x29d   :  { %v6434_v7 = vadd.f32 %v1937_v5, %v457_v0  ;;  %v6436_v8 = vadd.f32 %v2101_v6, %v465_v1  ;;  %v1939_v9 = vpop.f32.mrb[2].mxu0  ;;  %v2103_v10 = vpop.f32.mrb[2].mxu1  ;;  %6393 = vmatprep.subr.bf16.mxu1 %v7443_v63  ;;  %v2178_v0 = vld [vmem:[#allocation8] sm:$0x3] }
 0x29e   :  { %v2106_v12 = vmax.f32 %v6433_v4, 0.0  ;;  %v1940_v14 = vpop.f32.mrb[3].mxu0  ;;  %v2104_v15 = vpop.f32.mrb[3].mxu1  ;;  %v2108_v53 = vmax.f32 %v6435_v50, 0.0  ;;  %v2183_v1 = vrot.slane %v2178_v0, %v7743_v59  ;;  %v2187_v2 = vrot.slane %v2178_v0, %v7748_v61  ;;  %v7041_v50 = vld [vmem:[#allocation14 + $0x24] ss:$8 sps:$4 sm:$0xff]  }
 0x29f   :  { %v2107_v16 = vmax.f32 %v6434_v7, 0.0  ;;  %v2109_v17 = vmax.f32 %v6436_v8, 0.0  ;;  %v7017_v14 = vld [vmem:[%s7923_s7] sm:$0xff]  }
 0x2a0   :  { %v2110_v20 = vpack.c.bf16 %v2106_v12, %v2106_v12  ;;  %v2112_v54 = vpack.c.bf16 %v2108_v53, %v2108_v53  ;;  %v7042_v53 = vld [vmem:[#allocation14 + $0x30] ss:$8 sps:$4 sm:$0xff]   ;;  %v7056_v0 = vld [vmem:[#allocation14 + $0x74] ss:$8 sps:$4 sm:$0xff]  }
 0x2a1   :  { %v2111_v18 = vpack.c.bf16 %v2107_v16, %v2107_v16  ;;  %v2113_v11 = vpack.c.bf16 %v2109_v17, %v2109_v17  ;;  %v7018_v16 = vld [vmem:[%s7923_s7 + $0x8] sm:$0xff]   ;;  %v7019_v17 = vld [vmem:[%s7923_s7 + $0x10] sm:$0xff]  }
 0x2a3   :  { %2542 = vmatprep.mubr.bf16.mxu0 %v2111_v18  ;;  %v7020_v18 = vld [vmem:[%s7923_s7 + $0x18] sm:$0xff]  }
 0x2a4   :  { %2543 = vmatmul.mubr.bf16.vlgmr.msra.gmra.mrb[4].mxu0 %v2110_v20  ;;  %v7022_v20 = vld [vmem:[%s7923_s7 + $0x28] sm:$0xff]  }
 0x2a5   :  { %2552 = vmatpush1.bf16.msra.mxu0 %v6953_v19  ;;  %2583 = vmatprep.mubr.bf16.mxu0 %v2113_v11  ;;  %v7021_v19 = vld [vmem:[%s7923_s7 + $0x20] sm:$0xff]   ;;  %v7024_v11 = vld [vmem:[%s7923_s7 + $0x38] sm:$0xff]  }
 0x2a6   :  { %2553 = vmatprep.subr.bf16.mxu0 %v6958_v21  ;;  %v7023_v21 = vld [vmem:[%s7923_s7 + $0x30] sm:$0xff]  }
 0x2a9   :  { %2554 = vmatpush1.bf16.msra.mxu0 %v6956_v13 }
 0x2aa   :  { %2555 = vmatprep.subr.bf16.mxu0 %v6961_v22  ;;  %v5974_v22 = vld [vmem:[#allocation10] ss:$0 sm:$0xff] }
 0x2ad   :  { %2556 = vmatpush1.bf16.msra.mxu0 %v6959_v23 }
 0x2ae   :  { %2557 = vmatprep.subr.bf16.mxu0 %v6964_v24 }
 0x2b1   :  { %2558 = vmatpush1.bf16.msra.mxu0 %v6962_v25 }
 0x2b2   :  { %2559 = vmatprep.subr.bf16.mxu0 %v6967_v26 }
 0x2b5   :  { %2560 = vmatpush1.bf16.msra.mxu0 %v6965_v27 }
 0x2b6   :  { %2561 = vmatprep.subr.bf16.mxu0 %v6970_v28 }
 0x2b9   :  { %2562 = vmatpush1.bf16.msra.mxu0 %v6968_v29  ;;  %v7025_v29 = vld [vmem:[#allocation11] sm:$0xff]  }
 0x2ba   :  { %2563 = vmatprep.subr.bf16.mxu0 %v6973_v30 }
 0x2bd   :  { %2564 = vmatpush1.bf16.msra.mxu0 %v6971_v31  ;;  %v7026_v31 = vld [vmem:[#allocation11 + $0x8] sm:$0xff]  }
 0x2be   :  { %2565 = vmatprep.subr.bf16.mxu0 %v6976_v32  ;;  %v7027_v32 = vld [vmem:[#allocation11 + $0x10] sm:$0xff]  }
 0x2c1   :  { %2566 = vmatpush1.bf16.msra.mxu0 %v6974_v33  ;;  %v7028_v33 = vld [vmem:[#allocation11 + $0x18] sm:$0xff]  }
 0x2c2   :  { %2567 = vmatprep.subr.bf16.mxu0 %v6979_v34  ;;  %v7029_v34 = vld [vmem:[#allocation11 + $0x20] sm:$0xff]  }
 0x2c5   :  { %2568 = vmatpush1.bf16.msra.mxu0 %v6977_v35  ;;  %v7030_v35 = vld [vmem:[#allocation11 + $0x28] sm:$0xff]  }
 0x2c6   :  { %2569 = vmatprep.subr.bf16.mxu0 %v6982_v36  ;;  %v7031_v36 = vld [vmem:[#allocation11 + $0x30] sm:$0xff]  }
 0x2c9   :  { %2570 = vmatpush1.bf16.msra.mxu0 %v6980_v37  ;;  %v7032_v37 = vld [vmem:[#allocation11 + $0x38] sm:$0xff]  }
 0x2ca   :  { %2571 = vmatprep.subr.bf16.mxu0 %v6985_v38  ;;  %v7035_v38 = vld [vmem:[#allocation14 + $0x4] ss:$8 sps:$4 sm:$0xff]  }
 0x2cd   :  { %2572 = vmatpush1.bf16.msra.mxu0 %v6983_v39  ;;  %v5991_v39 = vld [vmem:[%s7924_s8] ss:$0 sm:$0xff] }
 0x2ce   :  { %2573 = vmatprep.subr.bf16.mxu0 %v6988_v40 }
 0x2d1   :  { %2574 = vmatpush1.bf16.msra.mxu0 %v6986_v41 }
 0x2d2   :  { %2575 = vmatprep.subr.bf16.mxu0 %v6991_v42 }
 0x2d5   :  { %2576 = vmatpush1.bf16.msra.mxu0 %v6989_v43 }
 0x2d6   :  { %2577 = vmatprep.subr.bf16.mxu0 %v6994_v45  ;;  %v7033_v45 = vld [vmem:[#allocation14] ss:$8 sps:$4 sm:$0xff]  }
 0x2d9   :  { %2578 = vmatpush1.bf16.msra.mxu0 %v6992_v46 }
 0x2da   :  { %2579 = vmatprep.subr.bf16.mxu0 %v6997_v48  ;;  %v7038_v48 = vld [vmem:[#allocation14 + $0x14] ss:$8 sps:$4 sm:$0xff]  }
 0x2dd   :  { %2580 = vmatpush1.bf16.msra.mxu0 %v6995_v49  ;;  %v7036_v49 = vld [vmem:[#allocation14 + $0x10] ss:$8 sps:$4 sm:$0xff]  }
 0x2de   :  { %2581 = vmatprep.subr.bf16.mxu0 %v7000_v51  ;;  %v7039_v51 = vld [vmem:[#allocation14 + $0x20] ss:$8 sps:$4 sm:$0xff]  }
 0x2e1   :  { %2582 = vmatpush1.bf16.msra.mxu0 %v6998_v52  ;;  %v7044_v52 = vld [vmem:[#allocation14 + $0x34] ss:$8 sps:$4 sm:$0xff]  }
 0x2e4   :  { %2584 = vmatmul.mubr.bf16.vlgmr.msra.gmra.mrb[4].mxu0 %v2112_v54  ;;  %v7047_v54 = vld [vmem:[#allocation14 + $0x44] ss:$8 sps:$4 sm:$0xff]  }
 0x3b7   :  { %v2585_v3 = vpop.f32.mrb[4].mxu0 }
 0x3b8   :  { %v6437_v4 = vadd.f32 %v2585_v3, %v2183_v1  ;;  %v2587_v5 = vpop.f32.mrb[5].mxu0  ;;  %v7054_v1 = vld [vmem:[#allocation14 + $0x70] ss:$8 sps:$4 sm:$0xff]  }
 0x3b9   :  { %v6438_v6 = vadd.f32 %v2587_v5, %v2187_v2  ;;  %v2589_v7 = vpop.f32.mrb[6].mxu0  ;;  %v7445_v2 = vmov 0   ;;  %v7057_v3 = vld [vmem:[#allocation16] ss:$16 sps:$4 sm:$0xff]   ;;  %v7062_v5 = vld [vmem:[#allocation16 + $0xc] ss:$16 sps:$4 sm:$0xff]  }
 0x3ba   :  { %v2592_v8 = vmax.f32 %v6437_v4, 0.0  ;;  %v2590_v9 = vpop.f32.mrb[7].mxu0  ;;  %v7059_v4 = vld [vmem:[#allocation16 + $0x4] ss:$16 sps:$4 sm:$0xff]   ;;  %v7063_v7 = vld [vmem:[#allocation16 + $0x20] ss:$16 sps:$4 sm:$0xff]  }
 0x3bb   :  { %v2593_v10 = vmax.f32 %v6438_v6, 0.0  ;;  %v7065_v6 = vld [vmem:[#allocation16 + $0x24] ss:$16 sps:$4 sm:$0xff]   ;;  %3558 = vmatprep.subr.bf16.mxu0 %v7059_v4  ;;  %v7069_v9 = vld [vmem:[#allocation16 + $0x40] ss:$16 sps:$4 sm:$0xff]  }
 0x3bc   :  { %v2594_v15 = vpack.c.bf16 %v2592_v8, %v2592_v8  ;;  %3559 = vmatpush1.bf16.msra.mxu0 %v7057_v3  ;;  %v7071_v8 = vld [vmem:[#allocation16 + $0x44] ss:$16 sps:$4 sm:$0xff]   ;;  %v7126_v3 = vld [vmem:[#allocation16 + $0x168] ss:$16 sps:$4 sm:$0xff]   ;;  %v7134_v4 = vld [vmem:[#allocation16 + $0x18c] ss:$16 sps:$4 sm:$0xff]  }
 0x3bd   :  { %v2595_v12 = vpack.c.bf16 %v2593_v10, %v2593_v10  ;;  %3560 = vmatprep.subr.bf16.mxu0 %v7065_v6  ;;  %v7077_v10 = vld [vmem:[#allocation16 + $0x64] ss:$16 sps:$4 sm:$0xff]   ;;  %v7140_v6 = vld [vmem:[#allocation16 + $0x1ac] ss:$16 sps:$4 sm:$0xff]  }
 0x3bf   :  { %2763 = vmatprep.mubr.bf16.mxu1 %v2595_v12  ;;  %v7075_v12 = vld [vmem:[#allocation16 + $0x60] ss:$16 sps:$4 sm:$0xff]  }
 0x3c0   :  { %2764 = vmatmul.mubr.bf16.vlgmr.msra.gmra.mrb[4].mxu1 %v2594_v15  ;;  %3561 = vmatpush1.bf16.msra.mxu0 %v7063_v7  ;;  %v7081_v15 = vld [vmem:[#allocation16 + $0x80] ss:$16 sps:$4 sm:$0xff]   ;;  %v7138_v7 = vld [vmem:[#allocation16 + $0x1a8] ss:$16 sps:$4 sm:$0xff]  }
 0x3c1   :  { %6394 = vmatpush3.bf16.msra.mxu1 %v7017_v14  ;;  %6409 = vmatprep.mubr.msk.bf16.mxu1 %vm7444_vm0, %v7443_v63  ;;  %v7083_v14 = vld [vmem:[#allocation16 + $0x84] ss:$16 sps:$4 sm:$0xff]  }
 0x3c2   :  { %6395 = vmatprep.subr.bf16.mxu1 %v7443_v63  ;;  %3562 = vmatprep.subr.bf16.mxu0 %v7071_v8  ;;  %v7143_v8 = vld [vmem:[#allocation16 + $0x1c4] ss:$16 sps:$4 sm:$0xff]  }
 0x3c4   :  { %3563 = vmatpush1.bf16.msra.mxu0 %v7069_v9  ;;  %v7146_v9 = vld [vmem:[#allocation16 + $0x1cc] ss:$16 sps:$4 sm:$0xff]  }
 0x3c5   :  { %6396 = vmatpush3.bf16.msra.mxu1 %v7018_v16  ;;  %3564 = vmatprep.subr.bf16.mxu0 %v7077_v10  ;;  %v7089_v16 = vld [vmem:[#allocation16 + $0xa4] ss:$16 sps:$4 sm:$0xff]   ;;  %v7141_v10 = vld [vmem:[#allocation16 + $0x1c0] ss:$16 sps:$4 sm:$0xff]  }
 0x3c6   :  { %6397 = vmatprep.subr.bf16.mxu1 %v7443_v63 }
 0x3c8   :  { %3565 = vmatpush1.bf16.msra.mxu0 %v7075_v12  ;;  %v7144_v12 = vld [vmem:[#allocation16 + $0x1c8] ss:$16 sps:$4 sm:$0xff]  }
 0x3c9   :  { %6398 = vmatpush3.bf16.msra.mxu1 %v7019_v17  ;;  %3566 = vmatprep.subr.bf16.mxu0 %v7083_v14  ;;  %v7087_v17 = vld [vmem:[#allocation16 + $0xa0] ss:$16 sps:$4 sm:$0xff]   ;;  %v7149_v14 = vld [vmem:[#allocation16 + $0x1e4] ss:$16 sps:$4 sm:$0xff]  }
 0x3ca   :  { %6399 = vmatprep.subr.bf16.mxu1 %v7443_v63 }
 0x3cc   :  { %3567 = vmatpush1.bf16.msra.mxu0 %v7081_v15  ;;  %v7152_v15 = vld [vmem:[#allocation16 + $0x1ec] ss:$16 sps:$4 sm:$0xff]  }
 0x3cd   :  { %6400 = vmatpush3.bf16.msra.mxu1 %v7020_v18  ;;  %3568 = vmatprep.subr.bf16.mxu0 %v7089_v16  ;;  %v7095_v18 = vld [vmem:[#allocation16 + $0xc4] ss:$16 sps:$4 sm:$0xff]   ;;  %v7147_v16 = vld [vmem:[#allocation16 + $0x1e0] ss:$16 sps:$4 sm:$0xff]  }
 0x3ce   :  { %6401 = vmatprep.subr.bf16.mxu1 %v7443_v63 }
 0x3d0   :  { %3569 = vmatpush1.bf16.msra.mxu0 %v7087_v17  ;;  %v7150_v17 = vld [vmem:[#allocation16 + $0x1e8] ss:$16 sps:$4 sm:$0xff]  }
 0x3d1   :  { %6402 = vmatpush3.bf16.msra.mxu1 %v7021_v19  ;;  %v7093_v19 = vld [vmem:[#allocation16 + $0xc0] ss:$16 sps:$4 sm:$0xff]   ;;  %3570 = vmatprep.subr.bf16.mxu0 %v7095_v18 }
 0x3d2   :  { %6403 = vmatprep.subr.bf16.mxu1 %v7443_v63  ;;  %v3648_v18 = vld [vmem:[#allocation17] sm:$0xff] }
 0x3d4   :  { %3571 = vmatpush1.bf16.msra.mxu0 %v7093_v19  ;;  %v3652_v19 = vld [vmem:[#allocation17 + $0x20] sm:$0xff] }
 0x3d5   :  { %6404 = vmatpush3.bf16.msra.mxu1 %v7022_v20  ;;  %v7101_v20 = vld [vmem:[#allocation16 + $0xe4] ss:$16 sps:$4 sm:$0xff]  }
 0x3d6   :  { %6405 = vmatprep.subr.bf16.mxu1 %v7443_v63  ;;  %3572 = vmatprep.subr.bf16.mxu0 %v7101_v20  ;;  %v3649_v20 = vld [vmem:[#allocation17 + $0x8] sm:$0xff] }
 0x3d9   :  { %6406 = vmatpush3.bf16.msra.mxu1 %v7023_v21  ;;  %v7099_v21 = vld [vmem:[#allocation16 + $0xe0] ss:$16 sps:$4 sm:$0xff]  }
 0x3da   :  { %6407 = vmatprep.subr.bf16.mxu1 %v7443_v63  ;;  %3573 = vmatpush1.bf16.msra.mxu0 %v7099_v21  ;;  %v6089_v21 = vcombine.low %v3648_v18, %v3652_v19 }
 0x3dd   :  { %6408 = vmatpush3.bf16.msra.mxu1 %v7024_v11  ;;  %v7107_v11 = vld [vmem:[#allocation16 + $0x104] ss:$16 sps:$4 sm:$0xff]  }
 0x3de   :  { %6413 = vmatprep.subr.bf16.mxu1 %v7443_v63  ;;  %3574 = vmatprep.subr.bf16.mxu0 %v7107_v11  ;;  %v6090_v11 = vcombine.high %v3648_v18, %v3652_v19  ;;  %v3696_v18 = vld [vmem:[#allocation17 + $0x180] sm:$0xff] }
 0x3df   :  { %v3700_v19 = vld [vmem:[#allocation17 + $0x1a0] sm:$0xff] }
 0x493   :  { %v6369_v13 = vpop.f32.mrb[4].mxu1 }
 0x494   :  { %v6370_v23 = vpop.f32.mrb[5].mxu1 }
 0x495   :  { %v6371_v24 = vadd.f32 %v6370_v23, %v6369_v13  ;;  %v6372_v25 = vpop.f32.mrb[6].mxu1  ;;  %v7105_v13 = vld [vmem:[#allocation16 + $0x100] ss:$16 sps:$4 sm:$0xff]  }
 0x496   :  { %v6373_v26 = vpop.f32.mrb[7].mxu1  ;;  %3575 = vmatpush1.bf16.msra.mxu0 %v7105_v13  ;;  %v7111_v23 = vld [vmem:[#allocation16 + $0x120] ss:$16 sps:$4 sm:$0xff]   ;;  %v3653_v13 = vld [vmem:[#allocation17 + $0x28] sm:$0xff] }
 0x497   :  { %v2766_v27 = vadd.f32 %v6371_v24, %v5974_v22  ;;  %v7113_v22 = vld [vmem:[#allocation16 + $0x124] ss:$16 sps:$4 sm:$0xff]   ;;  %v7117_v25 = vld [vmem:[#allocation16 + $0x140] ss:$16 sps:$4 sm:$0xff]  }
 0x498   :  { %3576 = vmatprep.subr.bf16.mxu0 %v7113_v22  ;;  %v7119_v24 = vld [vmem:[#allocation16 + $0x144] ss:$16 sps:$4 sm:$0xff]   ;;  %v6091_v22 = vcombine.low %v3649_v20, %v3653_v13 }
 0x499   :  { %v2771_v28 = vmax.f32 %v2766_v27, 0.0  ;;  %v7125_v26 = vld [vmem:[#allocation16 + $0x164] ss:$16 sps:$4 sm:$0xff]   ;;  %v7123_v27 = vld [vmem:[#allocation16 + $0x160] ss:$16 sps:$4 sm:$0xff]  }
 0x49a   :  { %3577 = vmatpush1.bf16.msra.mxu0 %v7111_v23  ;;  %v6092_v23 = vcombine.high %v3649_v20, %v3653_v13  ;;  %v3697_v20 = vld [vmem:[#allocation17 + $0x188] sm:$0xff] }
 0x49b   :  { %v2772_v30 = vpack.c.bf16 %v2771_v28, %v2771_v28  ;;  %3578 = vmatprep.subr.bf16.mxu0 %v7119_v24  ;;  %v7131_v28 = vld [vmem:[#allocation16 + $0x184] ss:$16 sps:$4 sm:$0xff]  }
 0x49c   :  { %v3015_v24 = vld [vmem:[%s7928_s12] sm:$0x3] }
 0x49d   :  { %6410 = vmatmul.mubr.bf16.vlgmr.msra.gmra.mrb[8].mxu1 %v2772_v30  ;;  %v7137_v30 = vld [vmem:[#allocation16 + $0x1a4] ss:$16 sps:$4 sm:$0xff]  }
 0x49e   :  { %6414 = vmatpush3.bf16.msra.mxu1 %v7025_v29  ;;  %6429 = vmatprep.mubr.msk.bf16.mxu1 %vm7444_vm0, %v7443_v63  ;;  %v7129_v29 = vld [vmem:[#allocation16 + $0x180] ss:$16 sps:$4 sm:$0xff]  }
 0x49f   :  { %6415 = vmatprep.subr.bf16.mxu1 %v7443_v63  ;;  %3579 = vmatpush1.bf16.msra.mxu0 %v7117_v25  ;;  %v3020_v25 = vrot.slane %v3015_v24, %v7743_v59 }
 0x4a0   :  { %3580 = vmatprep.subr.bf16.mxu0 %v7125_v26  ;;  %v3024_v26 = vrot.slane %v3015_v24, %v7748_v61  ;;  %v3704_v24 = vld [vmem:[#allocation17 + $0x1c0] sm:$0xff] }
 0x4a2   :  { %6416 = vmatpush3.bf16.msra.mxu1 %v7026_v31  ;;  %v7135_v31 = vld [vmem:[#allocation16 + $0x1a0] ss:$16 sps:$4 sm:$0xff]  }
 0x4a3   :  { %6417 = vmatprep.subr.bf16.mxu1 %v7443_v63  ;;  %3581 = vmatpush1.bf16.msra.mxu0 %v7123_v27 }
 0x4a4   :  { %3582 = vmatprep.subr.bf16.mxu0 %v7131_v28 }
 0x4a6   :  { %6418 = vmatpush3.bf16.msra.mxu1 %v7027_v32  ;;  %v6000_v32 = vld [vmem:[#allocation13] ss:$0 sm:$0xff] }
 0x4a7   :  { %6419 = vmatprep.subr.bf16.mxu1 %v7443_v63  ;;  %3583 = vmatpush1.bf16.msra.mxu0 %v7129_v29 }
 0x4a8   :  { %3584 = vmatprep.subr.bf16.mxu0 %v7137_v30 }
 0x4aa   :  { %6420 = vmatpush3.bf16.msra.mxu1 %v7028_v33 }
 0x4ab   :  { %6421 = vmatprep.subr.bf16.mxu1 %v7443_v63  ;;  %3585 = vmatpush1.bf16.msra.mxu0 %v7135_v31 }
 0x4ac   :  { %3586 = vmatprep.subr.bf16.mxu0 %v7143_v8  ;;  %v3688_v8 = vld [vmem:[#allocation17 + $0x140] sm:$0xff] }
 0x4ae   :  { %6422 = vmatpush3.bf16.msra.mxu1 %v7029_v34 }
 0x4af   :  { %6423 = vmatprep.subr.bf16.mxu1 %v7443_v63  ;;  %3587 = vmatpush1.bf16.msra.mxu0 %v7141_v10  ;;  %v3689_v10 = vld [vmem:[#allocation17 + $0x148] sm:$0xff] }
 0x4b0   :  { %3588 = vmatprep.subr.bf16.mxu0 %v7149_v14 }
 0x4b2   :  { %6424 = vmatpush3.bf16.msra.mxu1 %v7030_v35 }
 0x4b3   :  { %6425 = vmatprep.subr.bf16.mxu1 %v7443_v63  ;;  %3589 = vmatpush1.bf16.msra.mxu0 %v7147_v16 }
 0x4b4   :  { %5226 = vmatprep.subr.bf16.mxu0 %v6090_v11 }
 0x4b6   :  { %6426 = vmatpush3.bf16.msra.mxu1 %v7031_v36 }
 0x4b7   :  { %6427 = vmatprep.subr.bf16.mxu1 %v7443_v63  ;;  %v7051_v63 = vld [vmem:[#allocation14 + $0x60] ss:$8 sps:$4 sm:$0xff]  }
 0x4ba   :  { %6428 = vmatpush3.bf16.msra.mxu1 %v7032_v37 }
 0x4bb   :  { %3107 = vmatprep.subr.bf16.mxu1 %v7035_v38 }
 0x570   :  { %v2878_v40 = vpop.f32.mrb[8].mxu1 }
 0x571   :  { %v2879_v41 = vadd.f32 %v5991_v39, %v2878_v40  ;;  %v6411_v42 = vpop.f32.mrb[9].mxu1  ;;  %v7060_v39 = vld [vmem:[#allocation16 + $0x8] ss:$16 sps:$4 sm:$0xff]  }
 0x572   :  { %v2881_v43 = vpop.f32.mrb[10].mxu1  ;;  %v7066_v42 = vld [vmem:[#allocation16 + $0x28] ss:$16 sps:$4 sm:$0xff]  }
 0x573   :  { %v2885_v46 = vpack.c.bf16 %v2879_v41, %v2879_v41  ;;  %2884 = vst [vmem:[#allocation19] sm:$0xff] %v2879_v41  ;;  %v6412_v47 = vpop.f32.mrb[11].mxu1  ;;  %v7068_v41 = vld [vmem:[#allocation16 + $0x2c] ss:$16 sps:$4 sm:$0xff]  }
 0x574   :  { %v7074_v43 = vld [vmem:[#allocation16 + $0x4c] ss:$16 sps:$4 sm:$0xff]   ;;  %v7078_v47 = vld [vmem:[#allocation16 + $0x68] ss:$16 sps:$4 sm:$0xff]  }
 0x575   :  { %6430 = vmatmul.mubr.bf16.vlgmr.msra.gmra.mrb[12].mxu1 %v2885_v46  ;;  %v7080_v46 = vld [vmem:[#allocation16 + $0x6c] ss:$16 sps:$4 sm:$0xff]  }
 0x576   :  { %3108 = vmatpush1.bf16.msra.mxu1 %v7033_v45  ;;  %3139 = vmatprep.mubr.bf16.mxu1 %v7445_v2  ;;  %v7072_v45 = vld [vmem:[#allocation16 + $0x48] ss:$16 sps:$4 sm:$0xff]   ;;  %v7128_v2 = vld [vmem:[#allocation16 + $0x16c] ss:$16 sps:$4 sm:$0xff]  }
 0x577   :  { %3109 = vmatprep.subr.bf16.mxu1 %v7038_v48  ;;  %v7086_v48 = vld [vmem:[#allocation16 + $0x8c] ss:$16 sps:$4 sm:$0xff]  }
 0x57a   :  { %3110 = vmatpush1.bf16.msra.mxu1 %v7036_v49  ;;  %v7084_v49 = vld [vmem:[#allocation16 + $0x88] ss:$16 sps:$4 sm:$0xff]  }
 0x57b   :  { %3111 = vmatprep.subr.bf16.mxu1 %v7041_v50  ;;  %v7092_v50 = vld [vmem:[#allocation16 + $0xac] ss:$16 sps:$4 sm:$0xff]  }
 0x57e   :  { %3112 = vmatpush1.bf16.msra.mxu1 %v7039_v51  ;;  %v7090_v51 = vld [vmem:[#allocation16 + $0xa8] ss:$16 sps:$4 sm:$0xff]  }
 0x57f   :  { %3113 = vmatprep.subr.bf16.mxu1 %v7044_v52  ;;  %v7098_v52 = vld [vmem:[#allocation16 + $0xcc] ss:$16 sps:$4 sm:$0xff]  }
 0x582   :  { %3114 = vmatpush1.bf16.msra.mxu1 %v7042_v53  ;;  %v7096_v53 = vld [vmem:[#allocation16 + $0xc8] ss:$16 sps:$4 sm:$0xff]  }
 0x583   :  { %3115 = vmatprep.subr.bf16.mxu1 %v7047_v54  ;;  %v7104_v54 = vld [vmem:[#allocation16 + $0xec] ss:$16 sps:$4 sm:$0xff]  }
 0x586   :  { %3116 = vmatpush1.bf16.msra.mxu1 %v7045_v55  ;;  %v7102_v55 = vld [vmem:[#allocation16 + $0xe8] ss:$16 sps:$4 sm:$0xff]  }
 0x587   :  { %3117 = vmatprep.subr.bf16.mxu1 %v7050_v56  ;;  %v7110_v56 = vld [vmem:[#allocation16 + $0x10c] ss:$16 sps:$4 sm:$0xff]  }
 0x58a   :  { %3118 = vmatpush1.bf16.msra.mxu1 %v7048_v57  ;;  %v7108_v57 = vld [vmem:[#allocation16 + $0x108] ss:$16 sps:$4 sm:$0xff]  }
 0x58b   :  { %3119 = vmatprep.subr.bf16.mxu1 %v7053_v60  ;;  %v7116_v60 = vld [vmem:[#allocation16 + $0x12c] ss:$16 sps:$4 sm:$0xff]  }
 0x58e   :  { %3120 = vmatpush1.bf16.msra.mxu1 %v7051_v63  ;;  %v7114_v63 = vld [vmem:[#allocation16 + $0x128] ss:$16 sps:$4 sm:$0xff]  }
 0x58f   :  { %3121 = vmatprep.subr.bf16.mxu1 %v7056_v0  ;;  %v7122_v0 = vld [vmem:[#allocation16 + $0x14c] ss:$16 sps:$4 sm:$0xff]  }
 0x592   :  { %3122 = vmatpush1.bf16.msra.mxu1 %v7054_v1  ;;  %v7120_v1 = vld [vmem:[#allocation16 + $0x148] ss:$16 sps:$4 sm:$0xff]  }
 0x593   :  { %3599 = vmatprep.subr.bf16.mxu1 %v7062_v5  ;;  %v7132_v5 = vld [vmem:[#allocation16 + $0x188] ss:$16 sps:$4 sm:$0xff]  }
 0x648   :  { %v2991_v33 = vpop.f32.mrb[12].mxu1 }
 0x649   :  { %v2992_v34 = vadd.f32 %v6000_v32, %v2991_v33  ;;  %v6431_v35 = vpop.f32.mrb[13].mxu1 }
 0x64a   :  { %v2994_v36 = vpop.f32.mrb[14].mxu1 }
 0x64b   :  { %v2997_v37 = vmax.f32 %v2992_v34, 0.0  ;;  %v6432_v38 = vpop.f32.mrb[15].mxu1  ;;  %v3656_v34 = vld [vmem:[#allocation17 + $0x40] sm:$0xff] }
 0x64c   :  { %v3660_v36 = vld [vmem:[#allocation17 + $0x60] sm:$0xff]  ;;  %v3661_v38 = vld [vmem:[#allocation17 + $0x68] sm:$0xff] }
 0x64d   :  { %v2998_v40 = vpack.c.bf16 %v2997_v37, %v2997_v37  ;;  %v3657_v37 = vld [vmem:[#allocation17 + $0x48] sm:$0xff] }
 0x64f   :  { %3140 = vmatmul.mubr.bf16.vlgmr.msra.gmra.mrb[16].mxu1 %v2998_v40 }
 0x650   :  { %3600 = vmatpush1.bf16.msra.mxu1 %v7060_v39 }
 0x651   :  { %3601 = vmatprep.subr.bf16.mxu1 %v7068_v41  ;;  %v6098_v41 = vcombine.high %v3656_v34, %v3660_v36 }
 0x654   :  { %3602 = vmatpush1.bf16.msra.mxu1 %v7066_v42  ;;  %v6100_v42 = vcombine.high %v3657_v37, %v3661_v38 }
 0x655   :  { %3603 = vmatprep.subr.bf16.mxu1 %v7074_v43  ;;  %v3664_v43 = vld [vmem:[#allocation17 + $0x80] sm:$0xff] }
 0x658   :  { %3604 = vmatpush1.bf16.msra.mxu1 %v7072_v45  ;;  %v3668_v45 = vld [vmem:[#allocation17 + $0xa0] sm:$0xff] }
 0x659   :  { %3605 = vmatprep.subr.bf16.mxu1 %v7080_v46  ;;  %v3665_v46 = vld [vmem:[#allocation17 + $0x88] sm:$0xff] }
 0x65c   :  { %3606 = vmatpush1.bf16.msra.mxu1 %v7078_v47  ;;  %v3669_v47 = vld [vmem:[#allocation17 + $0xa8] sm:$0xff] }
 0x65d   :  { %3607 = vmatprep.subr.bf16.mxu1 %v7086_v48  ;;  %v6097_v48 = vcombine.low %v3656_v34, %v3660_v36  ;;  %v3713_v34 = vld [vmem:[#allocation17 + $0x208] sm:$0xff] }
 0x660   :  { %3608 = vmatpush1.bf16.msra.mxu1 %v7084_v49  ;;  %v6099_v49 = vcombine.low %v3657_v37, %v3661_v38 }
 0x661   :  { %3609 = vmatprep.subr.bf16.mxu1 %v7092_v50  ;;  %v6106_v50 = vcombine.high %v3664_v43, %v3668_v45 }
 0x664   :  { %3610 = vmatpush1.bf16.msra.mxu1 %v7090_v51  ;;  %v6108_v51 = vcombine.high %v3665_v46, %v3669_v47 }
 0x665   :  { %3611 = vmatprep.subr.bf16.mxu1 %v7098_v52  ;;  %v3672_v52 = vld [vmem:[#allocation17 + $0xc0] sm:$0xff] }
 0x668   :  { %3612 = vmatpush1.bf16.msra.mxu1 %v7096_v53  ;;  %v3676_v53 = vld [vmem:[#allocation17 + $0xe0] sm:$0xff] }
 0x669   :  { %3613 = vmatprep.subr.bf16.mxu1 %v7104_v54  ;;  %v3673_v54 = vld [vmem:[#allocation17 + $0xc8] sm:$0xff] }
 0x66c   :  { %3614 = vmatpush1.bf16.msra.mxu1 %v7102_v55  ;;  %v3677_v55 = vld [vmem:[#allocation17 + $0xe8] sm:$0xff] }
 0x66d   :  { %3615 = vmatprep.subr.bf16.mxu1 %v7110_v56  ;;  %v6105_v56 = vcombine.low %v3664_v43, %v3668_v45  ;;  %v3725_v43 = vld [vmem:[#allocation17 + $0x268] sm:$0xff] }
 0x670   :  { %3616 = vmatpush1.bf16.msra.mxu1 %v7108_v57  ;;  %v6107_v57 = vcombine.low %v3665_v46, %v3669_v47 }
 0x671   :  { %3617 = vmatprep.subr.bf16.mxu1 %v7116_v60  ;;  %v6114_v60 = vcombine.high %v3672_v52, %v3676_v53 }
 0x674   :  { %3618 = vmatpush1.bf16.msra.mxu1 %v7114_v63  ;;  %v6116_v63 = vcombine.high %v3673_v54, %v3677_v55 }
 0x675   :  { %3619 = vmatprep.subr.bf16.mxu1 %v7122_v0  ;;  %v3680_v0 = vld [vmem:[#allocation17 + $0x100] sm:$0xff] }
 0x678   :  { %3620 = vmatpush1.bf16.msra.mxu1 %v7120_v1  ;;  %v3684_v1 = vld [vmem:[#allocation17 + $0x120] sm:$0xff] }
 0x679   :  { %3621 = vmatprep.subr.bf16.mxu1 %v7128_v2  ;;  %v3681_v2 = vld [vmem:[#allocation17 + $0x108] sm:$0xff]  ;;  %v6121_v14 = vcombine.low %v3680_v0, %v3684_v1 }
 0x67c   :  { %3622 = vmatpush1.bf16.msra.mxu1 %v7126_v3  ;;  %v3685_v3 = vld [vmem:[#allocation17 + $0x128] sm:$0xff] }
 0x67d   :  { %3623 = vmatprep.subr.bf16.mxu1 %v7134_v4  ;;  %v6113_v4 = vcombine.low %v3672_v52, %v3676_v53  ;;  %v3733_v52 = vld [vmem:[#allocation17 + $0x2a8] sm:$0xff] }
 0x680   :  { %3624 = vmatpush1.bf16.msra.mxu1 %v7132_v5  ;;  %v6115_v5 = vcombine.low %v3673_v54, %v3677_v55 }
 0x681   :  { %3625 = vmatprep.subr.bf16.mxu1 %v7140_v6  ;;  %v6122_v6 = vcombine.high %v3680_v0, %v3684_v1  ;;  %v3741_v0 = vld [vmem:[#allocation17 + $0x2e8] sm:$0xff] }
 0x684   :  { %3626 = vmatpush1.bf16.msra.mxu1 %v7138_v7  ;;  %v6124_v7 = vcombine.high %v3681_v2, %v3685_v3 }
 0x685   :  { %3627 = vmatprep.subr.bf16.mxu1 %v7146_v9  ;;  %v3692_v9 = vld [vmem:[#allocation17 + $0x160] sm:$0xff] }
 0x686   :  { %v6130_v16 = vcombine.high %v3688_v8, %v3692_v9  ;;  %v6129_v11 = vcombine.low %v3688_v8, %v3692_v9  ;;  %v3749_v8 = vld [vmem:[#allocation17 + $0x328] sm:$0xff] }
 0x688   :  { %3628 = vmatpush1.bf16.msra.mxu1 %v7144_v12  ;;  %v3693_v12 = vld [vmem:[#allocation17 + $0x168] sm:$0xff] }
 0x689   :  { %3629 = vmatprep.subr.bf16.mxu1 %v7152_v15  ;;  %v6123_v15 = vcombine.low %v3681_v2, %v3685_v3  ;;  %v6131_v13 = vcombine.low %v3689_v10, %v3693_v12 }
 0x68c   :  { %3630 = vmatpush1.bf16.msra.mxu1 %v7150_v17  ;;  %v6132_v17 = vcombine.high %v3689_v10, %v3693_v12 }
 0x68d   :  { %5308 = vmatprep.subr.bf16.mxu1 %v6092_v23 }
 0x722   :  { %v3141_v27 = vpop.f32.mrb[16].mxu1 }
 0x723   :  { %v3142_v28 = vadd.f32 %v3141_v27, %v3020_v25  ;;  %v3143_v29 = vpop.f32.mrb[17].mxu1  ;;  %v3708_v25 = vld [vmem:[#allocation17 + $0x1e0] sm:$0xff]  ;;  %v3709_v27 = vld [vmem:[#allocation17 + $0x1e8] sm:$0xff] }
 0x724   :  { %v3144_v30 = vadd.f32 %v3143_v29, %v3024_v26  ;;  %v3145_v31 = vpop.f32.mrb[18].mxu1  ;;  %v3705_v26 = vld [vmem:[#allocation17 + $0x1c8] sm:$0xff]  ;;  %v6145_v36 = vcombine.low %v3704_v24, %v3708_v25 }
 0x725   :  { %v3148_v32 = vmax.f32 %v3142_v28, 0.0  ;;  %v3146_v33 = vpop.f32.mrb[19].mxu1  ;;  %v6137_v28 = vcombine.low %v3696_v18, %v3700_v19  ;;  %v6148_v31 = vcombine.high %v3705_v26, %v3709_v27  ;;  %v6147_v37 = vcombine.low %v3705_v26, %v3709_v27  ;;  %v3765_v27 = vld [vmem:[#allocation17 + $0x3a8] sm:$0xff] }
 0x726   :  { %v3149_v35 = vmax.f32 %v3144_v30, 0.0  ;;  %v6146_v30 = vcombine.high %v3704_v24, %v3708_v25  ;;  %v3716_v33 = vld [vmem:[#allocation17 + $0x220] sm:$0xff]  ;;  %v3761_v25 = vld [vmem:[#allocation17 + $0x388] sm:$0xff] }
 0x727   :  { %v3150_v40 = vpack.c.bf16 %v3148_v32, %v3148_v32  ;;  %v3712_v32 = vld [vmem:[#allocation17 + $0x200] sm:$0xff] }
 0x728   :  { %v3151_v39 = vpack.c.bf16 %v3149_v35, %v3149_v35  ;;  %v3717_v35 = vld [vmem:[#allocation17 + $0x228] sm:$0xff]  ;;  %v6154_v38 = vcombine.high %v3712_v32, %v3716_v33  ;;  %v6153_v45 = vcombine.low %v3712_v32, %v3716_v33  ;;  %v3764_v24 = vld [vmem:[#allocation17 + $0x3a0] sm:$0xff] }
 0x729   :  { %v6155_v46 = vcombine.low %v3713_v34, %v3717_v35  ;;  %v3772_v32 = vld [vmem:[#allocation17 + $0x3e0] sm:$0xff]  ;;  %v3769_v33 = vld [vmem:[#allocation17 + $0x3c8] sm:$0xff] }
 0x72a   :  { %3590 = vmatprep.mubr.bf16.mxu0 %v3151_v39  ;;  %3631 = vmatprep.mubr.bf16.mxu1 %v3151_v39  ;;  %v6156_v39 = vcombine.high %v3713_v34, %v3717_v35  ;;  %v3773_v35 = vld [vmem:[#allocation17 + $0x3e8] sm:$0xff] }
 0x72b   :  { %3591 = vmatmul.mubr.bf16.vlgmr.msra.gmra.mrb[8].mxu0 %v3150_v40  ;;  %3632 = vmatmul.mubr.bf16.vlgmr.msra.gmra.mrb[20].mxu1 %v3150_v40  ;;  %v3720_v40 = vld [vmem:[#allocation17 + $0x240] sm:$0xff] }
 0x72c   :  { %5227 = vmatpush1.bf16.msra.mxu0 %v6089_v21  ;;  %5309 = vmatpush1.bf16.msra.mxu1 %v6091_v22  ;;  %v3701_v21 = vld [vmem:[#allocation17 + $0x1a8] sm:$0xff]  ;;  %v6138_v22 = vcombine.high %v3696_v18, %v3700_v19 }
 0x72d   :  { %5228 = vmatprep.subr.bf16.mxu0 %v6098_v41  ;;  %5310 = vmatprep.subr.bf16.mxu1 %v6100_v42  ;;  %v6140_v23 = vcombine.high %v3697_v20, %v3701_v21  ;;  %v6139_v29 = vcombine.low %v3697_v20, %v3701_v21  ;;  %v3724_v41 = vld [vmem:[#allocation17 + $0x260] sm:$0xff]  ;;  %v3721_v42 = vld [vmem:[#allocation17 + $0x248] sm:$0xff] }
 0x72e   :  { %v6162_v47 = vcombine.high %v3720_v40, %v3724_v41  ;;  %v6161_v53 = vcombine.low %v3720_v40, %v3724_v41  ;;  %v6163_v54 = vcombine.low %v3721_v42, %v3725_v43  ;;  %v3757_v18 = vld [vmem:[#allocation17 + $0x368] sm:$0xff]  ;;  %v3780_v40 = vld [vmem:[#allocation17 + $0x420] sm:$0xff] }
 0x72f   :  { %v3777_v41 = vld [vmem:[#allocation17 + $0x408] sm:$0xff] }
 0x730   :  { %5229 = vmatpush1.bf16.msra.mxu0 %v6097_v48  ;;  %5311 = vmatpush1.bf16.msra.mxu1 %v6099_v49  ;;  %v6164_v48 = vcombine.high %v3721_v42, %v3725_v43  ;;  %v3728_v49 = vld [vmem:[#allocation17 + $0x280] sm:$0xff]  ;;  %v3781_v43 = vld [vmem:[#allocation17 + $0x428] sm:$0xff] }
 0x731   :  { %5230 = vmatprep.subr.bf16.mxu0 %v6106_v50  ;;  %5312 = vmatprep.subr.bf16.mxu1 %v6108_v51  ;;  %v3732_v50 = vld [vmem:[#allocation17 + $0x2a0] sm:$0xff]  ;;  %v3729_v51 = vld [vmem:[#allocation17 + $0x288] sm:$0xff] }
 0x732   :  { %v6170_v55 = vcombine.high %v3728_v49, %v3732_v50  ;;  %v6169_v1 = vcombine.low %v3728_v49, %v3732_v50  ;;  %v6171_v2 = vcombine.low %v3729_v51, %v3733_v52 }
 0x734   :  { %5231 = vmatpush1.bf16.msra.mxu0 %v6105_v56  ;;  %5313 = vmatpush1.bf16.msra.mxu1 %v6107_v57  ;;  %v6172_v56 = vcombine.high %v3729_v51, %v3733_v52  ;;  %v3736_v57 = vld [vmem:[#allocation17 + $0x2c0] sm:$0xff] }
 0x735   :  { %5232 = vmatprep.subr.bf16.mxu0 %v6114_v60  ;;  %5314 = vmatprep.subr.bf16.mxu1 %v6116_v63  ;;  %v3740_v60 = vld [vmem:[#allocation17 + $0x2e0] sm:$0xff]  ;;  %v3737_v63 = vld [vmem:[#allocation17 + $0x2c8] sm:$0xff] }
 0x736   :  { %v6178_v3 = vcombine.high %v3736_v57, %v3740_v60  ;;  %v6177_v9 = vcombine.low %v3736_v57, %v3740_v60  ;;  %v6179_v10 = vcombine.low %v3737_v63, %v3741_v0 }
 0x738   :  { %5233 = vmatpush1.bf16.msra.mxu0 %v6113_v4  ;;  %5315 = vmatpush1.bf16.msra.mxu1 %v6115_v5  ;;  %v6180_v4 = vcombine.high %v3737_v63, %v3741_v0  ;;  %v3744_v5 = vld [vmem:[#allocation17 + $0x300] sm:$0xff] }
 0x739   :  { %5234 = vmatprep.subr.bf16.mxu0 %v6122_v6  ;;  %5316 = vmatprep.subr.bf16.mxu1 %v6124_v7  ;;  %v3748_v6 = vld [vmem:[#allocation17 + $0x320] sm:$0xff]  ;;  %v3745_v7 = vld [vmem:[#allocation17 + $0x308] sm:$0xff] }
 0x73a   :  { %v6186_v12 = vcombine.high %v3744_v5, %v3748_v6  ;;  %v6185_v19 = vcombine.low %v3744_v5, %v3748_v6  ;;  %v6187_v20 = vcombine.low %v3745_v7, %v3749_v8  ;;  %v3784_v5 = vld [vmem:[#allocation17 + $0x440] sm:$0xff] }
 0x73c   :  { %5235 = vmatpush1.bf16.msra.mxu0 %v6121_v14  ;;  %5317 = vmatpush1.bf16.msra.mxu1 %v6123_v15  ;;  %v6188_v14 = vcombine.high %v3745_v7, %v3749_v8  ;;  %v3752_v15 = vld [vmem:[#allocation17 + $0x340] sm:$0xff]  ;;  %v3785_v8 = vld [vmem:[#allocation17 + $0x448] sm:$0xff] }
 0x73d   :  { %5236 = vmatprep.subr.bf16.mxu0 %v6130_v16  ;;  %5318 = vmatprep.subr.bf16.mxu1 %v6132_v17  ;;  %v3756_v16 = vld [vmem:[#allocation17 + $0x360] sm:$0xff]  ;;  %v3753_v17 = vld [vmem:[#allocation17 + $0x348] sm:$0xff] }
 0x73e   :  { %v6194_v21 = vcombine.high %v3752_v15, %v3756_v16  ;;  %v3788_v7 = vld [vmem:[#allocation17 + $0x460] sm:$0xff] }
 0x740   :  { %5237 = vmatpush1.bf16.msra.mxu0 %v6129_v11  ;;  %5319 = vmatpush1.bf16.msra.mxu1 %v6131_v13  ;;  %v6196_v11 = vcombine.high %v3753_v17, %v3757_v18  ;;  %v6193_v13 = vcombine.low %v3752_v15, %v3756_v16  ;;  %v6226_v15 = vcombine.high %v3784_v5, %v3788_v7 }
 0x741   :  { %5238 = vmatprep.subr.bf16.mxu0 %v6138_v22  ;;  %5320 = vmatprep.subr.bf16.mxu1 %v6140_v23  ;;  %v6195_v22 = vcombine.low %v3753_v17, %v3757_v18  ;;  %v3760_v23 = vld [vmem:[#allocation17 + $0x380] sm:$0xff]  ;;  %v3793_v18 = vld [vmem:[#allocation17 + $0x488] sm:$0xff] }
 0x742   :  { %v6202_v26 = vcombine.high %v3760_v23, %v3764_v24  ;;  %v3796_v17 = vld [vmem:[#allocation17 + $0x4a0] sm:$0xff] }
 0x744   :  { %5239 = vmatpush1.bf16.msra.mxu0 %v6137_v28  ;;  %5321 = vmatpush1.bf16.msra.mxu1 %v6139_v29  ;;  %v6201_v28 = vcombine.low %v3760_v23, %v3764_v24  ;;  %v6203_v29 = vcombine.low %v3761_v25, %v3765_v27  ;;  %v3800_v23 = vld [vmem:[#allocation17 + $0x4c0] sm:$0xff] }
 0x745   :  { %5240 = vmatprep.subr.bf16.mxu0 %v6146_v30  ;;  %5322 = vmatprep.subr.bf16.mxu1 %v6148_v31  ;;  %v6204_v30 = vcombine.high %v3761_v25, %v3765_v27  ;;  %v3768_v31 = vld [vmem:[#allocation17 + $0x3c0] sm:$0xff]  ;;  %v3801_v25 = vld [vmem:[#allocation17 + $0x4c8] sm:$0xff] }
 0x746   :  { %v6210_v34 = vcombine.high %v3768_v31, %v3772_v32  ;;  %v3804_v24 = vld [vmem:[#allocation17 + $0x4e0] sm:$0xff] }
 0x748   :  { %5241 = vmatpush1.bf16.msra.mxu0 %v6145_v36  ;;  %5323 = vmatpush1.bf16.msra.mxu1 %v6147_v37  ;;  %v6209_v36 = vcombine.low %v3768_v31, %v3772_v32  ;;  %v6211_v37 = vcombine.low %v3769_v33, %v3773_v35  ;;  %v3808_v31 = vld [vmem:[#allocation17 + $0x500] sm:$0xff] }
 0x749   :  { %5242 = vmatprep.subr.bf16.mxu0 %v6154_v38  ;;  %5324 = vmatprep.subr.bf16.mxu1 %v6156_v39  ;;  %v6212_v38 = vcombine.high %v3769_v33, %v3773_v35  ;;  %v3776_v39 = vld [vmem:[#allocation17 + $0x400] sm:$0xff]  ;;  %v3809_v33 = vld [vmem:[#allocation17 + $0x508] sm:$0xff]  ;;  %v6241_v35 = vcombine.low %v3800_v23, %v3804_v24 }
 0x74a   :  { %v6218_v42 = vcombine.high %v3776_v39, %v3780_v40  ;;  %v3812_v32 = vld [vmem:[#allocation17 + $0x520] sm:$0xff] }
 0x74c   :  { %5243 = vmatpush1.bf16.msra.mxu0 %v6153_v45  ;;  %5325 = vmatpush1.bf16.msra.mxu1 %v6155_v46  ;;  %v6217_v45 = vcombine.low %v3776_v39, %v3780_v40  ;;  %v6219_v46 = vcombine.low %v3777_v41, %v3781_v43  ;;  %v3816_v39 = vld [vmem:[#allocation17 + $0x540] sm:$0xff] }
 0x74d   :  { %5244 = vmatprep.subr.bf16.mxu0 %v6162_v47  ;;  %5326 = vmatprep.subr.bf16.mxu1 %v6164_v48  ;;  %v6220_v47 = vcombine.high %v3777_v41, %v3781_v43  ;;  %v7834_v48 = vld [vmem:[%s7930_s14] sm:$0xf]  ;;  %v3820_v40 = vld [vmem:[#allocation17 + $0x560] sm:$0xff]  ;;  %v3817_v41 = vld [vmem:[#allocation17 + $0x548] sm:$0xff]  ;;  %v6249_v43 = vcombine.low %v3808_v31, %v3812_v32 }
 0x74e   :  { %v3221_v49 = vrot.slane %v7834_v48, %v7743_v59  ;;  %v3225_v50 = vrot.slane %v7834_v48, %v7748_v61  ;;  %v3233_v51 = vrot.slane %v7834_v48, %v7751_v62 }
 0x750   :  { %5245 = vmatpush1.bf16.msra.mxu0 %v6161_v53  ;;  %5327 = vmatpush1.bf16.msra.mxu1 %v6163_v54 }
 0x751   :  { %5246 = vmatprep.subr.bf16.mxu0 %v6170_v55  ;;  %5328 = vmatprep.subr.bf16.mxu1 %v6172_v56 }
 0x754   :  { %5247 = vmatpush1.bf16.msra.mxu0 %v6169_v1  ;;  %5329 = vmatpush1.bf16.msra.mxu1 %v6171_v2 }
 0x755   :  { %5248 = vmatprep.subr.bf16.mxu0 %v6178_v3  ;;  %5330 = vmatprep.subr.bf16.mxu1 %v6180_v4 }
 0x758   :  { %5249 = vmatpush1.bf16.msra.mxu0 %v6177_v9  ;;  %5331 = vmatpush1.bf16.msra.mxu1 %v6179_v10  ;;  %v3789_v9 = vld [vmem:[#allocation17 + $0x468] sm:$0xff] }
 0x759   :  { %5250 = vmatprep.subr.bf16.mxu0 %v6186_v12  ;;  %5332 = vmatprep.subr.bf16.mxu1 %v6188_v14  ;;  %v3792_v14 = vld [vmem:[#allocation17 + $0x480] sm:$0xff]  ;;  %v6228_v16 = vcombine.high %v3785_v8, %v3789_v9 }
 0x75a   :  { %v6233_v27 = vcombine.low %v3792_v14, %v3796_v17 }
 0x75c   :  { %5251 = vmatpush1.bf16.msra.mxu0 %v6185_v19  ;;  %5333 = vmatpush1.bf16.msra.mxu1 %v6187_v20  ;;  %v3797_v19 = vld [vmem:[#allocation17 + $0x4a8] sm:$0xff] }
 0x75d   :  { %5252 = vmatprep.subr.bf16.mxu0 %v6194_v21  ;;  %5334 = vmatprep.subr.bf16.mxu1 %v6196_v11  ;;  %v6225_v21 = vcombine.low %v3784_v5, %v3788_v7  ;;  %v6227_v11 = vcombine.low %v3785_v8, %v3789_v9  ;;  %v3844_v7 = vld [vmem:[#allocation17 + $0x620] sm:$0xff]  ;;  %v3841_v8 = vld [vmem:[#allocation17 + $0x608] sm:$0xff] }
 0x75e   :  { %v3845_v9 = vld [vmem:[#allocation17 + $0x628] sm:$0xff] }
 0x760   :  { %5253 = vmatpush1.bf16.msra.mxu0 %v6193_v13  ;;  %5335 = vmatpush1.bf16.msra.mxu1 %v6195_v22  ;;  %v6234_v13 = vcombine.high %v3792_v14, %v3796_v17  ;;  %v6236_v22 = vcombine.high %v3793_v18, %v3797_v19  ;;  %v6284_v17 = vcombine.high %v3841_v8, %v3845_v9 }
 0x761   :  { %5254 = vmatprep.subr.bf16.mxu0 %v6202_v26  ;;  %5336 = vmatprep.subr.bf16.mxu1 %v6204_v30  ;;  %v3805_v26 = vld [vmem:[#allocation17 + $0x4e8] sm:$0xff] }
 0x762   :  { %v6244_v30 = vcombine.high %v3801_v25, %v3805_v26 }
 0x764   :  { %5255 = vmatpush1.bf16.msra.mxu0 %v6201_v28  ;;  %5337 = vmatpush1.bf16.msra.mxu1 %v6203_v29  ;;  %v6235_v28 = vcombine.low %v3793_v18, %v3797_v19  ;;  %v6242_v29 = vcombine.high %v3800_v23, %v3804_v24  ;;  %v3848_v18 = vld [vmem:[#allocation17 + $0x640] sm:$0xff] }
 0x765   :  { %5256 = vmatprep.subr.bf16.mxu0 %v6210_v34  ;;  %5338 = vmatprep.subr.bf16.mxu1 %v6212_v38  ;;  %v3813_v34 = vld [vmem:[#allocation17 + $0x528] sm:$0xff]  ;;  %v3852_v19 = vld [vmem:[#allocation17 + $0x660] sm:$0xff] }
 0x766   :  { %v6252_v38 = vcombine.high %v3809_v33, %v3813_v34  ;;  %v6290_v23 = vcombine.high %v3848_v18, %v3852_v19 }
 0x768   :  { %5257 = vmatpush1.bf16.msra.mxu0 %v6209_v36  ;;  %5339 = vmatpush1.bf16.msra.mxu1 %v6211_v37  ;;  %v6243_v36 = vcombine.low %v3801_v25, %v3805_v26  ;;  %v6250_v37 = vcombine.high %v3808_v31, %v3812_v32  ;;  %v3856_v25 = vld [vmem:[#allocation17 + $0x680] sm:$0xff] }
 0x769   :  { %5267 = vmatprep.subr.bf16.mxu0 %v6218_v42  ;;  %5349 = vmatprep.subr.bf16.mxu1 %v6220_v47  ;;  %v3821_v42 = vld [vmem:[#allocation17 + $0x568] sm:$0xff]  ;;  %v3860_v26 = vld [vmem:[#allocation17 + $0x6a0] sm:$0xff] }
 0x76a   :  { %v6260_v47 = vcombine.high %v3817_v41, %v3821_v42  ;;  %v6298_v31 = vcombine.high %v3856_v25, %v3860_v26 }
 0x7fe   :  { %v3592_v52 = vpop.f32.mrb[8].mxu0  ;;  %v7842_v53 = vpop.f32.mrb[20].mxu1 }
 0x7ff   :  { %v3593_v54 = vadd.f32 %v3592_v52, %v3221_v49  ;;  %v3594_v55 = vpop.f32.mrb[9].mxu0  ;;  %v3635_v56 = vpop.f32.mrb[21].mxu1  ;;  %v3824_v49 = vld [vmem:[#allocation17 + $0x580] sm:$0xff]  ;;  %v3829_v52 = vld [vmem:[#allocation17 + $0x5a8] sm:$0xff] }
 0x800   :  { %v3595_v57 = vadd.f32 %v3594_v55, %v3225_v50  ;;  %v3636_v60 = vadd.f32 %v3635_v56, %v3233_v51  ;;  %v3596_v63 = vpop.f32.mrb[10].mxu0  ;;  %v3637_v0 = vpop.f32.mrb[22].mxu1  ;;  %v3828_v50 = vld [vmem:[#allocation17 + $0x5a0] sm:$0xff]  ;;  %v3825_v51 = vld [vmem:[#allocation17 + $0x588] sm:$0xff]  ;;  %v6259_v55 = vcombine.low %v3817_v41, %v3821_v42 }
 0x801   :  { %v3640_v1 = vmax.f32 %v3593_v54, 0.0  ;;  %v3597_v2 = vpop.f32.mrb[11].mxu0  ;;  %v3638_v3 = vpop.f32.mrb[23].mxu1  ;;  %v6257_v54 = vcombine.low %v3816_v39, %v3820_v40  ;;  %v6266_v56 = vcombine.high %v3824_v49, %v3828_v50  ;;  %v3836_v63 = vld [vmem:[#allocation17 + $0x5e0] sm:$0xff]  ;;  %v3833_v0 = vld [vmem:[#allocation17 + $0x5c8] sm:$0xff] }
 0x802   :  { %v3641_v4 = vmax.f32 %v3595_v57, 0.0  ;;  %v3643_v6 = vmax.f32 %v3636_v60, 0.0  ;;  %v6268_v57 = vcombine.high %v3825_v51, %v3829_v52  ;;  %v3832_v60 = vld [vmem:[#allocation17 + $0x5c0] sm:$0xff]  ;;  %v6265_v2 = vcombine.low %v3824_v49, %v3828_v50 }
 0x803   :  { %v7846_v12 = vpack.c.bf16 %v3640_v1, %v3640_v1  ;;  %v3837_v1 = vld [vmem:[#allocation17 + $0x5e8] sm:$0xff]  ;;  %v6267_v3 = vcombine.low %v3825_v51, %v3829_v52  ;;  %v6273_v14 = vcombine.low %v3832_v60, %v3836_v63  ;;  %v3872_v41 = vld [vmem:[#allocation17 + $0x700] sm:$0xff] }
 0x804   :  { %v7844_v10 = vpack.c.bf16 %v3641_v4, %v3641_v4  ;;  %v7850_v20 = vpack.c.bf16 %v3643_v6, %v3643_v6  ;;  %v6274_v4 = vcombine.high %v3832_v60, %v3836_v63  ;;  %v6276_v5 = vcombine.high %v3833_v0, %v3837_v1  ;;  %v3840_v6 = vld [vmem:[#allocation17 + $0x600] sm:$0xff] }
 0x805   :  { %v3876_v42 = vld [vmem:[#allocation17 + $0x720] sm:$0xff] }
 0x806   :  { %5258 = vmatprep.mubr.bf16.mxu0 %v7844_v10  ;;  %5340 = vmatprep.mubr.bf16.mxu1 %v7844_v10  ;;  %v6314_v49 = vcombine.high %v3872_v41, %v3876_v42  ;;  %v3880_v51 = vld [vmem:[#allocation17 + $0x740] sm:$0xff] }
 0x807   :  { %5259 = vmatmul.mubr.bf16.vlgmr.msra.gmra.mrb[12].mxu0 %v7846_v12  ;;  %5341 = vmatmul.mubr.bf16.vlgmr.msra.gmra.mrb[24].mxu1 %v7846_v12  ;;  %v3884_v52 = vld [vmem:[#allocation17 + $0x760] sm:$0xff] }
 0x808   :  { %5268 = vmatpush1.bf16.msra.mxu0 %v6217_v45  ;;  %5350 = vmatpush1.bf16.msra.mxu1 %v6219_v46  ;;  %v6251_v45 = vcombine.low %v3809_v33, %v3813_v34  ;;  %v6258_v46 = vcombine.high %v3816_v39, %v3820_v40  ;;  %v3864_v33 = vld [vmem:[#allocation17 + $0x6c0] sm:$0xff]  ;;  %v6322_v60 = vcombine.high %v3880_v51, %v3884_v52 }
 0x809   :  { %5299 = vmatprep.mubr.bf16.mxu0 %v7850_v20  ;;  %5381 = vmatprep.mubr.bf16.mxu1 %v7850_v20  ;;  %v3868_v34 = vld [vmem:[#allocation17 + $0x6e0] sm:$0xff] }
 0x80a   :  { %5269 = vmatprep.subr.bf16.mxu0 %v6226_v15  ;;  %5351 = vmatprep.subr.bf16.mxu1 %v6228_v16  ;;  %v6275_v15 = vcombine.low %v3833_v0, %v3837_v1  ;;  %v6282_v16 = vcombine.high %v3840_v6, %v3844_v7  ;;  %v6306_v39 = vcombine.high %v3864_v33, %v3868_v34  ;;  %v3888_v0 = vld [vmem:[#allocation17 + $0x780] sm:$0xff] }
 0x80b   :  { %v3892_v1 = vld [vmem:[#allocation17 + $0x7a0] sm:$0xff] }
 0x80c   :  { %5270 = vmatpush1.bf16.msra.mxu0 %v6225_v21  ;;  %5352 = vmatpush1.bf16.msra.mxu1 %v6227_v11  ;;  %v3849_v21 = vld [vmem:[#allocation17 + $0x648] sm:$0xff] }
 0x80d   :  { %5271 = vmatprep.subr.bf16.mxu0 %v6234_v13  ;;  %5353 = vmatprep.subr.bf16.mxu1 %v6236_v22  ;;  %v3853_v11 = vld [vmem:[#allocation17 + $0x668] sm:$0xff]  ;;  %v6281_v13 = vcombine.low %v3840_v6, %v3844_v7  ;;  %v6283_v22 = vcombine.low %v3841_v8, %v3845_v9  ;;  %v3229_v6 = vrot.slane %v7834_v48, %v7762_v44  ;;  %v3896_v9 = vld [vmem:[#allocation17 + $0x7c0] sm:$0xff]  ;;  %v3654_v48 = vld [vmem:[#allocation17 + $0x30] sm:$0xff] }
 0x80e   :  { %v6292_v24 = vcombine.high %v3849_v21, %v3853_v11  ;;  %v6330_v7 = vcombine.high %v3888_v0, %v3892_v1 }
 0x810   :  { %5272 = vmatpush1.bf16.msra.mxu0 %v6233_v27  ;;  %5354 = vmatpush1.bf16.msra.mxu1 %v6235_v28  ;;  %v3857_v27 = vld [vmem:[#allocation17 + $0x688] sm:$0xff] }
 0x811   :  { %5273 = vmatprep.subr.bf16.mxu0 %v6242_v29  ;;  %5355 = vmatprep.subr.bf16.mxu1 %v6244_v30  ;;  %v3861_v28 = vld [vmem:[#allocation17 + $0x6a8] sm:$0xff]  ;;  %v6289_v29 = vcombine.low %v3848_v18, %v3852_v19  ;;  %v6291_v30 = vcombine.low %v3849_v21, %v3853_v11  ;;  %v3634_v19 = vadd.f32 %v7842_v53, %v3229_v6  ;;  %v3659_v53 = vld [vmem:[#allocation17 + $0x58] sm:$0xff] }
 0x812   :  { %v6300_v32 = vcombine.high %v3857_v27, %v3861_v28  ;;  %v3695_v6 = vld [vmem:[#allocation17 + $0x178] sm:$0xff] }
 0x814   :  { %5274 = vmatpush1.bf16.msra.mxu0 %v6241_v35  ;;  %5356 = vmatpush1.bf16.msra.mxu1 %v6243_v36  ;;  %v3865_v35 = vld [vmem:[#allocation17 + $0x6c8] sm:$0xff] }
 0x815   :  { %5275 = vmatprep.subr.bf16.mxu0 %v6250_v37  ;;  %5357 = vmatprep.subr.bf16.mxu1 %v6252_v38  ;;  %v3869_v36 = vld [vmem:[#allocation17 + $0x6e8] sm:$0xff]  ;;  %v6297_v37 = vcombine.low %v3856_v25, %v3860_v26  ;;  %v6299_v38 = vcombine.low %v3857_v27, %v3861_v28  ;;  %v3642_v26 = vmax.f32 %v3634_v19, 0.0 }
 0x816   :  { %v6308_v40 = vcombine.high %v3865_v35, %v3869_v36 }
 0x818   :  { %5276 = vmatpush1.bf16.msra.mxu0 %v6249_v43  ;;  %5358 = vmatpush1.bf16.msra.mxu1 %v6251_v45  ;;  %v3873_v43 = vld [vmem:[#allocation17 + $0x708] sm:$0xff] }
 0x819   :  { %5277 = vmatprep.subr.bf16.mxu0 %v6258_v46  ;;  %5359 = vmatprep.subr.bf16.mxu1 %v6260_v47  ;;  %v3877_v45 = vld [vmem:[#allocation17 + $0x728] sm:$0xff]  ;;  %v6305_v46 = vcombine.low %v3864_v33, %v3868_v34  ;;  %v6307_v47 = vcombine.low %v3865_v35, %v3869_v36  ;;  %v7859_v33 = vpack.c.bf16 %v3642_v26, %v3642_v26 }
 0x81a   :  { %v6316_v50 = vcombine.high %v3873_v43, %v3877_v45 }
 0x81c   :  { %5278 = vmatpush1.bf16.msra.mxu0 %v6257_v54  ;;  %5360 = vmatpush1.bf16.msra.mxu1 %v6259_v55  ;;  %v3881_v54 = vld [vmem:[#allocation17 + $0x748] sm:$0xff] }
 0x81d   :  { %5279 = vmatprep.subr.bf16.mxu0 %v6266_v56  ;;  %5361 = vmatprep.subr.bf16.mxu1 %v6268_v57  ;;  %v3885_v55 = vld [vmem:[#allocation17 + $0x768] sm:$0xff]  ;;  %v6313_v56 = vcombine.low %v3872_v41, %v3876_v42  ;;  %v6315_v57 = vcombine.low %v3873_v43, %v3877_v45 }
 0x81e   :  { %v6324_v63 = vcombine.high %v3881_v54, %v3885_v55 }
 0x820   :  { %5280 = vmatpush1.bf16.msra.mxu0 %v6265_v2  ;;  %5362 = vmatpush1.bf16.msra.mxu1 %v6267_v3  ;;  %v3889_v2 = vld [vmem:[#allocation17 + $0x788] sm:$0xff] }
 0x821   :  { %5281 = vmatprep.subr.bf16.mxu0 %v6274_v4  ;;  %5363 = vmatprep.subr.bf16.mxu1 %v6276_v5  ;;  %v3893_v3 = vld [vmem:[#allocation17 + $0x7a8] sm:$0xff]  ;;  %v6321_v4 = vcombine.low %v3880_v51, %v3884_v52  ;;  %v6323_v5 = vcombine.low %v3881_v54, %v3885_v55 }
 0x822   :  { %v6332_v8 = vcombine.high %v3889_v2, %v3893_v3  ;;  %v6331_v18 = vcombine.low %v3889_v2, %v3893_v3  ;;  %v3690_v3 = vld [vmem:[#allocation17 + $0x150] sm:$0xff] }
 0x824   :  { %5282 = vmatpush1.bf16.msra.mxu0 %v6273_v14  ;;  %5364 = vmatpush1.bf16.msra.mxu1 %v6275_v15  ;;  %v3900_v14 = vld [vmem:[#allocation17 + $0x7e0] sm:$0xff]  ;;  %v3897_v15 = vld [vmem:[#allocation17 + $0x7c8] sm:$0xff] }
 0x825   :  { %5283 = vmatprep.subr.bf16.mxu0 %v6282_v16  ;;  %5365 = vmatprep.subr.bf16.mxu1 %v6284_v17  ;;  %v3901_v16 = vld [vmem:[#allocation17 + $0x7e8] sm:$0xff]  ;;  %v6329_v17 = vcombine.low %v3888_v0, %v3892_v1  ;;  %v6338_v21 = vcombine.high %v3896_v9, %v3900_v14 }
 0x826   :  { %v6340_v11 = vcombine.high %v3897_v15, %v3901_v16  ;;  %v6339_v25 = vcombine.low %v3897_v15, %v3901_v16  ;;  %v3698_v15 = vld [vmem:[#allocation17 + $0x190] sm:$0xff] }
 0x827   :  { %v3702_v16 = vld [vmem:[#allocation17 + $0x1b0] sm:$0xff] }
 0x828   :  { %5284 = vmatpush1.bf16.msra.mxu0 %v6281_v13  ;;  %5366 = vmatpush1.bf16.msra.mxu1 %v6283_v22  ;;  %v3650_v13 = vld [vmem:[#allocation17 + $0x10] sm:$0xff]  ;;  %v3651_v22 = vld [vmem:[#allocation17 + $0x18] sm:$0xff] }
 0x829   :  { %5285 = vmatprep.subr.bf16.mxu0 %v6290_v23  ;;  %5367 = vmatprep.subr.bf16.mxu1 %v6292_v24  ;;  %v3655_v23 = vld [vmem:[#allocation17 + $0x38] sm:$0xff]  ;;  %v6337_v24 = vcombine.low %v3896_v9, %v3900_v14  ;;  %v6094_v27 = vcombine.high %v3650_v13, %v3654_v48 }
 0x82a   :  { %v6096_v28 = vcombine.high %v3651_v22, %v3655_v23  ;;  %v6095_v34 = vcombine.low %v3651_v22, %v3655_v23  ;;  %v3710_v22 = vld [vmem:[#allocation17 + $0x1f0] sm:$0xff]  ;;  %v3707_v23 = vld [vmem:[#allocation17 + $0x1d8] sm:$0xff] }
 0x82c   :  { %5286 = vmatpush1.bf16.msra.mxu0 %v6289_v29  ;;  %5368 = vmatpush1.bf16.msra.mxu1 %v6291_v30  ;;  %v3658_v29 = vld [vmem:[#allocation17 + $0x50] sm:$0xff] }
 0x82d   :  { %5287 = vmatprep.subr.bf16.mxu0 %v6298_v31  ;;  %5369 = vmatprep.subr.bf16.mxu1 %v6300_v32  ;;  %v3662_v30 = vld [vmem:[#allocation17 + $0x70] sm:$0xff]  ;;  %v3663_v31 = vld [vmem:[#allocation17 + $0x78] sm:$0xff]  ;;  %v6093_v32 = vcombine.low %v3650_v13, %v3654_v48 }
 0x82e   :  { %v6102_v35 = vcombine.high %v3658_v29, %v3662_v30  ;;  %v6104_v36 = vcombine.high %v3659_v53, %v3663_v31  ;;  %v6101_v41 = vcombine.low %v3658_v29, %v3662_v30  ;;  %v6103_v42 = vcombine.low %v3659_v53, %v3663_v31  ;;  %v3706_v48 = vld [vmem:[#allocation17 + $0x1d0] sm:$0xff]  ;;  %v3715_v53 = vld [vmem:[#allocation17 + $0x218] sm:$0xff] }
 0x82f   :  { %v3714_v29 = vld [vmem:[#allocation17 + $0x210] sm:$0xff]  ;;  %v3719_v31 = vld [vmem:[#allocation17 + $0x238] sm:$0xff] }
 0x830   :  { %5288 = vmatpush1.bf16.msra.mxu0 %v6297_v37  ;;  %5370 = vmatpush1.bf16.msra.mxu1 %v6299_v38  ;;  %v3666_v37 = vld [vmem:[#allocation17 + $0x90] sm:$0xff] }
 0x831   :  { %5289 = vmatprep.subr.bf16.mxu0 %v6306_v39  ;;  %5371 = vmatprep.subr.bf16.mxu1 %v6308_v40  ;;  %v3670_v38 = vld [vmem:[#allocation17 + $0xb0] sm:$0xff]  ;;  %v3667_v39 = vld [vmem:[#allocation17 + $0x98] sm:$0xff] }
 0x832   :  { %v3671_v40 = vld [vmem:[#allocation17 + $0xb8] sm:$0xff]  ;;  %v6110_v43 = vcombine.high %v3666_v37, %v3670_v38  ;;  %v6109_v51 = vcombine.low %v3666_v37, %v3670_v38  ;;  %v3718_v30 = vld [vmem:[#allocation17 + $0x230] sm:$0xff] }
 0x833   :  { %v6112_v45 = vcombine.high %v3667_v39, %v3671_v40  ;;  %v6111_v52 = vcombine.low %v3667_v39, %v3671_v40  ;;  %v3722_v37 = vld [vmem:[#allocation17 + $0x250] sm:$0xff]  ;;  %v3723_v39 = vld [vmem:[#allocation17 + $0x258] sm:$0xff] }
 0x834   :  { %5290 = vmatpush1.bf16.msra.mxu0 %v6305_v46  ;;  %5372 = vmatpush1.bf16.msra.mxu1 %v6307_v47  ;;  %v3674_v46 = vld [vmem:[#allocation17 + $0xd0] sm:$0xff]  ;;  %v3727_v40 = vld [vmem:[#allocation17 + $0x278] sm:$0xff] }
 0x835   :  { %5291 = vmatprep.subr.bf16.mxu0 %v6314_v49  ;;  %5373 = vmatprep.subr.bf16.mxu1 %v6316_v50  ;;  %v3678_v47 = vld [vmem:[#allocation17 + $0xf0] sm:$0xff]  ;;  %v3675_v49 = vld [vmem:[#allocation17 + $0xd8] sm:$0xff] }
 0x836   :  { %v3679_v50 = vld [vmem:[#allocation17 + $0xf8] sm:$0xff]  ;;  %v6118_v54 = vcombine.high %v3674_v46, %v3678_v47  ;;  %v3726_v38 = vld [vmem:[#allocation17 + $0x270] sm:$0xff] }
 0x837   :  { %v6120_v55 = vcombine.high %v3675_v49, %v3679_v50  ;;  %v6119_v0 = vcombine.low %v3675_v49, %v3679_v50  ;;  %v3731_v49 = vld [vmem:[#allocation17 + $0x298] sm:$0xff] }
 0x838   :  { %5292 = vmatpush1.bf16.msra.mxu0 %v6313_v56  ;;  %5374 = vmatpush1.bf16.msra.mxu1 %v6315_v57  ;;  %v3682_v56 = vld [vmem:[#allocation17 + $0x110] sm:$0xff]  ;;  %v3735_v50 = vld [vmem:[#allocation17 + $0x2b8] sm:$0xff] }
 0x839   :  { %5293 = vmatprep.subr.bf16.mxu0 %v6322_v60  ;;  %5375 = vmatprep.subr.bf16.mxu1 %v6324_v63  ;;  %v3686_v57 = vld [vmem:[#allocation17 + $0x130] sm:$0xff]  ;;  %v3687_v60 = vld [vmem:[#allocation17 + $0x138] sm:$0xff]  ;;  %v6117_v63 = vcombine.low %v3674_v46, %v3678_v47 }
 0x83a   :  { %v6126_v1 = vcombine.high %v3682_v56, %v3686_v57  ;;  %v3730_v46 = vld [vmem:[#allocation17 + $0x290] sm:$0xff] }
 0x83b   :  { %v3734_v47 = vld [vmem:[#allocation17 + $0x2b0] sm:$0xff] }
 0x83c   :  { %5294 = vmatpush1.bf16.msra.mxu0 %v6321_v4  ;;  %5376 = vmatpush1.bf16.msra.mxu1 %v6323_v5  ;;  %v3694_v4 = vld [vmem:[#allocation17 + $0x170] sm:$0xff]  ;;  %v3691_v5 = vld [vmem:[#allocation17 + $0x158] sm:$0xff] }
 0x83d   :  { %5295 = vmatprep.subr.bf16.mxu0 %v6330_v7  ;;  %5377 = vmatprep.subr.bf16.mxu1 %v6332_v8  ;;  %v6125_v7 = vcombine.low %v3682_v56, %v3686_v57  ;;  %v6134_v9 = vcombine.high %v3690_v3, %v3694_v4  ;;  %v6136_v14 = vcombine.high %v3691_v5, %v3695_v6  ;;  %v3738_v56 = vld [vmem:[#allocation17 + $0x2d0] sm:$0xff] }
 0x83e   :  { %v6133_v19 = vcombine.low %v3690_v3, %v3694_v4  ;;  %v3742_v57 = vld [vmem:[#allocation17 + $0x2f0] sm:$0xff] }
 0x83f   :  { %v3746_v3 = vld [vmem:[#allocation17 + $0x310] sm:$0xff] }
 0x840   :  { %5296 = vmatpush1.bf16.msra.mxu0 %v6329_v17  ;;  %5378 = vmatpush1.bf16.msra.mxu1 %v6331_v18  ;;  %v3699_v17 = vld [vmem:[#allocation17 + $0x198] sm:$0xff]  ;;  %v3750_v4 = vld [vmem:[#allocation17 + $0x330] sm:$0xff] }
 0x841   :  { %5297 = vmatprep.subr.bf16.mxu0 %v6338_v21  ;;  %5379 = vmatprep.subr.bf16.mxu1 %v6340_v11  ;;  %v3703_v18 = vld [vmem:[#allocation17 + $0x1b8] sm:$0xff]  ;;  %v6135_v21 = vcombine.low %v3691_v5, %v3695_v6  ;;  %v6142_v11 = vcombine.high %v3698_v15, %v3702_v16 }
 0x842   :  { %v6144_v13 = vcombine.high %v3699_v17, %v3703_v18  ;;  %v6143_v26 = vcombine.low %v3699_v17, %v3703_v18  ;;  %v3747_v5 = vld [vmem:[#allocation17 + $0x318] sm:$0xff] }
 0x843   :  { %v3751_v6 = vld [vmem:[#allocation17 + $0x338] sm:$0xff] }
 0x844   :  { %5298 = vmatpush1.bf16.msra.mxu0 %v6337_v24  ;;  %5380 = vmatpush1.bf16.msra.mxu1 %v6339_v25  ;;  %v3711_v24 = vld [vmem:[#allocation17 + $0x1f8] sm:$0xff]  ;;  %v6141_v25 = vcombine.low %v3698_v15, %v3702_v16  ;;  %v3754_v15 = vld [vmem:[#allocation17 + $0x350] sm:$0xff] }
 0x845   :  { %5390 = vmatprep.subr.bf16.mxu0 %v6094_v27  ;;  %5472 = vmatprep.subr.bf16.mxu1 %v6096_v28  ;;  %v6150_v27 = vcombine.high %v3706_v48, %v3710_v22  ;;  %v6152_v28 = vcombine.high %v3707_v23, %v3711_v24  ;;  %v3758_v16 = vld [vmem:[#allocation17 + $0x370] sm:$0xff]  ;;  %v3755_v17 = vld [vmem:[#allocation17 + $0x358] sm:$0xff] }
 0x846   :  { %v3759_v18 = vld [vmem:[#allocation17 + $0x378] sm:$0xff] }
 0x847   :  { %5300 = vmatmul.mubr.bf16.vlgmr.msra.gmra.mrb[12].mxu0 %v7859_v33  ;;  %5382 = vmatmul.mubr.bf16.vlgmr.msra.gmra.mrb[24].mxu1 %v7859_v33 }
 0x848   :  { %5391 = vmatpush1.bf16.msra.mxu0 %v6093_v32  ;;  %5422 = vmatprep.mubr.bf16.mxu0 %v7844_v10  ;;  %v6149_v32 = vcombine.low %v3706_v48, %v3710_v22  ;;  %v3762_v48 = vld [vmem:[#allocation17 + $0x390] sm:$0xff] }
 0x849   :  { %5473 = vmatpush1.bf16.msra.mxu1 %v6095_v34  ;;  %5504 = vmatprep.mubr.bf16.mxu1 %v7844_v10  ;;  %v3683_v10 = vld [vmem:[#allocation17 + $0x118] sm:$0xff]  ;;  %v6151_v34 = vcombine.low %v3707_v23, %v3711_v24  ;;  %v3766_v22 = vld [vmem:[#allocation17 + $0x3b0] sm:$0xff] }
 0x84a   :  { %5392 = vmatprep.subr.bf16.mxu0 %v6102_v35  ;;  %5474 = vmatprep.subr.bf16.mxu1 %v6104_v36  ;;  %v6128_v2 = vcombine.high %v3683_v10, %v3687_v60  ;;  %v6127_v8 = vcombine.low %v3683_v10, %v3687_v60  ;;  %v6158_v35 = vcombine.high %v3714_v29, %v3718_v30  ;;  %v3739_v10 = vld [vmem:[#allocation17 + $0x2d8] sm:$0xff] }
 0x84b   :  { %v6160_v36 = vcombine.high %v3715_v53, %v3719_v31  ;;  %v3743_v60 = vld [vmem:[#allocation17 + $0x2f8] sm:$0xff] }
 0x84c   :  { %5393 = vmatpush1.bf16.msra.mxu0 %v6101_v41  ;;  %v6157_v41 = vcombine.low %v3714_v29, %v3718_v30  ;;  %v3763_v23 = vld [vmem:[#allocation17 + $0x398] sm:$0xff]  ;;  %v3770_v29 = vld [vmem:[#allocation17 + $0x3d0] sm:$0xff] }
 0x84d   :  { %5475 = vmatpush1.bf16.msra.mxu1 %v6103_v42  ;;  %5394 = vmatprep.subr.bf16.mxu0 %v6110_v43  ;;  %v6159_v42 = vcombine.low %v3715_v53, %v3719_v31  ;;  %v6166_v43 = vcombine.high %v3722_v37, %v3726_v38  ;;  %v3767_v24 = vld [vmem:[#allocation17 + $0x3b8] sm:$0xff]  ;;  %v3774_v30 = vld [vmem:[#allocation17 + $0x3f0] sm:$0xff] }
 0x84e   :  { %5476 = vmatprep.subr.bf16.mxu1 %v6112_v45  ;;  %v6168_v45 = vcombine.high %v3723_v39, %v3727_v40  ;;  %v3771_v53 = vld [vmem:[#allocation17 + $0x3d8] sm:$0xff] }
 0x84f   :  { %v3775_v31 = vld [vmem:[#allocation17 + $0x3f8] sm:$0xff] }
 0x850   :  { %5395 = vmatpush1.bf16.msra.mxu0 %v6109_v51  ;;  %v6165_v51 = vcombine.low %v3722_v37, %v3726_v38  ;;  %v3778_v37 = vld [vmem:[#allocation17 + $0x410] sm:$0xff] }
 0x851   :  { %5477 = vmatpush1.bf16.msra.mxu1 %v6111_v52  ;;  %5396 = vmatprep.subr.bf16.mxu0 %v6118_v54  ;;  %v6167_v52 = vcombine.low %v3723_v39, %v3727_v40  ;;  %v6174_v54 = vcombine.high %v3730_v46, %v3734_v47  ;;  %v3782_v38 = vld [vmem:[#allocation17 + $0x430] sm:$0xff]  ;;  %v3779_v39 = vld [vmem:[#allocation17 + $0x418] sm:$0xff] }
 0x852   :  { %5478 = vmatprep.subr.bf16.mxu1 %v6120_v55  ;;  %v6176_v55 = vcombine.high %v3731_v49, %v3735_v50  ;;  %v3783_v40 = vld [vmem:[#allocation17 + $0x438] sm:$0xff] }
 0x854   :  { %5397 = vmatpush1.bf16.msra.mxu0 %v6117_v63  ;;  %v6173_v63 = vcombine.low %v3730_v46, %v3734_v47  ;;  %v3786_v46 = vld [vmem:[#allocation17 + $0x450] sm:$0xff] }
 0x855   :  { %5479 = vmatpush1.bf16.msra.mxu1 %v6119_v0  ;;  %5398 = vmatprep.subr.bf16.mxu0 %v6126_v1  ;;  %v6175_v0 = vcombine.low %v3731_v49, %v3735_v50  ;;  %v6182_v1 = vcombine.high %v3738_v56, %v3742_v57  ;;  %v3790_v47 = vld [vmem:[#allocation17 + $0x470] sm:$0xff]  ;;  %v6221_v49 = vcombine.low %v3778_v37, %v3782_v38  ;;  %v3787_v50 = vld [vmem:[#allocation17 + $0x458] sm:$0xff] }
 0x856   :  { %5480 = vmatprep.subr.bf16.mxu1 %v6128_v2  ;;  %v6184_v2 = vcombine.high %v3739_v10, %v3743_v60 }
 0x858   :  { %5399 = vmatpush1.bf16.msra.mxu0 %v6125_v7  ;;  %v6181_v7 = vcombine.low %v3738_v56, %v3742_v57  ;;  %v3798_v56 = vld [vmem:[#allocation17 + $0x4b0] sm:$0xff] }
 0x859   :  { %5481 = vmatpush1.bf16.msra.mxu1 %v6127_v8  ;;  %5400 = vmatprep.subr.bf16.mxu0 %v6134_v9  ;;  %v6183_v8 = vcombine.low %v3739_v10, %v3743_v60  ;;  %v6190_v9 = vcombine.high %v3746_v3, %v3750_v4  ;;  %v3795_v10 = vld [vmem:[#allocation17 + $0x498] sm:$0xff] }
 0x85a   :  { %5482 = vmatprep.subr.bf16.mxu1 %v6136_v14  ;;  %v6192_v14 = vcombine.high %v3747_v5, %v3751_v6  ;;  %v3799_v60 = vld [vmem:[#allocation17 + $0x4b8] sm:$0xff] }
 0x85c   :  { %5401 = vmatpush1.bf16.msra.mxu0 %v6133_v19  ;;  %v6189_v19 = vcombine.low %v3746_v3, %v3750_v4  ;;  %v3802_v3 = vld [vmem:[#allocation17 + $0x4d0] sm:$0xff] }
 0x85d   :  { %5483 = vmatpush1.bf16.msra.mxu1 %v6135_v21  ;;  %5402 = vmatprep.subr.bf16.mxu0 %v6142_v11  ;;  %v6191_v21 = vcombine.low %v3747_v5, %v3751_v6  ;;  %v6198_v11 = vcombine.high %v3754_v15, %v3758_v16  ;;  %v3806_v4 = vld [vmem:[#allocation17 + $0x4f0] sm:$0xff]  ;;  %v3803_v5 = vld [vmem:[#allocation17 + $0x4d8] sm:$0xff] }
 0x85e   :  { %5484 = vmatprep.subr.bf16.mxu1 %v6144_v13  ;;  %v6200_v13 = vcombine.high %v3755_v17, %v3759_v18  ;;  %v3807_v6 = vld [vmem:[#allocation17 + $0x4f8] sm:$0xff] }
 0x860   :  { %5403 = vmatpush1.bf16.msra.mxu0 %v6141_v25  ;;  %v6197_v25 = vcombine.low %v3754_v15, %v3758_v16  ;;  %v3814_v15 = vld [vmem:[#allocation17 + $0x530] sm:$0xff]  ;;  %v3811_v16 = vld [vmem:[#allocation17 + $0x518] sm:$0xff] }
 0x861   :  { %5485 = vmatpush1.bf16.msra.mxu1 %v6143_v26  ;;  %5404 = vmatprep.subr.bf16.mxu0 %v6150_v27  ;;  %v6199_v26 = vcombine.low %v3755_v17, %v3759_v18  ;;  %v6206_v27 = vcombine.high %v3762_v48, %v3766_v22  ;;  %v3815_v17 = vld [vmem:[#allocation17 + $0x538] sm:$0xff]  ;;  %v6247_v18 = vcombine.low %v3803_v5, %v3807_v6 }
 0x862   :  { %5486 = vmatprep.subr.bf16.mxu1 %v6152_v28  ;;  %v6208_v28 = vcombine.high %v3763_v23, %v3767_v24 }
 0x864   :  { %5405 = vmatpush1.bf16.msra.mxu0 %v6149_v32  ;;  %v6205_v32 = vcombine.low %v3762_v48, %v3766_v22  ;;  %v3819_v48 = vld [vmem:[#allocation17 + $0x558] sm:$0xff] }
 0x865   :  { %5487 = vmatpush1.bf16.msra.mxu1 %v6151_v34  ;;  %5406 = vmatprep.subr.bf16.mxu0 %v6158_v35  ;;  %v6207_v34 = vcombine.low %v3763_v23, %v3767_v24  ;;  %v6214_v35 = vcombine.high %v3770_v29, %v3774_v30  ;;  %v3823_v22 = vld [vmem:[#allocation17 + $0x578] sm:$0xff]  ;;  %v6255_v24 = vcombine.low %v3811_v16, %v3815_v17 }
 0x866   :  { %5488 = vmatprep.subr.bf16.mxu1 %v6160_v36  ;;  %v6216_v36 = vcombine.high %v3771_v53, %v3775_v31 }
 0x868   :  { %5407 = vmatpush1.bf16.msra.mxu0 %v6157_v41  ;;  %v6213_v41 = vcombine.low %v3770_v29, %v3774_v30  ;;  %v3827_v29 = vld [vmem:[#allocation17 + $0x598] sm:$0xff] }
 0x869   :  { %5489 = vmatpush1.bf16.msra.mxu1 %v6159_v42  ;;  %5408 = vmatprep.subr.bf16.mxu0 %v6166_v43  ;;  %v6215_v42 = vcombine.low %v3771_v53, %v3775_v31  ;;  %v6222_v43 = vcombine.high %v3778_v37, %v3782_v38  ;;  %v3831_v30 = vld [vmem:[#allocation17 + $0x5b8] sm:$0xff]  ;;  %v6263_v31 = vcombine.low %v3819_v48, %v3823_v22 }
 0x86a   :  { %5490 = vmatprep.subr.bf16.mxu1 %v6168_v45  ;;  %v6224_v45 = vcombine.high %v3779_v39, %v3783_v40  ;;  %v3835_v37 = vld [vmem:[#allocation17 + $0x5d8] sm:$0xff] }
 0x86b   :  { %v3839_v38 = vld [vmem:[#allocation17 + $0x5f8] sm:$0xff] }
 0x86c   :  { %5409 = vmatpush1.bf16.msra.mxu0 %v6165_v51  ;;  %v3791_v51 = vld [vmem:[#allocation17 + $0x478] sm:$0xff] }
 0x86d   :  { %5491 = vmatpush1.bf16.msra.mxu1 %v6167_v52  ;;  %5410 = vmatprep.subr.bf16.mxu0 %v6174_v54  ;;  %v6223_v52 = vcombine.low %v3779_v39, %v3783_v40  ;;  %v6230_v54 = vcombine.high %v3786_v46, %v3790_v47  ;;  %v6232_v57 = vcombine.high %v3787_v50, %v3791_v51 }
 0x86e   :  { %5492 = vmatprep.subr.bf16.mxu1 %v6176_v55  ;;  %v3794_v55 = vld [vmem:[#allocation17 + $0x490] sm:$0xff]  ;;  %v6271_v40 = vcombine.low %v3827_v29, %v3831_v30 }
 0x870   :  { %5411 = vmatpush1.bf16.msra.mxu0 %v6173_v63  ;;  %v6229_v63 = vcombine.low %v3786_v46, %v3790_v47  ;;  %v3843_v46 = vld [vmem:[#allocation17 + $0x618] sm:$0xff] }
 0x871   :  { %5493 = vmatpush1.bf16.msra.mxu1 %v6175_v0  ;;  %5412 = vmatprep.subr.bf16.mxu0 %v6182_v1  ;;  %v6231_v0 = vcombine.low %v3787_v50, %v3791_v51  ;;  %v6238_v1 = vcombine.high %v3794_v55, %v3798_v56  ;;  %v3847_v47 = vld [vmem:[#allocation17 + $0x638] sm:$0xff]  ;;  %v6279_v50 = vcombine.low %v3835_v37, %v3839_v38 }
 0x872   :  { %5494 = vmatprep.subr.bf16.mxu1 %v6184_v2  ;;  %v6240_v2 = vcombine.high %v3795_v10, %v3799_v60 }
 0x874   :  { %5413 = vmatpush1.bf16.msra.mxu0 %v6181_v7  ;;  %v6237_v7 = vcombine.low %v3794_v55, %v3798_v56  ;;  %v3854_v55 = vld [vmem:[#allocation17 + $0x670] sm:$0xff]  ;;  %v3851_v56 = vld [vmem:[#allocation17 + $0x658] sm:$0xff] }
 0x875   :  { %5495 = vmatpush1.bf16.msra.mxu1 %v6183_v8  ;;  %5414 = vmatprep.subr.bf16.mxu0 %v6190_v9  ;;  %v6246_v8 = vcombine.high %v3802_v3, %v3806_v4  ;;  %v6248_v9 = vcombine.high %v3803_v5, %v3807_v6 }
 0x876   :  { %5496 = vmatprep.subr.bf16.mxu1 %v6192_v14  ;;  %v3810_v14 = vld [vmem:[#allocation17 + $0x510] sm:$0xff] }
 0x877   :  { %v6253_v23 = vcombine.low %v3810_v14, %v3814_v15 }
 0x878   :  { %5415 = vmatpush1.bf16.msra.mxu0 %v6189_v19  ;;  %v6254_v19 = vcombine.high %v3810_v14, %v3814_v15  ;;  %v3867_v14 = vld [vmem:[#allocation17 + $0x6d8] sm:$0xff] }
 0x879   :  { %5497 = vmatpush1.bf16.msra.mxu1 %v6191_v21  ;;  %5416 = vmatprep.subr.bf16.mxu0 %v6198_v11  ;;  %v6256_v21 = vcombine.high %v3811_v16, %v3815_v17  ;;  %v3818_v11 = vld [vmem:[#allocation17 + $0x550] sm:$0xff]  ;;  %v3871_v15 = vld [vmem:[#allocation17 + $0x6f8] sm:$0xff] }
 0x87a   :  { %5498 = vmatprep.subr.bf16.mxu1 %v6200_v13  ;;  %v3822_v13 = vld [vmem:[#allocation17 + $0x570] sm:$0xff] }
 0x87b   :  { %v6261_v53 = vcombine.low %v3818_v11, %v3822_v13 }
 0x87c   :  { %5417 = vmatpush1.bf16.msra.mxu0 %v6197_v25  ;;  %v6262_v25 = vcombine.high %v3818_v11, %v3822_v13  ;;  %v3875_v11 = vld [vmem:[#allocation17 + $0x718] sm:$0xff] }
 0x87d   :  { %5499 = vmatpush1.bf16.msra.mxu1 %v6199_v26  ;;  %5418 = vmatprep.subr.bf16.mxu0 %v6206_v27  ;;  %v6264_v26 = vcombine.high %v3819_v48, %v3823_v22  ;;  %v3826_v27 = vld [vmem:[#allocation17 + $0x590] sm:$0xff]  ;;  %v3879_v13 = vld [vmem:[#allocation17 + $0x738] sm:$0xff]  ;;  %v6311_v22 = vcombine.low %v3867_v14, %v3871_v15 }
 0x87e   :  { %5500 = vmatprep.subr.bf16.mxu1 %v6208_v28  ;;  %v3830_v28 = vld [vmem:[#allocation17 + $0x5b0] sm:$0xff] }
 0x87f   :  { %v6269_v39 = vcombine.low %v3826_v27, %v3830_v28 }
 0x880   :  { %5419 = vmatpush1.bf16.msra.mxu0 %v6205_v32  ;;  %v6270_v32 = vcombine.high %v3826_v27, %v3830_v28  ;;  %v3883_v27 = vld [vmem:[#allocation17 + $0x758] sm:$0xff] }
 0x881   :  { %5501 = vmatpush1.bf16.msra.mxu1 %v6207_v34  ;;  %5420 = vmatprep.subr.bf16.mxu0 %v6214_v35  ;;  %v6272_v34 = vcombine.high %v3827_v29, %v3831_v30  ;;  %v3834_v35 = vld [vmem:[#allocation17 + $0x5d0] sm:$0xff]  ;;  %v3887_v28 = vld [vmem:[#allocation17 + $0x778] sm:$0xff]  ;;  %v6319_v30 = vcombine.low %v3875_v11, %v3879_v13 }
 0x882   :  { %5502 = vmatprep.subr.bf16.mxu1 %v6216_v36  ;;  %v3838_v36 = vld [vmem:[#allocation17 + $0x5f0] sm:$0xff] }
 0x884   :  { %5421 = vmatpush1.bf16.msra.mxu0 %v6213_v41  ;;  %v6278_v41 = vcombine.high %v3834_v35, %v3838_v36 }
 0x885   :  { %5503 = vmatpush1.bf16.msra.mxu1 %v6215_v42  ;;  %5431 = vmatprep.subr.bf16.mxu0 %v6222_v43  ;;  %v6280_v42 = vcombine.high %v3835_v37, %v3839_v38  ;;  %v3842_v43 = vld [vmem:[#allocation17 + $0x610] sm:$0xff]  ;;  %v6327_v38 = vcombine.low %v3883_v27, %v3887_v28 }
 0x886   :  { %5513 = vmatprep.subr.bf16.mxu1 %v6224_v45  ;;  %v3846_v45 = vld [vmem:[#allocation17 + $0x630] sm:$0xff] }
 0x887   :  { %5423 = vmatmul.mubr.bf16.vlgmr.msra.gmra.mrb[16].mxu0 %v7846_v12  ;;  %v6286_v51 = vcombine.high %v3842_v43, %v3846_v45 }
 0x888   :  { %5505 = vmatmul.mubr.bf16.vlgmr.msra.gmra.mrb[28].mxu1 %v7846_v12  ;;  %5432 = vmatpush1.bf16.msra.mxu0 %v6221_v49  ;;  %v6239_v12 = vcombine.low %v3795_v10, %v3799_v60  ;;  %v6277_v49 = vcombine.low %v3834_v35, %v3838_v36  ;;  %v6285_v10 = vcombine.low %v3842_v43, %v3846_v45  ;;  %v3891_v35 = vld [vmem:[#allocation17 + $0x798] sm:$0xff] }
 0x889   :  { %5463 = vmatprep.mubr.bf16.mxu0 %v7850_v20  ;;  %5514 = vmatpush1.bf16.msra.mxu1 %v6223_v52  ;;  %v6288_v52 = vcombine.high %v3843_v46, %v3847_v47  ;;  %v6287_v60 = vcombine.low %v3843_v46, %v3847_v47  ;;  %v3895_v36 = vld [vmem:[#allocation17 + $0x7b8] sm:$0xff] }
 0x88a   :  { %5545 = vmatprep.mubr.bf16.mxu1 %v7850_v20  ;;  %5433 = vmatprep.subr.bf16.mxu0 %v6230_v54  ;;  %v6245_v20 = vcombine.low %v3802_v3, %v3806_v4  ;;  %v3850_v54 = vld [vmem:[#allocation17 + $0x650] sm:$0xff]  ;;  %v3859_v3 = vld [vmem:[#allocation17 + $0x698] sm:$0xff]  ;;  %v6335_v47 = vcombine.low %v3891_v35, %v3895_v36 }
 0x88b   :  { %5515 = vmatprep.subr.bf16.mxu1 %v6232_v57  ;;  %v3855_v57 = vld [vmem:[#allocation17 + $0x678] sm:$0xff]  ;;  %v6293_v5 = vcombine.low %v3850_v54, %v3854_v55 }
 0x88c   :  { %5434 = vmatpush1.bf16.msra.mxu0 %v6229_v63  ;;  %v6294_v63 = vcombine.high %v3850_v54, %v3854_v55  ;;  %v3863_v4 = vld [vmem:[#allocation17 + $0x6b8] sm:$0xff]  ;;  %v6295_v6 = vcombine.low %v3851_v56, %v3855_v57 }
 0x88d   :  { %5516 = vmatpush1.bf16.msra.mxu1 %v6231_v0  ;;  %5435 = vmatprep.subr.bf16.mxu0 %v6238_v1  ;;  %v6296_v0 = vcombine.high %v3851_v56, %v3855_v57  ;;  %v3858_v1 = vld [vmem:[#allocation17 + $0x690] sm:$0xff]  ;;  %v6303_v17 = vcombine.low %v3859_v3, %v3863_v4  ;;  %v3899_v43 = vld [vmem:[#allocation17 + $0x7d8] sm:$0xff] }
 0x88e   :  { %5517 = vmatprep.subr.bf16.mxu1 %v6240_v2  ;;  %v3862_v2 = vld [vmem:[#allocation17 + $0x6b0] sm:$0xff]  ;;  %v3903_v45 = vld [vmem:[#allocation17 + $0x7f8] sm:$0xff] }
 0x88f   :  { %v6301_v16 = vcombine.low %v3858_v1, %v3862_v2  ;;  %v7874_v54 = vld [vmem:[%s7932_s16] sm:$0xff]  ;;  %s7446_s16 = smov [#allocation19]  }
 0x890   :  { %5436 = vmatpush1.bf16.msra.mxu0 %v6237_v7  ;;  %v6302_v7 = vcombine.high %v3858_v1, %v3862_v2  ;;  %v3909_v55 = vrot.slane %v7874_v54, %v7743_v59  ;;  %v3917_v56 = vrot.slane %v7874_v54, %v7762_v44  ;;  %v3913_v57 = vrot.slane %v7874_v54, %v7748_v61  ;;  %s5628_s28 = sshll.u32 %s7446_s16, 4  ;;  %s5629_s28 = int_to_ptr.vmem [resolvable:$true] %s5628_s28 }
 0x891   :  { %5518 = vmatpush1.bf16.msra.mxu1 %v6239_v12  ;;  %5437 = vmatprep.subr.bf16.mxu0 %v6246_v8  ;;  %v6304_v12 = vcombine.high %v3859_v3, %v3863_v4  ;;  %v3866_v8 = vld [vmem:[#allocation17 + $0x6d0] sm:$0xff]  ;;  %s7389_s3 = scalar_lea.vmem %s5629_s28, 128  ;;  %p7394_p11 = scmp.lt.s32.totalorder %s5629_s28, %s5629_s28 }
 0x892   :  { %5519 = vmatprep.subr.bf16.mxu1 %v6248_v9  ;;  %v3870_v9 = vld [vmem:[#allocation17 + $0x6f0] sm:$0xff]  ;;  %p7390_p10 = scmp.ne.s32.totalorder %s5629_s28, %s7389_s3  ;;  %p7395_p12 = scmp.lt.s32.totalorder %s7389_s3, %s7389_s3 }
 0x893   :  { %v6309_v48 = vcombine.low %v3866_v8, %v3870_v9 }
 0x894   :  { %5438 = vmatpush1.bf16.msra.mxu0 %v6245_v20  ;;  %v6310_v20 = vcombine.high %v3866_v8, %v3870_v9  ;;  %p7396_p13 = por %p7395_p12, %p7394_p11 }
 0x895   :  { %5520 = vmatpush1.bf16.msra.mxu1 %v6247_v18  ;;  %5439 = vmatprep.subr.bf16.mxu0 %v6254_v19  ;;  %v6312_v18 = vcombine.high %v3867_v14, %v3871_v15  ;;  %v3874_v19 = vld [vmem:[#allocation17 + $0x710] sm:$0xff] }
 0x896   :  { %5521 = vmatprep.subr.bf16.mxu1 %v6256_v21  ;;  %v3878_v21 = vld [vmem:[#allocation17 + $0x730] sm:$0xff]  ;;  %p7397_p0 = pnand %p7396_p13, %p7390_p10 }
 0x897   :  { %v6317_v29 = vcombine.low %v3874_v19, %v3878_v21 }
 0x898   :  { %5440 = vmatpush1.bf16.msra.mxu0 %v6253_v23  ;;  %v6318_v23 = vcombine.high %v3874_v19, %v3878_v21 }
 0x899   :  { %5522 = vmatpush1.bf16.msra.mxu1 %v6255_v24  ;;  %5441 = vmatprep.subr.bf16.mxu0 %v6262_v25  ;;  %v6320_v24 = vcombine.high %v3875_v11, %v3879_v13  ;;  %v3882_v25 = vld [vmem:[#allocation17 + $0x750] sm:$0xff] }
 0x89a   :  { %5523 = vmatprep.subr.bf16.mxu1 %v6264_v26  ;;  %v3886_v26 = vld [vmem:[#allocation17 + $0x770] sm:$0xff] }
 0x89b   :  { %v6325_v37 = vcombine.low %v3882_v25, %v3886_v26 }
 0x89c   :  { %5442 = vmatpush1.bf16.msra.mxu0 %v6261_v53  ;;  %v6326_v53 = vcombine.high %v3882_v25, %v3886_v26 }
 0x89d   :  { %5524 = vmatpush1.bf16.msra.mxu1 %v6263_v31  ;;  %5443 = vmatprep.subr.bf16.mxu0 %v6270_v32  ;;  %v6328_v31 = vcombine.high %v3883_v27, %v3887_v28  ;;  %v3890_v32 = vld [vmem:[#allocation17 + $0x790] sm:$0xff] }
 0x89e   :  { %5525 = vmatprep.subr.bf16.mxu1 %v6272_v34  ;;  %v3894_v34 = vld [vmem:[#allocation17 + $0x7b0] sm:$0xff] }
 0x89f   :  { %v6333_v46 = vcombine.low %v3890_v32, %v3894_v34 }
 0x8a0   :  { %5444 = vmatpush1.bf16.msra.mxu0 %v6269_v39  ;;  %v6334_v39 = vcombine.high %v3890_v32, %v3894_v34 }
 0x8a1   :  { %5526 = vmatpush1.bf16.msra.mxu1 %v6271_v40  ;;  %5445 = vmatprep.subr.bf16.mxu0 %v6278_v41  ;;  %v6336_v40 = vcombine.high %v3891_v35, %v3895_v36  ;;  %v3898_v41 = vld [vmem:[#allocation17 + $0x7d0] sm:$0xff] }
 0x8a2   :  { %5527 = vmatprep.subr.bf16.mxu1 %v6280_v42  ;;  %v3902_v42 = vld [vmem:[#allocation17 + $0x7f0] sm:$0xff] }
 0x8a4   :  { %5446 = vmatpush1.bf16.msra.mxu0 %v6277_v49  ;;  %v6342_v49 = vcombine.high %v3898_v41, %v3902_v42 }
 0x8a5   :  { %5528 = vmatpush1.bf16.msra.mxu1 %v6279_v50  ;;  %5447 = vmatprep.subr.bf16.mxu0 %v6286_v51  ;;  %v6344_v50 = vcombine.high %v3899_v43, %v3903_v45  ;;  %v6341_v51 = vcombine.low %v3898_v41, %v3902_v42 }
 0x8a6   :  { %5529 = vmatprep.subr.bf16.mxu1 %v6288_v52  ;;  %v6343_v52 = vcombine.low %v3899_v43, %v3903_v45 }
 0x8a8   :  { %5448 = vmatpush1.bf16.msra.mxu0 %v6285_v10  ;;  %v3921_v10 = vrot.slane %v7874_v54, %v7751_v62 }
 0x8a9   :  { %5530 = vmatpush1.bf16.msra.mxu1 %v6287_v60  ;;  %5449 = vmatprep.subr.bf16.mxu0 %v6294_v63 }
 0x8aa   :  { %5531 = vmatprep.subr.bf16.mxu1 %v6296_v0 }
 0x8ac   :  { %5450 = vmatpush1.bf16.msra.mxu0 %v6293_v5 }
 0x8ad   :  { %5532 = vmatpush1.bf16.msra.mxu1 %v6295_v6  ;;  %5451 = vmatprep.subr.bf16.mxu0 %v6302_v7 }
 0x8ae   :  { %5533 = vmatprep.subr.bf16.mxu1 %v6304_v12 }
 0x8b0   :  { %5452 = vmatpush1.bf16.msra.mxu0 %v6301_v16 }
 0x8b1   :  { %5534 = vmatpush1.bf16.msra.mxu1 %v6303_v17  ;;  %5453 = vmatprep.subr.bf16.mxu0 %v6310_v20 }
 0x8b2   :  { %5535 = vmatprep.subr.bf16.mxu1 %v6312_v18 }
 0x8b4   :  { %5454 = vmatpush1.bf16.msra.mxu0 %v6309_v48 }
 0x8b5   :  { %5536 = vmatpush1.bf16.msra.mxu1 %v6311_v22  ;;  %5455 = vmatprep.subr.bf16.mxu0 %v6318_v23 }
 0x8b6   :  { %5537 = vmatprep.subr.bf16.mxu1 %v6320_v24 }
 0x8b8   :  { %5456 = vmatpush1.bf16.msra.mxu0 %v6317_v29 }
 0x8b9   :  { %5538 = vmatpush1.bf16.msra.mxu1 %v6319_v30  ;;  %5457 = vmatprep.subr.bf16.mxu0 %v6326_v53 }
 0x8ba   :  { %5539 = vmatprep.subr.bf16.mxu1 %v6328_v31 }
 0x8bc   :  { %5458 = vmatpush1.bf16.msra.mxu0 %v6325_v37 }
 0x8bd   :  { %5540 = vmatpush1.bf16.msra.mxu1 %v6327_v38  ;;  %5459 = vmatprep.subr.bf16.mxu0 %v6334_v39 }
 0x8be   :  { %5541 = vmatprep.subr.bf16.mxu1 %v6336_v40 }
 0x8c0   :  { %5460 = vmatpush1.bf16.msra.mxu0 %v6333_v46 }
 0x8c1   :  { %5542 = vmatpush1.bf16.msra.mxu1 %v6335_v47  ;;  %5461 = vmatprep.subr.bf16.mxu0 %v6342_v49 }
 0x8c2   :  { %5543 = vmatprep.subr.bf16.mxu1 %v6344_v50 }
 0x8c4   :  { %5462 = vmatpush1.bf16.msra.mxu0 %v6341_v51 }
 0x8c5   :  { %5544 = vmatpush1.bf16.msra.mxu1 %v6343_v52 }
 0x8c7   :  { %5464 = vmatmul.mubr.bf16.vlgmr.msra.gmra.mrb[16].mxu0 %v7859_v33 }
 0x8c8   :  { %5546 = vmatmul.mubr.bf16.vlgmr.msra.gmra.mrb[28].mxu1 %v7859_v33 }
 0x91a   :  { %v5301_v60 = vpop.f32.mrb[12].mxu0  ;;  %v5383_v63 = vpop.f32.mrb[24].mxu1 }
 0x91b   :  { %v6439_v33 = vadd.f32 %v5301_v60, %v3909_v55  ;;  %v6441_v0 = vadd.f32 %v5383_v63, %v3917_v56  ;;  %v5303_v1 = vpop.f32.mrb[13].mxu0  ;;  %v5385_v2 = vpop.f32.mrb[25].mxu1 }
 0x91c   :  { %v6440_v3 = vadd.f32 %v5303_v1, %v3913_v57  ;;  %v6442_v4 = vadd.f32 %v5385_v2, %v3921_v10  ;;  %v5305_v5 = vpop.f32.mrb[14].mxu0  ;;  %v5387_v6 = vpop.f32.mrb[26].mxu1 }
 0x91d   :  { %v5554_v59 = vmul.f32 0.5, %v6439_v33  ;;  %v5556_v7 = vmul.f32 0.5, %v6441_v0  ;;  %v5306_v12 = vpop.f32.mrb[15].mxu0  ;;  %v5388_v44 = vpop.f32.mrb[27].mxu1 }
 0x91e   :  { %v5555_v8 = vmul.f32 0.5, %v6440_v3  ;;  %v5557_v9 = vmul.f32 0.5, %v6442_v4 }
 0x91f   :  { %7153 = vtanh.f32 %v5554_v59 }
 0x920   :  { %7155 = vtanh.f32 %v5556_v7 }
 0x921   :  { %7157 = vtanh.f32 %v5555_v8 }
 0x922   :  { %7159 = vtanh.f32 %v5557_v9 }
 0x929   :  { %v7154_v61 = vpop.eup %7153 }
 0x92a   :  { %v7156_v62 = vpop.eup %7155  ;;  %v5570_v14 = vmul.f32 0.5, %v7154_v61 }
 0x92b   :  { %v7158_v15 = vpop.eup %7157  ;;  %v5572_v16 = vmul.f32 0.5, %v7156_v62 }
 0x92c   :  { %v7160_v17 = vpop.eup %7159  ;;  %v5578_v20 = vadd.f32 0.5, %v5570_v14  ;;  %v5571_v18 = vmul.f32 0.5, %v7158_v15 }
 0x92d   :  { %v5580_v19 = vadd.f32 0.5, %v5572_v16  ;;  %v5573_v21 = vmul.f32 0.5, %v7160_v17 }
 0x92e   :  { %v5579_v11 = vadd.f32 0.5, %v5571_v18 }
 0x92f   :  { %v5581_v13 = vadd.f32 0.5, %v5573_v21 }
 0x930   :  { %v6349_v48 = vpack.c.bf16 %v5579_v11, %v5578_v20 }
 0x931   :  { %v6350_v22 = vpack.c.bf16 %v5581_v13, %v5580_v19 }
 0x932   :  { %5618 = vst [vmem:[%s7934_s18] sm:$0xff] %v6349_v48 }
 0x933   :  { %5619 = vst [vmem:[%s7934_s18 + $0x8] sm:$0xff] %v6350_v22 }
 0x934   :  { %7400 = shalt.err (!%p7397_p0)
}
 0x935   :  { %s7401_s1 = scalar_lea.hbm %s7933_s17, 128 }
 0x936   :  { %p7402_p1 = scmp.ne.s32.totalorder %s7933_s17, %s7401_s1  ;;  %p7405_p2 = scmp.lt.u32.totalorder %s7401_s1, %s7933_s17 }
 0x938   :  { %p7407_p3 = pnand %p7405_p2, %p7402_p1 }
 0x93a   :  { %7410 = shalt.err (!%p7407_p3)
}
 0x93b   :  { %5631 = dma.vmem_to_hbm [thread:$0]  %s5629_s28, 128, %s7933_s17, [#allocation4]   ;;  %v3924_v23 = vsub.s32 4, %v7740_v58  ;;  %v3932_v24 = vsub.s32 6, %v7740_v58  ;;  %v3928_v25 = vsub.s32 5, %v7740_v58  ;;  %v3936_v26 = vsub.s32 7, %v7740_v58 }
 0x93d   :  { %v3925_v27 = vrot.slane %v7874_v54, %v3924_v23  ;;  %v3933_v28 = vrot.slane %v7874_v54, %v3932_v24  ;;  %v3929_v29 = vrot.slane %v7874_v54, %v3928_v25  ;;  %v3937_v30 = vrot.slane %v7874_v54, %v3936_v26 }
 0x99a   :  { %v5465_v53 = vpop.f32.mrb[16].mxu0 }
 0x99b   :  { %v6443_v31 = vadd.f32 %v5465_v53, %v3925_v27  ;;  %v5547_v32 = vpop.f32.mrb[28].mxu1  ;;  %v5467_v34 = vpop.f32.mrb[17].mxu0 }
 0x99c   :  { %v6445_v35 = vadd.f32 %v5547_v32, %v3933_v28  ;;  %v6444_v36 = vadd.f32 %v5467_v34, %v3929_v29  ;;  %v5549_v37 = vpop.f32.mrb[29].mxu1  ;;  %v5469_v38 = vpop.f32.mrb[18].mxu0 }
 0x99d   :  { %v5558_v39 = vmul.f32 0.5, %v6443_v31  ;;  %v6446_v40 = vadd.f32 %v5549_v37, %v3937_v30  ;;  %v5551_v41 = vpop.f32.mrb[30].mxu1  ;;  %v5470_v58 = vpop.f32.mrb[19].mxu0 }
 0x99e   :  { %v5560_v42 = vmul.f32 0.5, %v6445_v35  ;;  %v5559_v43 = vmul.f32 0.5, %v6444_v36  ;;  %v5552_v45 = vpop.f32.mrb[31].mxu1 }
 0x99f   :  { %7161 = vtanh.f32 %v5558_v39  ;;  %v5561_v46 = vmul.f32 0.5, %v6446_v40 }
 0x9a0   :  { %7163 = vtanh.f32 %v5560_v42 }
 0x9a1   :  { %7165 = vtanh.f32 %v5559_v43 }
 0x9a2   :  { %7167 = vtanh.f32 %v5561_v46 }
 0x9a9   :  { %v7162_v47 = vpop.eup %7161 }
 0x9aa   :  { %v7164_v49 = vpop.eup %7163  ;;  %v5574_v50 = vmul.f32 0.5, %v7162_v47 }
 0x9ab   :  { %v7166_v51 = vpop.eup %7165  ;;  %v5576_v52 = vmul.f32 0.5, %v7164_v49 }
 0x9ac   :  { %v7168_v54 = vpop.eup %7167  ;;  %v5582_v55 = vadd.f32 0.5, %v5574_v50  ;;  %v5575_v56 = vmul.f32 0.5, %v7166_v51 }
 0x9ad   :  { %v5584_v57 = vadd.f32 0.5, %v5576_v52  ;;  %v5577_v10 = vmul.f32 0.5, %v7168_v54 }
 0x9ae   :  { %v5583_v60 = vadd.f32 0.5, %v5575_v56 }
 0x9af   :  { %v5585_v63 = vadd.f32 0.5, %v5577_v10 }
 0x9b0   :  { %v6351_v33 = vpack.c.bf16 %v5583_v60, %v5582_v55 }
 0x9b1   :  { %v6352_v0 = vpack.c.bf16 %v5585_v63, %v5584_v57 }
 0x9b2   :  { %5620 = vst [vmem:[%s7934_s18 + $0x10] sm:$0xff] %v6351_v33 }
 0x9b3   :  { %5621 = vst [vmem:[%s7934_s18 + $0x18] sm:$0xff] %v6352_v0 }
 0x9b4   :  { %7423 = dma.done.wait [#allocation4], 128  }
 0x9b5   :  { %7424 = vsyncadd [#allocation4], 4294967168 }
 0x9b6   :  { %5639 = vsyncpa [#allocation3], 1 }
 0x9b7   :  { %5640 = vsyncpa [#allocation6], 1 }
 0x9b8   :  { %5641 = vsyncpa [#allocation9], 1 }
 0x9b9   :  { %5642 = vsyncpa [#allocation12], 1 }
 0x9ba   :  { %5643 = vsyncpa [#allocation15], 1 }
 0x9bb   :  { %5644 = vsyncpa [#allocation18], 1 }
 0x9bc   :  { %5645 = vsyncpa [#allocation4], 1 }

</bundles_post_ra>
